<compile_context>
chip_gen: v6e
topology: v6e:2x2x1
jax: 0.10.0
libtpu: 0.0.40
codegen_flags: <defaults>
</compile_context>

<pallas_src>
import numpy as np
import jax
import jax.numpy as jnp
from jax.experimental import pallas as pl
from jax.experimental.pallas import tpu as pltpu

# ----------------------------- configuration --------------------------------
B = 2
N_WORD = 16
N_H = 32              # unused in the all-CNN configuration (kept for reference)
N_DEPTH = 1
FILTER_NUM = 16
MAX_TOK_NUM = 12
MAX_X_LEN = 8
RRELU_SLOPE = (1.0 / 8.0 + 1.0 / 3.0) / 2.0   # eval-mode RReLU slope
BN_EPS = 1e-5

VMEM = pltpu.MemorySpace.VMEM
SMEM = pltpu.MemorySpace.SMEM


# --------------------------- in-kernel helpers -------------------------------
def _sigmoid(z):
    # exp + reciprocal both run on the EUP slot (free next to VALU/MXU work).
    return pl.reciprocal(1.0 + jnp.exp(-z), approx=True)


def _softmax_lastdim(s):
    m = jnp.max(s, axis=-1, keepdims=True)
    e = jnp.exp(s - m)
    return e * pl.reciprocal(jnp.sum(e, axis=-1, keepdims=True), approx=True)


# ----------------------------- Pallas kernels --------------------------------
def fused_conv_bn_rrelu(x_emb, conv_params):
    """All four Conv2d(1->F,(K,N_word)) + BatchNorm(eval) + RReLU(eval) branches fused.

    x_emb: (B, L, W).  Returns (B, L, 4F) with channel blocks
    [num(K=5) | col(K=7) | op(K=5) | str(K=5)].
    """
    Bb, L, W = x_emb.shape
    F = FILTER_NUM
    KMAX, PAD, KPAD = 7, 3, 128

    def eff(cp, K):
        # Fold BN scale into the conv weight; K=5 kernels are embedded in the K=7 window.
        scale = cp["gamma"] / jnp.sqrt(cp["var"] + BN_EPS)
        wk = jnp.transpose(cp["w"], (1, 2, 0)) * scale[None, None, :]     # (K, W, F)
        off = (KMAX - K) // 2
        wk7 = jnp.zeros((KMAX, W, F), jnp.float32).at[off:off + K].set(wk)
        shift = cp["b"] * scale + cp["beta"] - cp["mean"] * scale
        return wk7, shift

    parts = [eff(conv_params["num"], 5), eff(conv_params["col"], 7),
             eff(conv_params["op"], 5), eff(conv_params["str"], 5)]
    w_fused = jnp.concatenate([p[0] for p in parts], axis=-1).reshape(KMAX * W, 4 * F)
    w_fused = jnp.pad(w_fused, ((0, KPAD - KMAX * W), (0, 0)))            # (128, 4F)
    shift = jnp.concatenate([p[1] for p in parts]).reshape(1, 4 * F)

    # im2col (layout prep only; the conv arithmetic runs in the kernel below).
    xp = jnp.pad(x_emb, ((0, 0), (PAD, PAD), (0, 0)))
    patches = jnp.concatenate([xp[:, k:k + L, :] for k in range(KMAX)], axis=-1)
    patches = jnp.pad(patches.reshape(Bb * L, KMAX * W),
                      ((0, 0), (0, KPAD - KMAX * W)))                     # (B*L, 128)

    def kernel(p_ref, w_ref, s_ref, o_ref):
        y = jnp.dot(p_ref[...], w_ref[...],
                    preferred_element_type=jnp.float32) + s_ref[...]
        o_ref[...] = jnp.where(y >= 0.0, y, RRELU_SLOPE * y)

    out = pl.pallas_call(
        kernel, out_shape=jax.ShapeDtypeStruct((Bb * L, 4 * F), jnp.float32),
    )(patches, w_fused, shift)
    return out.reshape(Bb, L, 4 * F)


def fused_name_encoders(col_inp, col_name_len, enc_params):
    """cond_col / cond_op / cond_str bidirectional name-encoder LSTMs, one kernel.

    col_inp: (N_names, T, W).  Returns (e_col, e_op, e_str), each (N_names, F).
    NOTE: for a packed bidirectional LSTM read at position len-1, the backward direction
    equals a single backward cell step on x[len-1] from a zero state.
    """
    order = ("col", "op", "str")
    N, Tn, W = col_inp.shape
    H = FILTER_NUM // 2
    HF = 3 * H

    def pack(direction):
        # Per-gate packed, block-diagonal fused weights so one cell step drives all
        # three encoders (24-wide hidden instead of 3x 8-wide, no value lane-slicing).
        wi = jnp.stack([jnp.concatenate(
            [enc_params[e][direction]["wi"][:, g * H:(g + 1) * H] for e in order],
            axis=1) for g in range(4)])                                   # (4, W, HF)
        b = jnp.stack([jnp.concatenate(
            [enc_params[e][direction]["b"][:, g * H:(g + 1) * H] for e in order],
            axis=1) for g in range(4)])                                   # (4, 1, HF)
        whs = []
        for g in range(4):
            blk = jnp.zeros((HF, HF), jnp.float32)
            for ei, e in enumerate(order):
                blk = blk.at[ei * H:(ei + 1) * H, ei * H:(ei + 1) * H].set(
                    enc_params[e][direction]["wh"][:, g * H:(g + 1) * H])
            whs.append(blk)
        return wi, jnp.stack(whs), b                                      # wh: (4, HF, HF)

    wi_f, wh_f, b_f = pack("fwd")
    wi_b, _, b_b = pack("bwd")

    name_len = np.asarray(col_name_len, np.int32)
    xs = jnp.transpose(col_inp, (1, 0, 2))                                # (T, N, W)
    mask = jnp.asarray(
        (np.arange(Tn)[:, None] < name_len[None, :]).astype(np.float32)[:, :, None])
    x_last = col_inp[np.arange(N), name_len - 1]                          # (N, W)

    def kernel(xs_ref, m_ref, xl_ref, wif_ref, whf_ref, bf_ref, wib_ref, bb_ref, o_ref):
        def cell(x_in, h_in, c_in, wi_r, wh_r, b_r):
            def gate(g):
                return (jnp.dot(x_in, wi_r[g], preferred_element_type=jnp.float32)
                        + jnp.dot(h_in, wh_r[g], preferred_element_type=jnp.float32)
                        + b_r[g])
            i = _sigmoid(gate(0))
            f = _sigmoid(gate(1))
            g_ = jnp.tanh(gate(2))
            o = _sigmoid(gate(3))
            c_new = f * c_in + i * g_
            return o * jnp.tanh(c_new), c_new

        h = jnp.zeros((N, HF), jnp.float32)
        c = jnp.zeros((N, HF), jnp.float32)
        for t in range(Tn):                 # static unroll: recurrence stays in-kernel
            h_new, c_new = cell(xs_ref[t], h, c, wif_ref, whf_ref, bf_ref)
            m = m_ref[t]                    # (N, 1) validity mask -> packed-LSTM semantics
            h = m * h_new + (1.0 - m) * h
            c = m * c_new + (1.0 - m) * c
        o_ref[0] = h

        # Backward direction: one step from a zero state on x[len-1].  The recurrent
        # weights are irrelevant here (h_in = 0), so the fwd wh ref is reused.
        zeros = jnp.zeros((N, HF), jnp.float32)
        h_bwd, _ = cell(xl_ref[...], zeros, zeros, wib_ref, whf_ref, bb_ref)
        o_ref[1] = h_bwd

    out = pl.pallas_call(
        kernel, out_shape=jax.ShapeDtypeStruct((2, N, HF), jnp.float32),
    )(xs, mask, x_last, wi_f, wh_f, b_f, wi_b, b_b)

    encs = []
    for ei in range(3):
        encs.append(jnp.concatenate(
            [out[0, :, ei * H:(ei + 1) * H], out[1, :, ei * H:(ei + 1) * H]], axis=-1))
    return encs[0], encs[1], encs[2]


def cond_num_head(h_num, p, x_mask_row):
    """Masked attention + pooling + Linear/Tanh/Linear -> (B, 5), one kernel."""
    Bb, L, F = h_num.shape
    watt = jnp.broadcast_to(p["cond_num_att"]["w"].reshape(1, 1, F), (Bb, 1, F))
    b_att = p["cond_num_att"]["b"].reshape(1)
    W0 = jnp.broadcast_to(p["cond_num_out0"]["w"].T[None], (Bb, F, F))
    b0 = p["cond_num_out0"]["b"].reshape(1, 1, F)
    W1 = jnp.broadcast_to(p["cond_num_out1"]["w"].T[None], (Bb, F, 5))
    b1 = p["cond_num_out1"]["b"].reshape(1, 1, 5)

    def kernel(ba_ref, h_ref, m_ref, wa_ref, w0_ref, b0_ref, w1_ref, b1_ref, o_ref):
        h = h_ref[...]
        att = jnp.einsum("bqf,blf->bql", wa_ref[...], h,
                         preferred_element_type=jnp.float32) + ba_ref[0]
        att = jnp.where(m_ref[...] > 0.5, att, -100.0)
        pnorm = _softmax_lastdim(att)
        pooled = jnp.einsum("bql,blf->bqf", pnorm, h,
                            preferred_element_type=jnp.float32)
        t = jnp.tanh(jnp.einsum("bqf,bfg->bqg", pooled, w0_ref[...],
                                preferred_element_type=jnp.float32) + b0_ref[...])
        o_ref[...] = jnp.einsum("bqf,bfg->bqg", t, w1_ref[...],
                                preferred_element_type=jnp.float32) + b1_ref[...]

    out = pl.pallas_call(
        kernel, out_shape=jax.ShapeDtypeStruct((Bb, 1, 5), jnp.float32),
        in_specs=[pl.BlockSpec(memory_space=SMEM)]
                 + [pl.BlockSpec(memory_space=VMEM)] * 7,
        out_specs=pl.BlockSpec(memory_space=VMEM),
    )(b_att, h_num, x_mask_row, watt, W0, b0, W1, b1)
    return out[:, 0, :]


def cond_col_head(e_col, h_col, p, x_mask_col, col_mask):
    """Column scores: bmm attention + masked softmax pooling + ReLU MLP -> (B, C)."""
    Bb, C, F = e_col.shape

    def bc(w):
        return jnp.broadcast_to(w.T[None], (Bb,) + w.T.shape)

    Wk, bk = bc(p["cond_col_out_K"]["w"]), p["cond_col_out_K"]["b"].reshape(1, 1, F)
    Wc, bcb = bc(p["cond_col_out_col"]["w"]), p["cond_col_out_col"]["b"].reshape(1, 1, F)
    Wo = bc(p["cond_col_out"]["w"])                                       # (B, F, 1)
    bo = p["cond_col_out"]["b"].reshape(1)

    def kernel(bo_ref, e_ref, h_ref, xm_ref, cm_ref, wk_ref, bk_ref, wc_ref, bc_ref,
               wo_ref, o_ref):
        e = e_ref[...]
        h = h_ref[...]
        s = jnp.einsum("bcf,blf->bcl", e, h, preferred_element_type=jnp.float32)
        s = jnp.where(xm_ref[...] > 0.5, s, -100.0)
        att = _softmax_lastdim(s)
        pooled = jnp.einsum("bcl,blf->bcf", att, h, preferred_element_type=jnp.float32)
        mixed = (jnp.einsum("bcf,bfg->bcg", pooled, wk_ref[...],
                            preferred_element_type=jnp.float32) + bk_ref[...]
                 + jnp.einsum("bcf,bfg->bcg", e, wc_ref[...],
                              preferred_element_type=jnp.float32) + bc_ref[...])
        mixed = jnp.maximum(mixed, 0.0)
        score = jnp.einsum("bcf,bfk->bck", mixed, wo_ref[...],
                           preferred_element_type=jnp.float32) + bo_ref[0]
        o_ref[...] = jnp.where(cm_ref[...] > 0.5, score, -100.0)

    out = pl.pallas_call(
        kernel, out_shape=jax.ShapeDtypeStruct((Bb, C, 1), jnp.float32),
        in_specs=[pl.BlockSpec(memory_space=SMEM)]
                 + [pl.BlockSpec(memory_space=VMEM)] * 9,
        out_specs=pl.BlockSpec(memory_space=VMEM),
    )(bo, e_col, h_col, x_mask_col, col_mask, Wk, bk, Wc, bcb, Wo)
    return out[:, :, 0]


def cond_op_head(h_op, col_emb, p, x_mask_op):
    """Column-attention op head: proj, attention, pooling, MLP -> (B, 4, 3), one kernel."""
    Bb, L, F = h_op.shape

    def bc(w):
        return jnp.broadcast_to(w.T[None], (Bb,) + w.T.shape)

    Wa, ba = bc(p["cond_op_att"]["w"]), p["cond_op_att"]["b"].reshape(1, 1, F)
    Wk, bk = bc(p["cond_op_out_K"]["w"]), p["cond_op_out_K"]["b"].reshape(1, 1, F)
    Wc, bcb = bc(p["cond_op_out_col"]["w"]), p["cond_op_out_col"]["b"].reshape(1, 1, F)
    W0, b0 = bc(p["cond_op_out0"]["w"]), p["cond_op_out0"]["b"].reshape(1, 1, F)
    W1, b1 = bc(p["cond_op_out1"]["w"]), p["cond_op_out1"]["b"].reshape(1, 1, 3)

    def kernel(h_ref, ce_ref, m_ref, wa_ref, ba_ref, wk_ref, bk_ref, wc_ref, bc_ref,
               w0_ref, b0_ref, w1_ref, b1_ref, o_ref):
        h = h_ref[...]
        ce = ce_ref[...]
        proj = jnp.einsum("blf,bfg->blg", h, wa_ref[...],
                          preferred_element_type=jnp.float32) + ba_ref[...]
        s = jnp.einsum("bif,blf->bil", ce, proj, preferred_element_type=jnp.float32)
        s = jnp.where(m_ref[...] > 0.5, s, -100.0)
        att = _softmax_lastdim(s)
        pooled = jnp.einsum("bil,blf->bif", att, h, preferred_element_type=jnp.float32)
        mix = (jnp.einsum("bif,bfg->big", pooled, wk_ref[...],
                          preferred_element_type=jnp.float32) + bk_ref[...]
               + jnp.einsum("bif,bfg->big", ce, wc_ref[...],
                            preferred_element_type=jnp.float32) + bc_ref[...])
        t = jnp.tanh(jnp.einsum("bif,bfg->big", mix, w0_ref[...],
                                preferred_element_type=jnp.float32) + b0_ref[...])
        o_ref[...] = jnp.einsum("bif,bfg->big", t, w1_ref[...],
                                preferred_element_type=jnp.float32) + b1_ref[...]

    return pl.pallas_call(
        kernel, out_shape=jax.ShapeDtypeStruct((Bb, 4, 3), jnp.float32),
    )(h_op, col_emb, x_mask_op, Wa, ba, Wk, bk, Wc, bcb, W0, b0, W1, b1)


def cond_str_head(h_str, col_emb_flat, gt_tok, p, str_valid):
    """Value decoder LSTM + broadcast ReLU MLP -> cond_str_score (B, 4, T, L), one kernel."""
    Bb, L, F = h_str.shape
    N4 = Bb * 4
    T = gt_tok.shape[2]
    V = gt_tok.shape[3]

    gtx = jnp.transpose(gt_tok.reshape(N4, T, V), (1, 0, 2))              # (T, N4, V)
    hrep = jnp.repeat(h_str, 4, axis=0)                                   # (N4, L, F)

    dec = p["cond_str_decoder"]["fwd"]
    wiD = jnp.stack([dec["wi"][:, g * F:(g + 1) * F] for g in range(4)])  # (4, V, F)
    whD = jnp.stack([dec["wh"][:, g * F:(g + 1) * F] for g in range(4)])  # (4, F, F)
    bD = jnp.stack([dec["b"][:, g * F:(g + 1) * F] for g in range(4)])    # (4, 1, F)

    Wg, bg = p["cond_str_out_g"]["w"].T, p["cond_str_out_g"]["b"].reshape(1, F)
    Wc, bcb = p["cond_str_out_col"]["w"].T, p["cond_str_out_col"]["b"].reshape(1, F)
    Whh = jnp.broadcast_to(p["cond_str_out_h"]["w"].T[None], (N4, F, F))
    bh = p["cond_str_out_h"]["b"].reshape(1, 1, F)
    Wo = jnp.broadcast_to(p["cond_str_out"]["w"].T[None], (N4, F, 1))
    bo = p["cond_str_out"]["b"].reshape(1)

    def kernel(bo_ref, gtx_ref, hrep_ref, ce_ref, val_ref,
               wiD_ref, whD_ref, bD_ref, wg_ref, bg_ref, whh_ref, bh_ref,
               wc_ref, bc_ref, wo_ref, o_ref):
        hproj = jnp.einsum("nlf,nfg->nlg", hrep_ref[...], whh_ref[...],
                           preferred_element_type=jnp.float32) + bh_ref[...]
        cproj = jnp.dot(ce_ref[...], wc_ref[...],
                        preferred_element_type=jnp.float32) + bc_ref[...]
        h = jnp.zeros((N4, F), jnp.float32)
        c = jnp.zeros((N4, F), jnp.float32)
        for t in range(T):                  # decoder recurrence stays in-kernel
            xt = gtx_ref[t]

            def gate(g):
                return (jnp.dot(xt, wiD_ref[g], preferred_element_type=jnp.float32)
                        + jnp.dot(h, whD_ref[g], preferred_element_type=jnp.float32)
                        + bD_ref[g])

            i = _sigmoid(gate(0))
            f = _sigmoid(gate(1))
            g_ = jnp.tanh(gate(2))
            o = _sigmoid(gate(3))
            c = f * c + i * g_
            h = o * jnp.tanh(c)
            gproj = jnp.dot(h, wg_ref[...],
                            preferred_element_type=jnp.float32) + bg_ref[...]
            gc = gproj + cproj                                            # (N4, F)
            s = jnp.maximum(gc[:, None, :] + hproj, 0.0)                  # (N4, L, F)
            val = jnp.einsum("nlf,nfk->nlk", s, wo_ref[...],
                             preferred_element_type=jnp.float32) + bo_ref[0]
            o_ref[t] = jnp.where(val_ref[...] > 0.5, val, -100.0)

    out = pl.pallas_call(
        kernel, out_shape=jax.ShapeDtypeStruct((T, N4, L, 1), jnp.float32),
        in_specs=[pl.BlockSpec(memory_space=SMEM)]
                 + [pl.BlockSpec(memory_space=VMEM)] * 14,
        out_specs=pl.BlockSpec(memory_space=VMEM),
    )(bo, gtx, hrep, col_emb_flat, str_valid, wiD, whD, bD, Wg, bg, Whh, bh, Wc, bcb, Wo)

    return jnp.transpose(out[:, :, :, 0], (1, 0, 2)).reshape(Bb, 4, T, L)


# ----------------------------- parameter init --------------------------------
def init_params(key):
    keys = iter(jax.random.split(key, 64))

    def nrm(shape, scale=0.1):
        return scale * jax.random.normal(next(keys), shape, dtype=jnp.float32)

    def lin(out_d, in_d):
        return {"w": nrm((out_d, in_d)), "b": nrm((out_d,))}

    def conv(K):
        return {"w": nrm((FILTER_NUM, K, N_WORD)), "b": nrm((FILTER_NUM,)),
                "gamma": jnp.ones((FILTER_NUM,), jnp.float32),
                "beta": jnp.zeros((FILTER_NUM,), jnp.float32),
                "mean": jnp.zeros((FILTER_NUM,), jnp.float32),
                "var": jnp.ones((FILTER_NUM,), jnp.float32)}

    def lstm_dir(in_d, hidden):
        return {"wi": nrm((in_d, 4 * hidden)), "wh": nrm((hidden, 4 * hidden)),
                "b": nrm((1, 4 * hidden))}   # b = b_ih + b_hh (combined)

    def bilstm(in_d, hidden):
        return {"fwd": lstm_dir(in_d, hidden), "bwd": lstm_dir(in_d, hidden)}

    H = FILTER_NUM // 2
    return {
        # cond_num  (cond_num_name_enc / cond_num_col_att are dead for the returned
        #            scores when use_num_cnn=True, so they are not materialized)
        "cond_num_conv": conv(5),
        "cond_num_att": lin(1, FILTER_NUM),
        "cond_num_out0": lin(FILTER_NUM, FILTER_NUM),
        "cond_num_out1": lin(5, FILTER_NUM),
        # cond_col
        "cond_col_name_enc": bilstm(N_WORD, H),
        "cond_col_conv": conv(7),
        "cond_col_out_K": lin(FILTER_NUM, FILTER_NUM),
        "cond_col_out_col": lin(FILTER_NUM, FILTER_NUM),
        "cond_col_out": lin(1, FILTER_NUM),
        # cond_op
        "cond_op_name_enc": bilstm(N_WORD, H),
        "cond_op_conv": conv(5),
        "cond_op_att": lin(FILTER_NUM, FILTER_NUM),
        "cond_op_out_K": lin(FILTER_NUM, FILTER_NUM),
        "cond_op_out_col": lin(FILTER_NUM, FILTER_NUM),
        "cond_op_out0": lin(FILTER_NUM, FILTER_NUM),
        "cond_op_out1": lin(3, FILTER_NUM),
        # cond_str
        "cond_str_name_enc": bilstm(N_WORD, H),
        "cond_str_conv": conv(5),
        "cond_str_decoder": {"fwd": lstm_dir(MAX_TOK_NUM, FILTER_NUM)},
        "cond_str_out_g": lin(FILTER_NUM, FILTER_NUM),
        "cond_str_out_h": lin(FILTER_NUM, FILTER_NUM),
        "cond_str_out_col": lin(FILTER_NUM, FILTER_NUM),
        "cond_str_out": lin(1, FILTER_NUM),
    }


# ----------------------------- host-side glue ---------------------------------
# TODO(synk): gen_gt_batch and the chosen-column / column-length bookkeeping are
# host-side Python/numpy list processing (exactly as in the reference forward); they
# only feed static indices and masks into the Pallas kernels.
def gen_gt_batch(split_tok_seq, max_tok_num):
    """Faithful numpy port of CondPredictor.gen_gt_batch."""
    Bb = len(split_tok_seq)
    max_len = max([max([len(tok) for tok in tok_seq] + [0])
                   for tok_seq in split_tok_seq]) - 1
    if max_len < 1:
        max_len = 1
    ret_array = np.zeros((Bb, 4, max_len, max_tok_num), dtype=np.float32)
    ret_len = np.zeros((Bb, 4))
    for b, tok_seq in enumerate(split_tok_seq):
        idx = 0
        for idx, one_tok_seq in enumerate(tok_seq):
            out_one = one_tok_seq[:-1]
            ret_len[b, idx] = len(out_one)
            for t, tok_id in enumerate(out_one):
                ret_array[b, idx, t, tok_id] = 1
        if idx < 3:
            ret_array[b, idx + 1:, 0, 1] = 1
            ret_len[b, idx + 1:] = 1
    return ret_array, ret_len


def make_forward(x_len, col_name_len, col_len, col_num, gt_cond):
    """Build a jitted forward closure over the (host-side, static) batch metadata."""
    Bb = len(x_len)
    L = int(max(x_len))
    C = int(max(col_len))
    Nn = int(sum(col_len))
    F = FILTER_NUM

    x_valid = (np.arange(L)[None, :] < np.asarray(x_len)[:, None]).astype(np.float32)
    xmask_row = jnp.asarray(x_valid[:, None, :])                          # (B,1,L)
    xmask_col = jnp.asarray(np.repeat(x_valid[:, None, :], C, axis=1))    # (B,C,L)
    xmask_op = jnp.asarray(np.repeat(x_valid[:, None, :], 4, axis=1))     # (B,4,L)
    colmask = jnp.asarray(
        (np.arange(C)[None, :] < np.asarray(col_num)[:, None])
        .astype(np.float32)[:, :, None])                                  # (B,C,1)
    str_valid_np = np.zeros((Bb * 4, L, 1), np.float32)
    for n in range(Bb * 4):
        str_valid_np[n, :x_len[n // 4], 0] = 1.0
    str_valid = jnp.asarray(str_valid_np)

    offsets = np.concatenate([[0], np.cumsum(col_len)[:-1]]).astype(np.int32)
    gather_idx = np.full((Bb, C), Nn, np.int32)       # Nn -> appended zero row
    for b in range(Bb):
        gather_idx[b, :col_len[b]] = offsets[b] + np.arange(col_len[b])
    chosen = [[cond[0] for cond in one] for one in gt_cond]
    sel = np.zeros((Bb, 4), np.int32)
    for b in range(Bb):
        for j in range(4):
            sel[b, j] = offsets[b] + (chosen[b][j] if j < len(chosen[b]) else 0)

    @jax.jit
    def fwd(params, x_emb, col_inp, gt_tok_seq):
        conv = fused_conv_bn_rrelu(
            x_emb, {"num": params["cond_num_conv"], "col": params["cond_col_conv"],
                    "op": params["cond_op_conv"], "str": params["cond_str_conv"]})
        h_num, h_col = conv[:, :, 0:F], conv[:, :, F:2 * F]
        h_op, h_str = conv[:, :, 2 * F:3 * F], conv[:, :, 3 * F:4 * F]

        e_col_names, e_op_names, e_str_names = fused_name_encoders(
            col_inp, col_name_len,
            {"col": params["cond_col_name_enc"], "op": params["cond_op_name_enc"],
             "str": params["cond_str_name_enc"]})

        # ---------------- cond_num ----------------
        cond_num_score = cond_num_head(h_num, params, xmask_row)

        # ---------------- cond_col ----------------
        e_col_pad = jnp.concatenate(
            [e_col_names, jnp.zeros((1, F), jnp.float32)], axis=0)
        e_cond_col = e_col_pad[gather_idx]                                # (B,C,F)
        cond_col_score = cond_col_head(e_cond_col, h_col, params, xmask_col, colmask)

        # ---------------- cond_op ----------------
        col_emb_op = e_op_names[sel]                                      # (B,4,F)
        cond_op_score = cond_op_head(h_op, col_emb_op, params, xmask_op)

        # ---------------- cond_str ----------------
        col_emb_str = e_str_names[sel.reshape(-1)]                        # (B*4,F)
        cond_str_score = cond_str_head(h_str, col_emb_str, gt_tok_seq,
                                       params, str_valid)

        return cond_num_score, cond_col_score, cond_op_score, cond_str_score

    return fwd


# ----------------------------------- main -------------------------------------
if __name__ == "__main__":
    key = jax.random.PRNGKey(0)
    k_param, k_x, k_col = jax.random.split(key, 3)
    params = init_params(k_param)

    # question token embeddings, (B, max_x_len, N_word)
    x_emb = 0.5 * jax.random.normal(k_x, (B, MAX_X_LEN, N_WORD), dtype=jnp.float32)
    x_len = [8, 6]

    # column-name token embeddings: 7 column names total, up to 3 tokens each
    col_len = [4, 3]
    col_num = [4, 3]
    col_name_len = [3, 2, 3, 1, 2, 3, 2]
    total_names = sum(col_len)
    max_name_len = max(col_name_len)
    col_inp = 0.5 * jax.random.normal(k_col, (total_names, max_name_len, N_WORD),
                                      dtype=jnp.float32)

    # ground-truth conditions: (col_idx, op, value) per condition
    gt_cond = [[(1, 0, ["a"]), (2, 1, ["b"])], [(0, 0, ["c"])]]
    # ground-truth where-value token id sequences (ids < MAX_TOK_NUM)
    gt_where = [[[0, 3, 4, 1], [0, 5, 1]], [[0, 2, 1]]]
    gt_tok_seq, _ = gen_gt_batch(gt_where, MAX_TOK_NUM)

    fwd = make_forward(x_len, col_name_len, col_len, col_num, gt_cond)
    outs = fwd(params, x_emb, col_inp, jnp.asarray(gt_tok_seq))
    outs = jax.block_until_ready(outs)

    cond_num_score, cond_col_score, cond_op_score, cond_str_score = outs
    assert cond_num_score.shape == (B, 5)
    assert cond_col_score.shape == (B, max(col_num))
    assert cond_op_score.shape == (B, 4, 3)
    assert cond_str_score.shape[0:2] == (B, 4) and cond_str_score.shape[3] == MAX_X_LEN
    assert all(bool(jnp.all(jnp.isfinite(o))) for o in outs)
    print("KERNEL_OK")
</pallas_src>

<mosaic_0001>
module attributes {stable_mosaic.version = 11 : i64} {
  func.func @kernel(%arg0: memref<16x128xf32, #tpu.memory_space<vmem>>, %arg1: memref<128x64xf32, #tpu.memory_space<vmem>>, %arg2: memref<1x64xf32, #tpu.memory_space<vmem>>, %arg3: memref<16x64xf32, #tpu.memory_space<vmem>>) attributes {dimension_semantics = [], scalar_prefetch = 0 : i64, scratch_operands = 0 : i64, tpu.core_type = #tpu.core_type<tc>} {
    %c0 = arith.constant 0 : index
    %c0_0 = arith.constant 0 : index
    %0 = vector.load %arg0[%c0, %c0_0] : memref<16x128xf32, #tpu.memory_space<vmem>>, vector<16x128xf32>
    %c0_1 = arith.constant 0 : index
    %c0_2 = arith.constant 0 : index
    %1 = vector.load %arg1[%c0_1, %c0_2] : memref<128x64xf32, #tpu.memory_space<vmem>>, vector<128x64xf32>
    %cst = arith.constant dense<0.000000e+00> : vector<16x64xf32>
    %2 = tpu.matmul %0, %1, %cst {dimension_numbers = #tpu.dot_dimension_numbers<[1], [0], [0], [1], [0, 0, 1, 1], [], []>} : vector<16x128xf32>, vector<128x64xf32>, vector<16x64xf32> -> vector<16x64xf32>
    %c0_3 = arith.constant 0 : index
    %c0_4 = arith.constant 0 : index
    %3 = vector.load %arg2[%c0_3, %c0_4] : memref<1x64xf32, #tpu.memory_space<vmem>>, vector<1x64xf32>
    %4 = vector.broadcast %3 : vector<1x64xf32> to vector<16x64xf32>
    %5 = arith.addf %2, %4 : vector<16x64xf32>
    %cst_5 = arith.constant 0.000000e+00 : f32
    %6 = vector.broadcast %cst_5 : f32 to vector<16x64xf32>
    %7 = arith.cmpf oge, %5, %6 : vector<16x64xf32>
    %cst_6 = arith.constant 0.229166672 : f32
    %8 = vector.broadcast %cst_6 : f32 to vector<16x64xf32>
    %9 = arith.mulf %8, %5 : vector<16x64xf32>
    %10 = arith.select %7, %5, %9 : vector<16x64xi1>, vector<16x64xf32>
    %c0_7 = arith.constant 0 : index
    %c0_8 = arith.constant 0 : index
    %11 = vector.load %arg3[%c0_7, %c0_8] : memref<16x64xf32, #tpu.memory_space<vmem>>, vector<16x64xf32>
    tpu.vector_store %arg3[%c0_7, %c0_8], %10 {strides = array<i32>} : memref<16x64xf32, #tpu.memory_space<vmem>>, vector<16x64xf32>,
    return
  }
}

module attributes {stable_mosaic.version = 11 : i64} {
  func.func @kernel(%arg0: memref<1xf32, #tpu.memory_space<smem>>, %arg1: memref<2x8x16xf32, #tpu.memory_space<vmem>>, %arg2: memref<2x1x8xf32, #tpu.memory_space<vmem>>, %arg3: memref<2x1x16xf32, #tpu.memory_space<vmem>>, %arg4: memref<2x16x16xf32, #tpu.memory_space<vmem>>, %arg5: memref<1x1x16xf32, #tpu.memory_space<vmem>>, %arg6: memref<2x16x5xf32, #tpu.memory_space<vmem>>, %arg7: memref<1x1x5xf32, #tpu.memory_space<vmem>>, %arg8: memref<2x1x5xf32, #tpu.memory_space<vmem>>) attributes {dimension_semantics = [], scalar_prefetch = 0 : i64, scratch_operands = 0 : i64, tpu.core_type = #tpu.core_type<tc>} {
    %c0 = arith.constant 0 : index
    %c0_0 = arith.constant 0 : index
    %c0_1 = arith.constant 0 : index
    %0 = vector.load %arg1[%c0, %c0_0, %c0_1] : memref<2x8x16xf32, #tpu.memory_space<vmem>>, vector<2x8x16xf32>
    %c0_2 = arith.constant 0 : index
    %c0_3 = arith.constant 0 : index
    %c0_4 = arith.constant 0 : index
    %1 = vector.load %arg3[%c0_2, %c0_3, %c0_4] : memref<2x1x16xf32, #tpu.memory_space<vmem>>, vector<2x1x16xf32>
    "tpu.trace_start"() <{level = 10 : i32, message = "bqf,blf->bql"}> : () -> ()
    %cst = arith.constant dense<0.000000e+00> : vector<2x1x8xf32>
    %2 = tpu.matmul %1, %0, %cst {dimension_numbers = #tpu.dot_dimension_numbers<[2], [2], [1], [1], [0, 0, 0, 1, 1, 1], [0], [0]>} : vector<2x1x16xf32>, vector<2x8x16xf32>, vector<2x1x8xf32> -> vector<2x1x8xf32>
    "tpu.trace_stop"() : () -> ()
    %c0_5 = arith.constant 0 : index
    %3 = memref.load %arg0[%c0_5] : memref<1xf32, #tpu.memory_space<smem>>
    %4 = vector.broadcast %3 : f32 to vector<2x1x8xf32>
    %5 = arith.addf %2, %4 : vector<2x1x8xf32>
    %c0_6 = arith.constant 0 : index
    %c0_7 = arith.constant 0 : index
    %c0_8 = arith.constant 0 : index
    %6 = vector.load %arg2[%c0_6, %c0_7, %c0_8] : memref<2x1x8xf32, #tpu.memory_space<vmem>>, vector<2x1x8xf32>
    %cst_9 = arith.constant 5.000000e-01 : f32
    %7 = vector.broadcast %cst_9 : f32 to vector<2x1x8xf32>
    %8 = arith.cmpf ogt, %6, %7 : vector<2x1x8xf32>
    %cst_10 = arith.constant -1.000000e+02 : f32
    %9 = vector.broadcast %cst_10 : f32 to vector<2x1x8xf32>
    %10 = arith.select %8, %5, %9 : vector<2x1x8xi1>, vector<2x1x8xf32>
    %cst_11 = arith.constant dense<0xFF800000> : vector<2x1xf32>
    %11 = vector.multi_reduction <maximumf>, %10, %cst_11 [2] : vector<2x1x8xf32> to vector<2x1xf32>
    %12 = vector.shape_cast %11 : vector<2x1xf32> to vector<2x1x1xf32>
    %13 = vector.broadcast %12 : vector<2x1x1xf32> to vector<2x1x8xf32>
    %14 = arith.subf %10, %13 : vector<2x1x8xf32>
    %15 = math.exp %14 : vector<2x1x8xf32>
    %cst_12 = arith.constant dense<0.000000e+00> : vector<2x1xf32>
    %16 = vector.multi_reduction <add>, %15, %cst_12 [2] : vector<2x1x8xf32> to vector<2x1xf32>
    %17 = vector.shape_cast %16 : vector<2x1xf32> to vector<2x1x1xf32>
    %18 = tpu.reciprocal %17 {approx = true} : vector<2x1x1xf32> -> vector<2x1x1xf32>
    %19 = vector.broadcast %18 : vector<2x1x1xf32> to vector<2x1x8xf32>
    %20 = arith.mulf %15, %19 : vector<2x1x8xf32>
    "tpu.trace_start"() <{level = 10 : i32, message = "bql,blf->bqf"}> : () -> ()
    %cst_13 = arith.constant dense<0.000000e+00> : vector<2x1x16xf32>
    %21 = tpu.matmul %20, %0, %cst_13 {dimension_numbers = #tpu.dot_dimension_numbers<[2], [1], [1], [2], [0, 0, 0, 1, 1, 2], [0], [0]>} : vector<2x1x8xf32>, vector<2x8x16xf32>, vector<2x1x16xf32> -> vector<2x1x16xf32>
    "tpu.trace_stop"() : () -> ()
    %c0_14 = arith.constant 0 : index
    %c0_15 = arith.constant 0 : index
    %c0_16 = arith.constant 0 : index
    %22 = vector.load %arg4[%c0_14, %c0_15, %c0_16] : memref<2x16x16xf32, #tpu.memory_space<vmem>>, vector<2x16x16xf32>
    "tpu.trace_start"() <{level = 10 : i32, message = "bqf,bfg->bqg"}> : () -> ()
    %cst_17 = arith.constant dense<0.000000e+00> : vector<2x1x16xf32>
    %23 = tpu.matmul %21, %22, %cst_17 {dimension_numbers = #tpu.dot_dimension_numbers<[2], [1], [1], [2], [0, 0, 0, 1, 1, 2], [0], [0]>} : vector<2x1x16xf32>, vector<2x16x16xf32>, vector<2x1x16xf32> -> vector<2x1x16xf32>
    "tpu.trace_stop"() : () -> ()
    %c0_18 = arith.constant 0 : index
    %c0_19 = arith.constant 0 : index
    %c0_20 = arith.constant 0 : index
    %24 = vector.load %arg5[%c0_18, %c0_19, %c0_20] : memref<1x1x16xf32, #tpu.memory_space<vmem>>, vector<1x1x16xf32>
    %25 = vector.broadcast %24 : vector<1x1x16xf32> to vector<2x1x16xf32>
    %26 = arith.addf %23, %25 : vector<2x1x16xf32>
    %27 = math.tanh %26 : vector<2x1x16xf32>
    %c0_21 = arith.constant 0 : index
    %c0_22 = arith.constant 0 : index
    %c0_23 = arith.constant 0 : index
    %28 = vector.load %arg6[%c0_21, %c0_22, %c0_23] : memref<2x16x5xf32, #tpu.memory_space<vmem>>, vector<2x16x5xf32>
    "tpu.trace_start"() <{level = 10 : i32, message = "bqf,bfg->bqg"}> : () -> ()
    %cst_24 = arith.constant dense<0.000000e+00> : vector<2x1x5xf32>
    %29 = tpu.matmul %27, %28, %cst_24 {dimension_numbers = #tpu.dot_dimension_numbers<[2], [1], [1], [2], [0, 0, 0, 1, 1, 2], [0], [0]>} : vector<2x1x16xf32>, vector<2x16x5xf32>, vector<2x1x5xf32> -> vector<2x1x5xf32>
    "tpu.trace_stop"() : () -> ()
    %c0_25 = arith.constant 0 : index
    %c0_26 = arith.constant 0 : index
    %c0_27 = arith.constant 0 : index
    %30 = vector.load %arg7[%c0_25, %c0_26, %c0_27] : memref<1x1x5xf32, #tpu.memory_space<vmem>>, vector<1x1x5xf32>
    %31 = vector.broadcast %30 : vector<1x1x5xf32> to vector<2x1x5xf32>
    %32 = arith.addf %29, %31 : vector<2x1x5xf32>
    %c0_28 = arith.constant 0 : index
    %c0_29 = arith.constant 0 : index
    %c0_30 = arith.constant 0 : index
    %33 = vector.load %arg8[%c0_28, %c0_29, %c0_30] : memref<2x1x5xf32, #tpu.memory_space<vmem>>, vector<2x1x5xf32>
    tpu.vector_store %arg8[%c0_28, %c0_29, %c0_30], %32 {strides = array<i32>} : memref<2x1x5xf32, #tpu.memory_space<vmem>>, vector<2x1x5xf32>,
    return
  }
}

module attributes {stable_mosaic.version = 11 : i64} {
  func.func @kernel(%arg0: memref<1xf32, #tpu.memory_space<smem>>, %arg1: memref<2x4x16xf32, #tpu.memory_space<vmem>>, %arg2: memref<2x8x16xf32, #tpu.memory_space<vmem>>, %arg3: memref<2x4x8xf32, #tpu.memory_space<vmem>>, %arg4: memref<2x4x1xf32, #tpu.memory_space<vmem>>, %arg5: memref<2x16x16xf32, #tpu.memory_space<vmem>>, %arg6: memref<1x1x16xf32, #tpu.memory_space<vmem>>, %arg7: memref<2x16x16xf32, #tpu.memory_space<vmem>>, %arg8: memref<1x1x16xf32, #tpu.memory_space<vmem>>, %arg9: memref<2x16x1xf32, #tpu.memory_space<vmem>>, %arg10: memref<2x4x1xf32, #tpu.memory_space<vmem>>) attributes {dimension_semantics = [], scalar_prefetch = 0 : i64, scratch_operands = 0 : i64, tpu.core_type = #tpu.core_type<tc>} {
    %c0 = arith.constant 0 : index
    %c0_0 = arith.constant 0 : index
    %c0_1 = arith.constant 0 : index
    %0 = vector.load %arg1[%c0, %c0_0, %c0_1] : memref<2x4x16xf32, #tpu.memory_space<vmem>>, vector<2x4x16xf32>
    %c0_2 = arith.constant 0 : index
    %c0_3 = arith.constant 0 : index
    %c0_4 = arith.constant 0 : index
    %1 = vector.load %arg2[%c0_2, %c0_3, %c0_4] : memref<2x8x16xf32, #tpu.memory_space<vmem>>, vector<2x8x16xf32>
    "tpu.trace_start"() <{level = 10 : i32, message = "bcf,blf->bcl"}> : () -> ()
    %cst = arith.constant dense<0.000000e+00> : vector<2x4x8xf32>
    %2 = tpu.matmul %0, %1, %cst {dimension_numbers = #tpu.dot_dimension_numbers<[2], [2], [1], [1], [0, 0, 0, 1, 1, 1], [0], [0]>} : vector<2x4x16xf32>, vector<2x8x16xf32>, vector<2x4x8xf32> -> vector<2x4x8xf32>
    "tpu.trace_stop"() : () -> ()
    %c0_5 = arith.constant 0 : index
    %c0_6 = arith.constant 0 : index
    %c0_7 = arith.constant 0 : index
    %3 = vector.load %arg3[%c0_5, %c0_6, %c0_7] : memref<2x4x8xf32, #tpu.memory_space<vmem>>, vector<2x4x8xf32>
    %cst_8 = arith.constant 5.000000e-01 : f32
    %4 = vector.broadcast %cst_8 : f32 to vector<2x4x8xf32>
    %5 = arith.cmpf ogt, %3, %4 : vector<2x4x8xf32>
    %cst_9 = arith.constant -1.000000e+02 : f32
    %6 = vector.broadcast %cst_9 : f32 to vector<2x4x8xf32>
    %7 = arith.select %5, %2, %6 : vector<2x4x8xi1>, vector<2x4x8xf32>
    %cst_10 = arith.constant dense<0xFF800000> : vector<2x4xf32>
    %8 = vector.multi_reduction <maximumf>, %7, %cst_10 [2] : vector<2x4x8xf32> to vector<2x4xf32>
    %9 = vector.shape_cast %8 : vector<2x4xf32> to vector<2x4x1xf32>
    %10 = vector.broadcast %9 : vector<2x4x1xf32> to vector<2x4x8xf32>
    %11 = arith.subf %7, %10 : vector<2x4x8xf32>
    %12 = math.exp %11 : vector<2x4x8xf32>
    %cst_11 = arith.constant dense<0.000000e+00> : vector<2x4xf32>
    %13 = vector.multi_reduction <add>, %12, %cst_11 [2] : vector<2x4x8xf32> to vector<2x4xf32>
    %14 = vector.shape_cast %13 : vector<2x4xf32> to vector<2x4x1xf32>
    %15 = tpu.reciprocal %14 {approx = true} : vector<2x4x1xf32> -> vector<2x4x1xf32>
    %16 = vector.broadcast %15 : vector<2x4x1xf32> to vector<2x4x8xf32>
    %17 = arith.mulf %12, %16 : vector<2x4x8xf32>
    "tpu.trace_start"() <{level = 10 : i32, message = "bcl,blf->bcf"}> : () -> ()
    %cst_12 = arith.constant dense<0.000000e+00> : vector<2x4x16xf32>
    %18 = tpu.matmul %17, %1, %cst_12 {dimension_numbers = #tpu.dot_dimension_numbers<[2], [1], [1], [2], [0, 0, 0, 1, 1, 2], [0], [0]>} : vector<2x4x8xf32>, vector<2x8x16xf32>, vector<2x4x16xf32> -> vector<2x4x16xf32>
    "tpu.trace_stop"() : () -> ()
    %c0_13 = arith.constant 0 : index
    %c0_14 = arith.constant 0 : index
    %c0_15 = arith.constant 0 : index
    %19 = vector.load %arg5[%c0_13, %c0_14, %c0_15] : memref<2x16x16xf32, #tpu.memory_space<vmem>>, vector<2x16x16xf32>
    "tpu.trace_start"() <{level = 10 : i32, message = "bcf,bfg->bcg"}> : () -> ()
    %cst_16 = arith.constant dense<0.000000e+00> : vector<2x4x16xf32>
    %20 = tpu.matmul %18, %19, %cst_16 {dimension_numbers = #tpu.dot_dimension_numbers<[2], [1], [1], [2], [0, 0, 0, 1, 1, 2], [0], [0]>} : vector<2x4x16xf32>, vector<2x16x16xf32>, vector<2x4x16xf32> -> vector<2x4x16xf32>
    "tpu.trace_stop"() : () -> ()
    %c0_17 = arith.constant 0 : index
    %c0_18 = arith.constant 0 : index
    %c0_19 = arith.constant 0 : index
    %21 = vector.load %arg6[%c0_17, %c0_18, %c0_19] : memref<1x1x16xf32, #tpu.memory_space<vmem>>, vector<1x1x16xf32>
    %22 = vector.broadcast %21 : vector<1x1x16xf32> to vector<2x4x16xf32>
    %23 = arith.addf %20, %22 : vector<2x4x16xf32>
    %c0_20 = arith.constant 0 : index
    %c0_21 = arith.constant 0 : index
    %c0_22 = arith.constant 0 : index
    %24 = vector.load %arg7[%c0_20, %c0_21, %c0_22] : memref<2x16x16xf32, #tpu.memory_space<vmem>>, vector<2x16x16xf32>
    "tpu.trace_start"() <{level = 10 : i32, message = "bcf,bfg->bcg"}> : () -> ()
    %cst_23 = arith.constant dense<0.000000e+00> : vector<2x4x16xf32>
    %25 = tpu.matmul %0, %24, %cst_23 {dimension_numbers = #tpu.dot_dimension_numbers<[2], [1], [1], [2], [0, 0, 0, 1, 1, 2], [0], [0]>} : vector<2x4x16xf32>, vector<2x16x16xf32>, vector<2x4x16xf32> -> vector<2x4x16xf32>
    "tpu.trace_stop"() : () -> ()
    %26 = arith.addf %23, %25 : vector<2x4x16xf32>
    %c0_24 = arith.constant 0 : index
    %c0_25 = arith.constant 0 : index
    %c0_26 = arith.constant 0 : index
    %27 = vector.load %arg8[%c0_24, %c0_25, %c0_26] : memref<1x1x16xf32, #tpu.memory_space<vmem>>, vector<1x1x16xf32>
    %28 = vector.broadcast %27 : vector<1x1x16xf32> to vector<2x4x16xf32>
    %29 = arith.addf %26, %28 : vector<2x4x16xf32>
    %cst_27 = arith.constant 0.000000e+00 : f32
    %30 = vector.broadcast %cst_27 : f32 to vector<2x4x16xf32>
    %31 = arith.maximumf %29, %30 : vector<2x4x16xf32>
    %c0_28 = arith.constant 0 : index
    %c0_29 = arith.constant 0 : index
    %c0_30 = arith.constant 0 : index
    %32 = vector.load %arg9[%c0_28, %c0_29, %c0_30] : memref<2x16x1xf32, #tpu.memory_space<vmem>>, vector<2x16x1xf32>
    "tpu.trace_start"() <{level = 10 : i32, message = "bcf,bfk->bck"}> : () -> ()
    %cst_31 = arith.constant dense<0.000000e+00> : vector<2x4x1xf32>
    %33 = tpu.matmul %31, %32, %cst_31 {dimension_numbers = #tpu.dot_dimension_numbers<[2], [1], [1], [2], [0, 0, 0, 1, 1, 2], [0], [0]>} : vector<2x4x16xf32>, vector<2x16x1xf32>, vector<2x4x1xf32> -> vector<2x4x1xf32>
    "tpu.trace_stop"() : () -> ()
    %c0_32 = arith.constant 0 : index
    %34 = memref.load %arg0[%c0_32] : memref<1xf32, #tpu.memory_space<smem>>
    %35 = vector.broadcast %34 : f32 to vector<2x4x1xf32>
    %36 = arith.addf %33, %35 : vector<2x4x1xf32>
    %c0_33 = arith.constant 0 : index
    %c0_34 = arith.constant 0 : index
    %c0_35 = arith.constant 0 : index
    %37 = vector.load %arg4[%c0_33, %c0_34, %c0_35] : memref<2x4x1xf32, #tpu.memory_space<vmem>>, vector<2x4x1xf32>
    %cst_36 = arith.constant 5.000000e-01 : f32
    %38 = vector.broadcast %cst_36 : f32 to vector<2x4x1xf32>
    %39 = arith.cmpf ogt, %37, %38 : vector<2x4x1xf32>
    %cst_37 = arith.constant -1.000000e+02 : f32
    %40 = vector.broadcast %cst_37 : f32 to vector<2x4x1xf32>
    %41 = arith.select %39, %36, %40 : vector<2x4x1xi1>, vector<2x4x1xf32>
    %c0_38 = arith.constant 0 : index
    %c0_39 = arith.constant 0 : index
    %c0_40 = arith.constant 0 : index
    %42 = vector.load %arg10[%c0_38, %c0_39, %c0_40] : memref<2x4x1xf32, #tpu.memory_space<vmem>>, vector<2x4x1xf32>
    tpu.vector_store %arg10[%c0_38, %c0_39, %c0_40], %41 {strides = array<i32>} : memref<2x4x1xf32, #tpu.memory_space<vmem>>, vector<2x4x1xf32>,
    return
  }
}

module attributes {stable_mosaic.version = 11 : i64} {
  func.func @kernel(%arg0: memref<3x7x16xf32, #tpu.memory_space<vmem>>, %arg1: memref<3x7x1xf32, #tpu.memory_space<vmem>>, %arg2: memref<7x16xf32, #tpu.memory_space<vmem>>, %arg3: memref<4x16x24xf32, #tpu.memory_space<vmem>>, %arg4: memref<4x24x24xf32, #tpu.memory_space<vmem>>, %arg5: memref<4x1x24xf32, #tpu.memory_space<vmem>>, %arg6: memref<4x16x24xf32, #tpu.memory_space<vmem>>, %arg7: memref<4x1x24xf32, #tpu.memory_space<vmem>>, %arg8: memref<2x7x24xf32, #tpu.memory_space<vmem>>) attributes {dimension_semantics = [], scalar_prefetch = 0 : i64, scratch_operands = 0 : i64, tpu.core_type = #tpu.core_type<tc>} {
    %cst = arith.constant 0.000000e+00 : f32
    %0 = vector.broadcast %cst : f32 to vector<7x24xf32>
    %cst_0 = arith.constant 0.000000e+00 : f32
    %1 = vector.broadcast %cst_0 : f32 to vector<7x24xf32>
    %c0 = arith.constant 0 : index
    %c0_1 = arith.constant 0 : index
    %c0_2 = arith.constant 0 : index
    %2 = vector.load %arg0[%c0, %c0_1, %c0_2] : memref<3x7x16xf32, #tpu.memory_space<vmem>>, vector<1x7x16xf32>
    %3 = vector.shape_cast %2 : vector<1x7x16xf32> to vector<7x16xf32>
    %c0_3 = arith.constant 0 : index
    %c0_4 = arith.constant 0 : index
    %c0_5 = arith.constant 0 : index
    %4 = vector.load %arg3[%c0_3, %c0_4, %c0_5] : memref<4x16x24xf32, #tpu.memory_space<vmem>>, vector<1x16x24xf32>
    %5 = vector.shape_cast %4 : vector<1x16x24xf32> to vector<16x24xf32>
    %cst_6 = arith.constant dense<0.000000e+00> : vector<7x24xf32>
    %6 = tpu.matmul %3, %5, %cst_6 {dimension_numbers = #tpu.dot_dimension_numbers<[1], [0], [0], [1], [0, 0, 1, 1], [], []>} : vector<7x16xf32>, vector<16x24xf32>, vector<7x24xf32> -> vector<7x24xf32>
    %c0_7 = arith.constant 0 : index
    %c0_8 = arith.constant 0 : index
    %c0_9 = arith.constant 0 : index
    %7 = vector.load %arg4[%c0_7, %c0_8, %c0_9] : memref<4x24x24xf32, #tpu.memory_space<vmem>>, vector<1x24x24xf32>
    %8 = vector.shape_cast %7 : vector<1x24x24xf32> to vector<24x24xf32>
    %cst_10 = arith.constant dense<0.000000e+00> : vector<7x24xf32>
    %9 = tpu.matmul %0, %8, %cst_10 {dimension_numbers = #tpu.dot_dimension_numbers<[1], [0], [0], [1], [0, 0, 1, 1], [], []>} : vector<7x24xf32>, vector<24x24xf32>, vector<7x24xf32> -> vector<7x24xf32>
    %10 = arith.addf %6, %9 : vector<7x24xf32>
    %c0_11 = arith.constant 0 : index
    %c0_12 = arith.constant 0 : index
    %c0_13 = arith.constant 0 : index
    %11 = vector.load %arg5[%c0_11, %c0_12, %c0_13] : memref<4x1x24xf32, #tpu.memory_space<vmem>>, vector<1x1x24xf32>
    %12 = vector.shape_cast %11 : vector<1x1x24xf32> to vector<1x24xf32>
    %13 = vector.broadcast %12 : vector<1x24xf32> to vector<7x24xf32>
    %14 = arith.addf %10, %13 : vector<7x24xf32>
    %cst_14 = arith.constant 0.000000e+00 : f32
    %15 = vector.broadcast %cst_14 : f32 to vector<7x24xf32>
    %16 = arith.subf %15, %14 : vector<7x24xf32>
    %17 = math.exp %16 : vector<7x24xf32>
    %cst_15 = arith.constant 1.000000e+00 : f32
    %18 = vector.broadcast %cst_15 : f32 to vector<7x24xf32>
    %19 = arith.addf %18, %17 : vector<7x24xf32>
    %20 = tpu.reciprocal %19 {approx = true} : vector<7x24xf32> -> vector<7x24xf32>
    %c1 = arith.constant 1 : index
    %c0_16 = arith.constant 0 : index
    %c0_17 = arith.constant 0 : index
    %21 = vector.load %arg3[%c1, %c0_16, %c0_17] : memref<4x16x24xf32, #tpu.memory_space<vmem>>, vector<1x16x24xf32>
    %22 = vector.shape_cast %21 : vector<1x16x24xf32> to vector<16x24xf32>
    %cst_18 = arith.constant dense<0.000000e+00> : vector<7x24xf32>
    %23 = tpu.matmul %3, %22, %cst_18 {dimension_numbers = #tpu.dot_dimension_numbers<[1], [0], [0], [1], [0, 0, 1, 1], [], []>} : vector<7x16xf32>, vector<16x24xf32>, vector<7x24xf32> -> vector<7x24xf32>
    %c1_19 = arith.constant 1 : index
    %c0_20 = arith.constant 0 : index
    %c0_21 = arith.constant 0 : index
    %24 = vector.load %arg4[%c1_19, %c0_20, %c0_21] : memref<4x24x24xf32, #tpu.memory_space<vmem>>, vector<1x24x24xf32>
    %25 = vector.shape_cast %24 : vector<1x24x24xf32> to vector<24x24xf32>
    %cst_22 = arith.constant dense<0.000000e+00> : vector<7x24xf32>
    %26 = tpu.matmul %0, %25, %cst_22 {dimension_numbers = #tpu.dot_dimension_numbers<[1], [0], [0], [1], [0, 0, 1, 1], [], []>} : vector<7x24xf32>, vector<24x24xf32>, vector<7x24xf32> -> vector<7x24xf32>
    %27 = arith.addf %23, %26 : vector<7x24xf32>
    %c1_23 = arith.constant 1 : index
    %c0_24 = arith.constant 0 : index
    %c0_25 = arith.constant 0 : index
    %28 = vector.load %arg5[%c1_23, %c0_24, %c0_25] : memref<4x1x24xf32, #tpu.memory_space<vmem>>, vector<1x1x24xf32>
    %29 = vector.shape_cast %28 : vector<1x1x24xf32> to vector<1x24xf32>
    %30 = vector.broadcast %29 : vector<1x24xf32> to vector<7x24xf32>
    %31 = arith.addf %27, %30 : vector<7x24xf32>
    %cst_26 = arith.constant 0.000000e+00 : f32
    %32 = vector.broadcast %cst_26 : f32 to vector<7x24xf32>
    %33 = arith.subf %32, %31 : vector<7x24xf32>
    %34 = math.exp %33 : vector<7x24xf32>
    %cst_27 = arith.constant 1.000000e+00 : f32
    %35 = vector.broadcast %cst_27 : f32 to vector<7x24xf32>
    %36 = arith.addf %35, %34 : vector<7x24xf32>
    %37 = tpu.reciprocal %36 {approx = true} : vector<7x24xf32> -> vector<7x24xf32>
    %c2 = arith.constant 2 : index
    %c0_28 = arith.constant 0 : index
    %c0_29 = arith.constant 0 : index
    %38 = vector.load %arg3[%c2, %c0_28, %c0_29] : memref<4x16x24xf32, #tpu.memory_space<vmem>>, vector<1x16x24xf32>
    %39 = vector.shape_cast %38 : vector<1x16x24xf32> to vector<16x24xf32>
    %cst_30 = arith.constant dense<0.000000e+00> : vector<7x24xf32>
    %40 = tpu.matmul %3, %39, %cst_30 {dimension_numbers = #tpu.dot_dimension_numbers<[1], [0], [0], [1], [0, 0, 1, 1], [], []>} : vector<7x16xf32>, vector<16x24xf32>, vector<7x24xf32> -> vector<7x24xf32>
    %c2_31 = arith.constant 2 : index
    %c0_32 = arith.constant 0 : index
    %c0_33 = arith.constant 0 : index
    %41 = vector.load %arg4[%c2_31, %c0_32, %c0_33] : memref<4x24x24xf32, #tpu.memory_space<vmem>>, vector<1x24x24xf32>
    %42 = vector.shape_cast %41 : vector<1x24x24xf32> to vector<24x24xf32>
    %cst_34 = arith.constant dense<0.000000e+00> : vector<7x24xf32>
    %43 = tpu.matmul %0, %42, %cst_34 {dimension_numbers = #tpu.dot_dimension_numbers<[1], [0], [0], [1], [0, 0, 1, 1], [], []>} : vector<7x24xf32>, vector<24x24xf32>, vector<7x24xf32> -> vector<7x24xf32>
    %44 = arith.addf %40, %43 : vector<7x24xf32>
    %c2_35 = arith.constant 2 : index
    %c0_36 = arith.constant 0 : index
    %c0_37 = arith.constant 0 : index
    %45 = vector.load %arg5[%c2_35, %c0_36, %c0_37] : memref<4x1x24xf32, #tpu.memory_space<vmem>>, vector<1x1x24xf32>
    %46 = vector.shape_cast %45 : vector<1x1x24xf32> to vector<1x24xf32>
    %47 = vector.broadcast %46 : vector<1x24xf32> to vector<7x24xf32>
    %48 = arith.addf %44, %47 : vector<7x24xf32>
    %49 = math.tanh %48 : vector<7x24xf32>
    %c3 = arith.constant 3 : index
    %c0_38 = arith.constant 0 : index
    %c0_39 = arith.constant 0 : index
    %50 = vector.load %arg3[%c3, %c0_38, %c0_39] : memref<4x16x24xf32, #tpu.memory_space<vmem>>, vector<1x16x24xf32>
    %51 = vector.shape_cast %50 : vector<1x16x24xf32> to vector<16x24xf32>
    %cst_40 = arith.constant dense<0.000000e+00> : vector<7x24xf32>
    %52 = tpu.matmul %3, %51, %cst_40 {dimension_numbers = #tpu.dot_dimension_numbers<[1], [0], [0], [1], [0, 0, 1, 1], [], []>} : vector<7x16xf32>, vector<16x24xf32>, vector<7x24xf32> -> vector<7x24xf32>
    %c3_41 = arith.constant 3 : index
    %c0_42 = arith.constant 0 : index
    %c0_43 = arith.constant 0 : index
    %53 = vector.load %arg4[%c3_41, %c0_42, %c0_43] : memref<4x24x24xf32, #tpu.memory_space<vmem>>, vector<1x24x24xf32>
    %54 = vector.shape_cast %53 : vector<1x24x24xf32> to vector<24x24xf32>
    %cst_44 = arith.constant dense<0.000000e+00> : vector<7x24xf32>
    %55 = tpu.matmul %0, %54, %cst_44 {dimension_numbers = #tpu.dot_dimension_numbers<[1], [0], [0], [1], [0, 0, 1, 1], [], []>} : vector<7x24xf32>, vector<24x24xf32>, vector<7x24xf32> -> vector<7x24xf32>
    %56 = arith.addf %52, %55 : vector<7x24xf32>
    %c3_45 = arith.constant 3 : index
    %c0_46 = arith.constant 0 : index
    %c0_47 = arith.constant 0 : index
    %57 = vector.load %arg5[%c3_45, %c0_46, %c0_47] : memref<4x1x24xf32, #tpu.memory_space<vmem>>, vector<1x1x24xf32>
    %58 = vector.shape_cast %57 : vector<1x1x24xf32> to vector<1x24xf32>
    %59 = vector.broadcast %58 : vector<1x24xf32> to vector<7x24xf32>
    %60 = arith.addf %56, %59 : vector<7x24xf32>
    %cst_48 = arith.constant 0.000000e+00 : f32
    %61 = vector.broadcast %cst_48 : f32 to vector<7x24xf32>
    %62 = arith.subf %61, %60 : vector<7x24xf32>
    %63 = math.exp %62 : vector<7x24xf32>
    %cst_49 = arith.constant 1.000000e+00 : f32
    %64 = vector.broadcast %cst_49 : f32 to vector<7x24xf32>
    %65 = arith.addf %64, %63 : vector<7x24xf32>
    %66 = tpu.reciprocal %65 {approx = true} : vector<7x24xf32> -> vector<7x24xf32>
    %67 = arith.mulf %37, %1 : vector<7x24xf32>
    %68 = arith.mulf %20, %49 : vector<7x24xf32>
    %69 = arith.addf %67, %68 : vector<7x24xf32>
    %70 = math.tanh %69 : vector<7x24xf32>
    %71 = arith.mulf %66, %70 : vector<7x24xf32>
    %c0_50 = arith.constant 0 : index
    %c0_51 = arith.constant 0 : index
    %c0_52 = arith.constant 0 : index
    %72 = vector.load %arg1[%c0_50, %c0_51, %c0_52] : memref<3x7x1xf32, #tpu.memory_space<vmem>>, vector<1x7x1xf32>
    %73 = vector.shape_cast %72 : vector<1x7x1xf32> to vector<7x1xf32>
    %74 = vector.broadcast %73 : vector<7x1xf32> to vector<7x24xf32>
    %75 = arith.mulf %74, %71 : vector<7x24xf32>
    %cst_53 = arith.constant 1.000000e+00 : f32
    %76 = vector.broadcast %cst_53 : f32 to vector<7x1xf32>
    %77 = arith.subf %76, %73 : vector<7x1xf32>
    %78 = vector.broadcast %77 : vector<7x1xf32> to vector<7x24xf32>
    %79 = arith.mulf %78, %0 : vector<7x24xf32>
    %80 = arith.addf %75, %79 : vector<7x24xf32>
    %81 = vector.broadcast %73 : vector<7x1xf32> to vector<7x24xf32>
    %82 = arith.mulf %81, %69 : vector<7x24xf32>
    %cst_54 = arith.constant 1.000000e+00 : f32
    %83 = vector.broadcast %cst_54 : f32 to vector<7x1xf32>
    %84 = arith.subf %83, %73 : vector<7x1xf32>
    %85 = vector.broadcast %84 : vector<7x1xf32> to vector<7x24xf32>
    %86 = arith.mulf %85, %1 : vector<7x24xf32>
    %87 = arith.addf %82, %86 : vector<7x24xf32>
    %c1_55 = arith.constant 1 : index
    %c0_56 = arith.constant 0 : index
    %c0_57 = arith.constant 0 : index
    %88 = vector.load %arg0[%c1_55, %c0_56, %c0_57] : memref<3x7x16xf32, #tpu.memory_space<vmem>>, vector<1x7x16xf32>
    %89 = vector.shape_cast %88 : vector<1x7x16xf32> to vector<7x16xf32>
    %c0_58 = arith.constant 0 : index
    %c0_59 = arith.constant 0 : index
    %c0_60 = arith.constant 0 : index
    %90 = vector.load %arg3[%c0_58, %c0_59, %c0_60] : memref<4x16x24xf32, #tpu.memory_space<vmem>>, vector<1x16x24xf32>
    %91 = vector.shape_cast %90 : vector<1x16x24xf32> to vector<16x24xf32>
    %cst_61 = arith.constant dense<0.000000e+00> : vector<7x24xf32>
    %92 = tpu.matmul %89, %91, %cst_61 {dimension_numbers = #tpu.dot_dimension_numbers<[1], [0], [0], [1], [0, 0, 1, 1], [], []>} : vector<7x16xf32>, vector<16x24xf32>, vector<7x24xf32> -> vector<7x24xf32>
    %c0_62 = arith.constant 0 : index
    %c0_63 = arith.constant 0 : index
    %c0_64 = arith.constant 0 : index
    %93 = vector.load %arg4[%c0_62, %c0_63, %c0_64] : memref<4x24x24xf32, #tpu.memory_space<vmem>>, vector<1x24x24xf32>
    %94 = vector.shape_cast %93 : vector<1x24x24xf32> to vector<24x24xf32>
    %cst_65 = arith.constant dense<0.000000e+00> : vector<7x24xf32>
    %95 = tpu.matmul %80, %94, %cst_65 {dimension_numbers = #tpu.dot_dimension_numbers<[1], [0], [0], [1], [0, 0, 1, 1], [], []>} : vector<7x24xf32>, vector<24x24xf32>, vector<7x24xf32> -> vector<7x24xf32>
    %96 = arith.addf %92, %95 : vector<7x24xf32>
    %c0_66 = arith.constant 0 : index
    %c0_67 = arith.constant 0 : index
    %c0_68 = arith.constant 0 : index
    %97 = vector.load %arg5[%c0_66, %c0_67, %c0_68] : memref<4x1x24xf32, #tpu.memory_space<vmem>>, vector<1x1x24xf32>
    %98 = vector.shape_cast %97 : vector<1x1x24xf32> to vector<1x24xf32>
    %99 = vector.broadcast %98 : vector<1x24xf32> to vector<7x24xf32>
    %100 = arith.addf %96, %99 : vector<7x24xf32>
    %cst_69 = arith.constant 0.000000e+00 : f32
    %101 = vector.broadcast %cst_69 : f32 to vector<7x24xf32>
    %102 = arith.subf %101, %100 : vector<7x24xf32>
    %103 = math.exp %102 : vector<7x24xf32>
    %cst_70 = arith.constant 1.000000e+00 : f32
    %104 = vector.broadcast %cst_70 : f32 to vector<7x24xf32>
    %105 = arith.addf %104, %103 : vector<7x24xf32>
    %106 = tpu.reciprocal %105 {approx = true} : vector<7x24xf32> -> vector<7x24xf32>
    %c1_71 = arith.constant 1 : index
    %c0_72 = arith.constant 0 : index
    %c0_73 = arith.constant 0 : index
    %107 = vector.load %arg3[%c1_71, %c0_72, %c0_73] : memref<4x16x24xf32, #tpu.memory_space<vmem>>, vector<1x16x24xf32>
    %108 = vector.shape_cast %107 : vector<1x16x24xf32> to vector<16x24xf32>
    %cst_74 = arith.constant dense<0.000000e+00> : vector<7x24xf32>
    %109 = tpu.matmul %89, %108, %cst_74 {dimension_numbers = #tpu.dot_dimension_numbers<[1], [0], [0], [1], [0, 0, 1, 1], [], []>} : vector<7x16xf32>, vector<16x24xf32>, vector<7x24xf32> -> vector<7x24xf32>
    %c1_75 = arith.constant 1 : index
    %c0_76 = arith.constant 0 : index
    %c0_77 = arith.constant 0 : index
    %110 = vector.load %arg4[%c1_75, %c0_76, %c0_77] : memref<4x24x24xf32, #tpu.memory_space<vmem>>, vector<1x24x24xf32>
    %111 = vector.shape_cast %110 : vector<1x24x24xf32> to vector<24x24xf32>
    %cst_78 = arith.constant dense<0.000000e+00> : vector<7x24xf32>
    %112 = tpu.matmul %80, %111, %cst_78 {dimension_numbers = #tpu.dot_dimension_numbers<[1], [0], [0], [1], [0, 0, 1, 1], [], []>} : vector<7x24xf32>, vector<24x24xf32>, vector<7x24xf32> -> vector<7x24xf32>
    %113 = arith.addf %109, %112 : vector<7x24xf32>
    %c1_79 = arith.constant 1 : index
    %c0_80 = arith.constant 0 : index
    %c0_81 = arith.constant 0 : index
    %114 = vector.load %arg5[%c1_79, %c0_80, %c0_81] : memref<4x1x24xf32, #tpu.memory_space<vmem>>, vector<1x1x24xf32>
    %115 = vector.shape_cast %114 : vector<1x1x24xf32> to vector<1x24xf32>
    %116 = vector.broadcast %115 : vector<1x24xf32> to vector<7x24xf32>
    %117 = arith.addf %113, %116 : vector<7x24xf32>
    %cst_82 = arith.constant 0.000000e+00 : f32
    %118 = vector.broadcast %cst_82 : f32 to vector<7x24xf32>
    %119 = arith.subf %118, %117 : vector<7x24xf32>
    %120 = math.exp %119 : vector<7x24xf32>
    %cst_83 = arith.constant 1.000000e+00 : f32
    %121 = vector.broadcast %cst_83 : f32 to vector<7x24xf32>
    %122 = arith.addf %121, %120 : vector<7x24xf32>
    %123 = tpu.reciprocal %122 {approx = true} : vector<7x24xf32> -> vector<7x24xf32>
    %c2_84 = arith.constant 2 : index
    %c0_85 = arith.constant 0 : index
    %c0_86 = arith.constant 0 : index
    %124 = vector.load %arg3[%c2_84, %c0_85, %c0_86] : memref<4x16x24xf32, #tpu.memory_space<vmem>>, vector<1x16x24xf32>
    %125 = vector.shape_cast %124 : vector<1x16x24xf32> to vector<16x24xf32>
    %cst_87 = arith.constant dense<0.000000e+00> : vector<7x24xf32>
    %126 = tpu.matmul %89, %125, %cst_87 {dimension_numbers = #tpu.dot_dimension_numbers<[1], [0], [0], [1], [0, 0, 1, 1], [], []>} : vector<7x16xf32>, vector<16x24xf32>, vector<7x24xf32> -> vector<7x24xf32>
    %c2_88 = arith.constant 2 : index
    %c0_89 = arith.constant 0 : index
    %c0_90 = arith.constant 0 : index
    %127 = vector.load %arg4[%c2_88, %c0_89, %c0_90] : memref<4x24x24xf32, #tpu.memory_space<vmem>>, vector<1x24x24xf32>
    %128 = vector.shape_cast %127 : vector<1x24x24xf32> to vector<24x24xf32>
    %cst_91 = arith.constant dense<0.000000e+00> : vector<7x24xf32>
    %129 = tpu.matmul %80, %128, %cst_91 {dimension_numbers = #tpu.dot_dimension_numbers<[1], [0], [0], [1], [0, 0, 1, 1], [], []>} : vector<7x24xf32>, vector<24x24xf32>, vector<7x24xf32> -> vector<7x24xf32>
    %130 = arith.addf %126, %129 : vector<7x24xf32>
    %c2_92 = arith.constant 2 : index
    %c0_93 = arith.constant 0 : index
    %c0_94 = arith.constant 0 : index
    %131 = vector.load %arg5[%c2_92, %c0_93, %c0_94] : memref<4x1x24xf32, #tpu.memory_space<vmem>>, vector<1x1x24xf32>
    %132 = vector.shape_cast %131 : vector<1x1x24xf32> to vector<1x24xf32>
    %133 = vector.broadcast %132 : vector<1x24xf32> to vector<7x24xf32>
    %134 = arith.addf %130, %133 : vector<7x24xf32>
    %135 = math.tanh %134 : vector<7x24xf32>
    %c3_95 = arith.constant 3 : index
    %c0_96 = arith.constant 0 : index
    %c0_97 = arith.constant 0 : index
    %136 = vector.load %arg3[%c3_95, %c0_96, %c0_97] : memref<4x16x24xf32, #tpu.memory_space<vmem>>, vector<1x16x24xf32>
    %137 = vector.shape_cast %136 : vector<1x16x24xf32> to vector<16x24xf32>
    %cst_98 = arith.constant dense<0.000000e+00> : vector<7x24xf32>
    %138 = tpu.matmul %89, %137, %cst_98 {dimension_numbers = #tpu.dot_dimension_numbers<[1], [0], [0], [1], [0, 0, 1, 1], [], []>} : vector<7x16xf32>, vector<16x24xf32>, vector<7x24xf32> -> vector<7x24xf32>
    %c3_99 = arith.constant 3 : index
    %c0_100 = arith.constant 0 : index
    %c0_101 = arith.constant 0 : index
    %139 = vector.load %arg4[%c3_99, %c0_100, %c0_101] : memref<4x24x24xf32, #tpu.memory_space<vmem>>, vector<1x24x24xf32>
    %140 = vector.shape_cast %139 : vector<1x24x24xf32> to vector<24x24xf32>
    %cst_102 = arith.constant dense<0.000000e+00> : vector<7x24xf32>
    %141 = tpu.matmul %80, %140, %cst_102 {dimension_numbers = #tpu.dot_dimension_numbers<[1], [0], [0], [1], [0, 0, 1, 1], [], []>} : vector<7x24xf32>, vector<24x24xf32>, vector<7x24xf32> -> vector<7x24xf32>
    %142 = arith.addf %138, %141 : vector<7x24xf32>
    %c3_103 = arith.constant 3 : index
    %c0_104 = arith.constant 0 : index
    %c0_105 = arith.constant 0 : index
    %143 = vector.load %arg5[%c3_103, %c0_104, %c0_105] : memref<4x1x24xf32, #tpu.memory_space<vmem>>, vector<1x1x24xf32>
    %144 = vector.shape_cast %143 : vector<1x1x24xf32> to vector<1x24xf32>
    %145 = vector.broadcast %144 : vector<1x24xf32> to vector<7x24xf32>
    %146 = arith.addf %142, %145 : vector<7x24xf32>
    %cst_106 = arith.constant 0.000000e+00 : f32
    %147 = vector.broadcast %cst_106 : f32 to vector<7x24xf32>
    %148 = arith.subf %147, %146 : vector<7x24xf32>
    %149 = math.exp %148 : vector<7x24xf32>
    %cst_107 = arith.constant 1.000000e+00 : f32
    %150 = vector.broadcast %cst_107 : f32 to vector<7x24xf32>
    %151 = arith.addf %150, %149 : vector<7x24xf32>
    %152 = tpu.reciprocal %151 {approx = true} : vector<7x24xf32> -> vector<7x24xf32>
    %153 = arith.mulf %123, %87 : vector<7x24xf32>
    %154 = arith.mulf %106, %135 : vector<7x24xf32>
    %155 = arith.addf %153, %154 : vector<7x24xf32>
    %156 = math.tanh %155 : vector<7x24xf32>
    %157 = arith.mulf %152, %156 : vector<7x24xf32>
    %c1_108 = arith.constant 1 : index
    %c0_109 = arith.constant 0 : index
    %c0_110 = arith.constant 0 : index
    %158 = vector.load %arg1[%c1_108, %c0_109, %c0_110] : memref<3x7x1xf32, #tpu.memory_space<vmem>>, vector<1x7x1xf32>
    %159 = vector.shape_cast %158 : vector<1x7x1xf32> to vector<7x1xf32>
    %160 = vector.broadcast %159 : vector<7x1xf32> to vector<7x24xf32>
    %161 = arith.mulf %160, %157 : vector<7x24xf32>
    %cst_111 = arith.constant 1.000000e+00 : f32
    %162 = vector.broadcast %cst_111 : f32 to vector<7x1xf32>
    %163 = arith.subf %162, %159 : vector<7x1xf32>
    %164 = vector.broadcast %163 : vector<7x1xf32> to vector<7x24xf32>
    %165 = arith.mulf %164, %80 : vector<7x24xf32>
    %166 = arith.addf %161, %165 : vector<7x24xf32>
    %167 = vector.broadcast %159 : vector<7x1xf32> to vector<7x24xf32>
    %168 = arith.mulf %167, %155 : vector<7x24xf32>
    %cst_112 = arith.constant 1.000000e+00 : f32
    %169 = vector.broadcast %cst_112 : f32 to vector<7x1xf32>
    %170 = arith.subf %169, %159 : vector<7x1xf32>
    %171 = vector.broadcast %170 : vector<7x1xf32> to vector<7x24xf32>
    %172 = arith.mulf %171, %87 : vector<7x24xf32>
    %173 = arith.addf %168, %172 : vector<7x24xf32>
    %c2_113 = arith.constant 2 : index
    %c0_114 = arith.constant 0 : index
    %c0_115 = arith.constant 0 : index
    %174 = vector.load %arg0[%c2_113, %c0_114, %c0_115] : memref<3x7x16xf32, #tpu.memory_space<vmem>>, vector<1x7x16xf32>
    %175 = vector.shape_cast %174 : vector<1x7x16xf32> to vector<7x16xf32>
    %c0_116 = arith.constant 0 : index
    %c0_117 = arith.constant 0 : index
    %c0_118 = arith.constant 0 : index
    %176 = vector.load %arg3[%c0_116, %c0_117, %c0_118] : memref<4x16x24xf32, #tpu.memory_space<vmem>>, vector<1x16x24xf32>
    %177 = vector.shape_cast %176 : vector<1x16x24xf32> to vector<16x24xf32>
    %cst_119 = arith.constant dense<0.000000e+00> : vector<7x24xf32>
    %178 = tpu.matmul %175, %177, %cst_119 {dimension_numbers = #tpu.dot_dimension_numbers<[1], [0], [0], [1], [0, 0, 1, 1], [], []>} : vector<7x16xf32>, vector<16x24xf32>, vector<7x24xf32> -> vector<7x24xf32>
    %c0_120 = arith.constant 0 : index
    %c0_121 = arith.constant 0 : index
    %c0_122 = arith.constant 0 : index
    %179 = vector.load %arg4[%c0_120, %c0_121, %c0_122] : memref<4x24x24xf32, #tpu.memory_space<vmem>>, vector<1x24x24xf32>
    %180 = vector.shape_cast %179 : vector<1x24x24xf32> to vector<24x24xf32>
    %cst_123 = arith.constant dense<0.000000e+00> : vector<7x24xf32>
    %181 = tpu.matmul %166, %180, %cst_123 {dimension_numbers = #tpu.dot_dimension_numbers<[1], [0], [0], [1], [0, 0, 1, 1], [], []>} : vector<7x24xf32>, vector<24x24xf32>, vector<7x24xf32> -> vector<7x24xf32>
    %182 = arith.addf %178, %181 : vector<7x24xf32>
    %c0_124 = arith.constant 0 : index
    %c0_125 = arith.constant 0 : index
    %c0_126 = arith.constant 0 : index
    %183 = vector.load %arg5[%c0_124, %c0_125, %c0_126] : memref<4x1x24xf32, #tpu.memory_space<vmem>>, vector<1x1x24xf32>
    %184 = vector.shape_cast %183 : vector<1x1x24xf32> to vector<1x24xf32>
    %185 = vector.broadcast %184 : vector<1x24xf32> to vector<7x24xf32>
    %186 = arith.addf %182, %185 : vector<7x24xf32>
    %cst_127 = arith.constant 0.000000e+00 : f32
    %187 = vector.broadcast %cst_127 : f32 to vector<7x24xf32>
    %188 = arith.subf %187, %186 : vector<7x24xf32>
    %189 = math.exp %188 : vector<7x24xf32>
    %cst_128 = arith.constant 1.000000e+00 : f32
    %190 = vector.broadcast %cst_128 : f32 to vector<7x24xf32>
    %191 = arith.addf %190, %189 : vector<7x24xf32>
    %192 = tpu.reciprocal %191 {approx = true} : vector<7x24xf32> -> vector<7x24xf32>
    %c1_129 = arith.constant 1 : index
    %c0_130 = arith.constant 0 : index
    %c0_131 = arith.constant 0 : index
    %193 = vector.load %arg3[%c1_129, %c0_130, %c0_131] : memref<4x16x24xf32, #tpu.memory_space<vmem>>, vector<1x16x24xf32>
    %194 = vector.shape_cast %193 : vector<1x16x24xf32> to vector<16x24xf32>
    %cst_132 = arith.constant dense<0.000000e+00> : vector<7x24xf32>
    %195 = tpu.matmul %175, %194, %cst_132 {dimension_numbers = #tpu.dot_dimension_numbers<[1], [0], [0], [1], [0, 0, 1, 1], [], []>} : vector<7x16xf32>, vector<16x24xf32>, vector<7x24xf32> -> vector<7x24xf32>
    %c1_133 = arith.constant 1 : index
    %c0_134 = arith.constant 0 : index
    %c0_135 = arith.constant 0 : index
    %196 = vector.load %arg4[%c1_133, %c0_134, %c0_135] : memref<4x24x24xf32, #tpu.memory_space<vmem>>, vector<1x24x24xf32>
    %197 = vector.shape_cast %196 : vector<1x24x24xf32> to vector<24x24xf32>
    %cst_136 = arith.constant dense<0.000000e+00> : vector<7x24xf32>
    %198 = tpu.matmul %166, %197, %cst_136 {dimension_numbers = #tpu.dot_dimension_numbers<[1], [0], [0], [1], [0, 0, 1, 1], [], []>} : vector<7x24xf32>, vector<24x24xf32>, vector<7x24xf32> -> vector<7x24xf32>
    %199 = arith.addf %195, %198 : vector<7x24xf32>
    %c1_137 = arith.constant 1 : index
    %c0_138 = arith.constant 0 : index
    %c0_139 = arith.constant 0 : index
    %200 = vector.load %arg5[%c1_137, %c0_138, %c0_139] : memref<4x1x24xf32, #tpu.memory_space<vmem>>, vector<1x1x24xf32>
    %201 = vector.shape_cast %200 : vector<1x1x24xf32> to vector<1x24xf32>
    %202 = vector.broadcast %201 : vector<1x24xf32> to vector<7x24xf32>
    %203 = arith.addf %199, %202 : vector<7x24xf32>
    %cst_140 = arith.constant 0.000000e+00 : f32
    %204 = vector.broadcast %cst_140 : f32 to vector<7x24xf32>
    %205 = arith.subf %204, %203 : vector<7x24xf32>
    %206 = math.exp %205 : vector<7x24xf32>
    %cst_141 = arith.constant 1.000000e+00 : f32
    %207 = vector.broadcast %cst_141 : f32 to vector<7x24xf32>
    %208 = arith.addf %207, %206 : vector<7x24xf32>
    %209 = tpu.reciprocal %208 {approx = true} : vector<7x24xf32> -> vector<7x24xf32>
    %c2_142 = arith.constant 2 : index
    %c0_143 = arith.constant 0 : index
    %c0_144 = arith.constant 0 : index
    %210 = vector.load %arg3[%c2_142, %c0_143, %c0_144] : memref<4x16x24xf32, #tpu.memory_space<vmem>>, vector<1x16x24xf32>
    %211 = vector.shape_cast %210 : vector<1x16x24xf32> to vector<16x24xf32>
    %cst_145 = arith.constant dense<0.000000e+00> : vector<7x24xf32>
    %212 = tpu.matmul %175, %211, %cst_145 {dimension_numbers = #tpu.dot_dimension_numbers<[1], [0], [0], [1], [0, 0, 1, 1], [], []>} : vector<7x16xf32>, vector<16x24xf32>, vector<7x24xf32> -> vector<7x24xf32>
    %c2_146 = arith.constant 2 : index
    %c0_147 = arith.constant 0 : index
    %c0_148 = arith.constant 0 : index
    %213 = vector.load %arg4[%c2_146, %c0_147, %c0_148] : memref<4x24x24xf32, #tpu.memory_space<vmem>>, vector<1x24x24xf32>
    %214 = vector.shape_cast %213 : vector<1x24x24xf32> to vector<24x24xf32>
    %cst_149 = arith.constant dense<0.000000e+00> : vector<7x24xf32>
    %215 = tpu.matmul %166, %214, %cst_149 {dimension_numbers = #tpu.dot_dimension_numbers<[1], [0], [0], [1], [0, 0, 1, 1], [], []>} : vector<7x24xf32>, vector<24x24xf32>, vector<7x24xf32> -> vector<7x24xf32>
    %216 = arith.addf %212, %215 : vector<7x24xf32>
    %c2_150 = arith.constant 2 : index
    %c0_151 = arith.constant 0 : index
    %c0_152 = arith.constant 0 : index
    %217 = vector.load %arg5[%c2_150, %c0_151, %c0_152] : memref<4x1x24xf32, #tpu.memory_space<vmem>>, vector<1x1x24xf32>
    %218 = vector.shape_cast %217 : vector<1x1x24xf32> to vector<1x24xf32>
    %219 = vector.broadcast %218 : vector<1x24xf32> to vector<7x24xf32>
    %220 = arith.addf %216, %219 : vector<7x24xf32>
    %221 = math.tanh %220 : vector<7x24xf32>
    %c3_153 = arith.constant 3 : index
    %c0_154 = arith.constant 0 : index
    %c0_155 = arith.constant 0 : index
    %222 = vector.load %arg3[%c3_153, %c0_154, %c0_155] : memref<4x16x24xf32, #tpu.memory_space<vmem>>, vector<1x16x24xf32>
    %223 = vector.shape_cast %222 : vector<1x16x24xf32> to vector<16x24xf32>
    %cst_156 = arith.constant dense<0.000000e+00> : vector<7x24xf32>
    %224 = tpu.matmul %175, %223, %cst_156 {dimension_numbers = #tpu.dot_dimension_numbers<[1], [0], [0], [1], [0, 0, 1, 1], [], []>} : vector<7x16xf32>, vector<16x24xf32>, vector<7x24xf32> -> vector<7x24xf32>
    %c3_157 = arith.constant 3 : index
    %c0_158 = arith.constant 0 : index
    %c0_159 = arith.constant 0 : index
    %225 = vector.load %arg4[%c3_157, %c0_158, %c0_159] : memref<4x24x24xf32, #tpu.memory_space<vmem>>, vector<1x24x24xf32>
    %226 = vector.shape_cast %225 : vector<1x24x24xf32> to vector<24x24xf32>
    %cst_160 = arith.constant dense<0.000000e+00> : vector<7x24xf32>
    %227 = tpu.matmul %166, %226, %cst_160 {dimension_numbers = #tpu.dot_dimension_numbers<[1], [0], [0], [1], [0, 0, 1, 1], [], []>} : vector<7x24xf32>, vector<24x24xf32>, vector<7x24xf32> -> vector<7x24xf32>
    %228 = arith.addf %224, %227 : vector<7x24xf32>
    %c3_161 = arith.constant 3 : index
    %c0_162 = arith.constant 0 : index
    %c0_163 = arith.constant 0 : index
    %229 = vector.load %arg5[%c3_161, %c0_162, %c0_163] : memref<4x1x24xf32, #tpu.memory_space<vmem>>, vector<1x1x24xf32>
    %230 = vector.shape_cast %229 : vector<1x1x24xf32> to vector<1x24xf32>
    %231 = vector.broadcast %230 : vector<1x24xf32> to vector<7x24xf32>
    %232 = arith.addf %228, %231 : vector<7x24xf32>
    %cst_164 = arith.constant 0.000000e+00 : f32
    %233 = vector.broadcast %cst_164 : f32 to vector<7x24xf32>
    %234 = arith.subf %233, %232 : vector<7x24xf32>
    %235 = math.exp %234 : vector<7x24xf32>
    %cst_165 = arith.constant 1.000000e+00 : f32
    %236 = vector.broadcast %cst_165 : f32 to vector<7x24xf32>
    %237 = arith.addf %236, %235 : vector<7x24xf32>
    %238 = tpu.reciprocal %237 {approx = true} : vector<7x24xf32> -> vector<7x24xf32>
    %239 = arith.mulf %209, %173 : vector<7x24xf32>
    %240 = arith.mulf %192, %221 : vector<7x24xf32>
    %241 = arith.addf %239, %240 : vector<7x24xf32>
    %242 = math.tanh %241 : vector<7x24xf32>
    %243 = arith.mulf %238, %242 : vector<7x24xf32>
    %c2_166 = arith.constant 2 : index
    %c0_167 = arith.constant 0 : index
    %c0_168 = arith.constant 0 : index
    %244 = vector.load %arg1[%c2_166, %c0_167, %c0_168] : memref<3x7x1xf32, #tpu.memory_space<vmem>>, vector<1x7x1xf32>
    %245 = vector.shape_cast %244 : vector<1x7x1xf32> to vector<7x1xf32>
    %246 = vector.broadcast %245 : vector<7x1xf32> to vector<7x24xf32>
    %247 = arith.mulf %246, %243 : vector<7x24xf32>
    %cst_169 = arith.constant 1.000000e+00 : f32
    %248 = vector.broadcast %cst_169 : f32 to vector<7x1xf32>
    %249 = arith.subf %248, %245 : vector<7x1xf32>
    %250 = vector.broadcast %249 : vector<7x1xf32> to vector<7x24xf32>
    %251 = arith.mulf %250, %166 : vector<7x24xf32>
    %252 = arith.addf %247, %251 : vector<7x24xf32>
    %c0_170 = arith.constant 0 : index
    %c0_171 = arith.constant 0 : index
    %c0_172 = arith.constant 0 : index
    %253 = vector.load %arg8[%c0_170, %c0_171, %c0_172] : memref<2x7x24xf32, #tpu.memory_space<vmem>>, vector<1x7x24xf32>
    %254 = vector.shape_cast %253 : vector<1x7x24xf32> to vector<7x24xf32>
    %255 = vector.shape_cast %252 : vector<7x24xf32> to vector<1x7x24xf32>
    tpu.vector_store %arg8[%c0_170, %c0_171, %c0_172], %255 {strides = array<i32>} : memref<2x7x24xf32, #tpu.memory_space<vmem>>, vector<1x7x24xf32>,
    %cst_173 = arith.constant 0.000000e+00 : f32
    %256 = vector.broadcast %cst_173 : f32 to vector<7x24xf32>
    %c0_174 = arith.constant 0 : index
    %c0_175 = arith.constant 0 : index
    %257 = vector.load %arg2[%c0_174, %c0_175] : memref<7x16xf32, #tpu.memory_space<vmem>>, vector<7x16xf32>
    %c0_176 = arith.constant 0 : index
    %c0_177 = arith.constant 0 : index
    %c0_178 = arith.constant 0 : index
    %258 = vector.load %arg6[%c0_176, %c0_177, %c0_178] : memref<4x16x24xf32, #tpu.memory_space<vmem>>, vector<1x16x24xf32>
    %259 = vector.shape_cast %258 : vector<1x16x24xf32> to vector<16x24xf32>
    %cst_179 = arith.constant dense<0.000000e+00> : vector<7x24xf32>
    %260 = tpu.matmul %257, %259, %cst_179 {dimension_numbers = #tpu.dot_dimension_numbers<[1], [0], [0], [1], [0, 0, 1, 1], [], []>} : vector<7x16xf32>, vector<16x24xf32>, vector<7x24xf32> -> vector<7x24xf32>
    %c0_180 = arith.constant 0 : index
    %c0_181 = arith.constant 0 : index
    %c0_182 = arith.constant 0 : index
    %261 = vector.load %arg4[%c0_180, %c0_181, %c0_182] : memref<4x24x24xf32, #tpu.memory_space<vmem>>, vector<1x24x24xf32>
    %262 = vector.shape_cast %261 : vector<1x24x24xf32> to vector<24x24xf32>
    %cst_183 = arith.constant dense<0.000000e+00> : vector<7x24xf32>
    %263 = tpu.matmul %256, %262, %cst_183 {dimension_numbers = #tpu.dot_dimension_numbers<[1], [0], [0], [1], [0, 0, 1, 1], [], []>} : vector<7x24xf32>, vector<24x24xf32>, vector<7x24xf32> -> vector<7x24xf32>
    %264 = arith.addf %260, %263 : vector<7x24xf32>
    %c0_184 = arith.constant 0 : index
    %c0_185 = arith.constant 0 : index
    %c0_186 = arith.constant 0 : index
    %265 = vector.load %arg7[%c0_184, %c0_185, %c0_186] : memref<4x1x24xf32, #tpu.memory_space<vmem>>, vector<1x1x24xf32>
    %266 = vector.shape_cast %265 : vector<1x1x24xf32> to vector<1x24xf32>
    %267 = vector.broadcast %266 : vector<1x24xf32> to vector<7x24xf32>
    %268 = arith.addf %264, %267 : vector<7x24xf32>
    %cst_187 = arith.constant 0.000000e+00 : f32
    %269 = vector.broadcast %cst_187 : f32 to vector<7x24xf32>
    %270 = arith.subf %269, %268 : vector<7x24xf32>
    %271 = math.exp %270 : vector<7x24xf32>
    %cst_188 = arith.constant 1.000000e+00 : f32
    %272 = vector.broadcast %cst_188 : f32 to vector<7x24xf32>
    %273 = arith.addf %272, %271 : vector<7x24xf32>
    %274 = tpu.reciprocal %273 {approx = true} : vector<7x24xf32> -> vector<7x24xf32>
    %c1_189 = arith.constant 1 : index
    %c0_190 = arith.constant 0 : index
    %c0_191 = arith.constant 0 : index
    %275 = vector.load %arg6[%c1_189, %c0_190, %c0_191] : memref<4x16x24xf32, #tpu.memory_space<vmem>>, vector<1x16x24xf32>
    %276 = vector.shape_cast %275 : vector<1x16x24xf32> to vector<16x24xf32>
    %cst_192 = arith.constant dense<0.000000e+00> : vector<7x24xf32>
    %277 = tpu.matmul %257, %276, %cst_192 {dimension_numbers = #tpu.dot_dimension_numbers<[1], [0], [0], [1], [0, 0, 1, 1], [], []>} : vector<7x16xf32>, vector<16x24xf32>, vector<7x24xf32> -> vector<7x24xf32>
    %c1_193 = arith.constant 1 : index
    %c0_194 = arith.constant 0 : index
    %c0_195 = arith.constant 0 : index
    %278 = vector.load %arg4[%c1_193, %c0_194, %c0_195] : memref<4x24x24xf32, #tpu.memory_space<vmem>>, vector<1x24x24xf32>
    %279 = vector.shape_cast %278 : vector<1x24x24xf32> to vector<24x24xf32>
    %cst_196 = arith.constant dense<0.000000e+00> : vector<7x24xf32>
    %280 = tpu.matmul %256, %279, %cst_196 {dimension_numbers = #tpu.dot_dimension_numbers<[1], [0], [0], [1], [0, 0, 1, 1], [], []>} : vector<7x24xf32>, vector<24x24xf32>, vector<7x24xf32> -> vector<7x24xf32>
    %281 = arith.addf %277, %280 : vector<7x24xf32>
    %c1_197 = arith.constant 1 : index
    %c0_198 = arith.constant 0 : index
    %c0_199 = arith.constant 0 : index
    %282 = vector.load %arg7[%c1_197, %c0_198, %c0_199] : memref<4x1x24xf32, #tpu.memory_space<vmem>>, vector<1x1x24xf32>
    %283 = vector.shape_cast %282 : vector<1x1x24xf32> to vector<1x24xf32>
    %284 = vector.broadcast %283 : vector<1x24xf32> to vector<7x24xf32>
    %285 = arith.addf %281, %284 : vector<7x24xf32>
    %cst_200 = arith.constant 0.000000e+00 : f32
    %286 = vector.broadcast %cst_200 : f32 to vector<7x24xf32>
    %287 = arith.subf %286, %285 : vector<7x24xf32>
    %288 = math.exp %287 : vector<7x24xf32>
    %cst_201 = arith.constant 1.000000e+00 : f32
    %289 = vector.broadcast %cst_201 : f32 to vector<7x24xf32>
    %290 = arith.addf %289, %288 : vector<7x24xf32>
    %291 = tpu.reciprocal %290 {approx = true} : vector<7x24xf32> -> vector<7x24xf32>
    %c2_202 = arith.constant 2 : index
    %c0_203 = arith.constant 0 : index
    %c0_204 = arith.constant 0 : index
    %292 = vector.load %arg6[%c2_202, %c0_203, %c0_204] : memref<4x16x24xf32, #tpu.memory_space<vmem>>, vector<1x16x24xf32>
    %293 = vector.shape_cast %292 : vector<1x16x24xf32> to vector<16x24xf32>
    %cst_205 = arith.constant dense<0.000000e+00> : vector<7x24xf32>
    %294 = tpu.matmul %257, %293, %cst_205 {dimension_numbers = #tpu.dot_dimension_numbers<[1], [0], [0], [1], [0, 0, 1, 1], [], []>} : vector<7x16xf32>, vector<16x24xf32>, vector<7x24xf32> -> vector<7x24xf32>
    %c2_206 = arith.constant 2 : index
    %c0_207 = arith.constant 0 : index
    %c0_208 = arith.constant 0 : index
    %295 = vector.load %arg4[%c2_206, %c0_207, %c0_208] : memref<4x24x24xf32, #tpu.memory_space<vmem>>, vector<1x24x24xf32>
    %296 = vector.shape_cast %295 : vector<1x24x24xf32> to vector<24x24xf32>
    %cst_209 = arith.constant dense<0.000000e+00> : vector<7x24xf32>
    %297 = tpu.matmul %256, %296, %cst_209 {dimension_numbers = #tpu.dot_dimension_numbers<[1], [0], [0], [1], [0, 0, 1, 1], [], []>} : vector<7x24xf32>, vector<24x24xf32>, vector<7x24xf32> -> vector<7x24xf32>
    %298 = arith.addf %294, %297 : vector<7x24xf32>
    %c2_210 = arith.constant 2 : index
    %c0_211 = arith.constant 0 : index
    %c0_212 = arith.constant 0 : index
    %299 = vector.load %arg7[%c2_210, %c0_211, %c0_212] : memref<4x1x24xf32, #tpu.memory_space<vmem>>, vector<1x1x24xf32>
    %300 = vector.shape_cast %299 : vector<1x1x24xf32> to vector<1x24xf32>
    %301 = vector.broadcast %300 : vector<1x24xf32> to vector<7x24xf32>
    %302 = arith.addf %298, %301 : vector<7x24xf32>
    %303 = math.tanh %302 : vector<7x24xf32>
    %c3_213 = arith.constant 3 : index
    %c0_214 = arith.constant 0 : index
    %c0_215 = arith.constant 0 : index
    %304 = vector.load %arg6[%c3_213, %c0_214, %c0_215] : memref<4x16x24xf32, #tpu.memory_space<vmem>>, vector<1x16x24xf32>
    %305 = vector.shape_cast %304 : vector<1x16x24xf32> to vector<16x24xf32>
    %cst_216 = arith.constant dense<0.000000e+00> : vector<7x24xf32>
    %306 = tpu.matmul %257, %305, %cst_216 {dimension_numbers = #tpu.dot_dimension_numbers<[1], [0], [0], [1], [0, 0, 1, 1], [], []>} : vector<7x16xf32>, vector<16x24xf32>, vector<7x24xf32> -> vector<7x24xf32>
    %c3_217 = arith.constant 3 : index
    %c0_218 = arith.constant 0 : index
    %c0_219 = arith.constant 0 : index
    %307 = vector.load %arg4[%c3_217, %c0_218, %c0_219] : memref<4x24x24xf32, #tpu.memory_space<vmem>>, vector<1x24x24xf32>
    %308 = vector.shape_cast %307 : vector<1x24x24xf32> to vector<24x24xf32>
    %cst_220 = arith.constant dense<0.000000e+00> : vector<7x24xf32>
    %309 = tpu.matmul %256, %308, %cst_220 {dimension_numbers = #tpu.dot_dimension_numbers<[1], [0], [0], [1], [0, 0, 1, 1], [], []>} : vector<7x24xf32>, vector<24x24xf32>, vector<7x24xf32> -> vector<7x24xf32>
    %310 = arith.addf %306, %309 : vector<7x24xf32>
    %c3_221 = arith.constant 3 : index
    %c0_222 = arith.constant 0 : index
    %c0_223 = arith.constant 0 : index
    %311 = vector.load %arg7[%c3_221, %c0_222, %c0_223] : memref<4x1x24xf32, #tpu.memory_space<vmem>>, vector<1x1x24xf32>
    %312 = vector.shape_cast %311 : vector<1x1x24xf32> to vector<1x24xf32>
    %313 = vector.broadcast %312 : vector<1x24xf32> to vector<7x24xf32>
    %314 = arith.addf %310, %313 : vector<7x24xf32>
    %cst_224 = arith.constant 0.000000e+00 : f32
    %315 = vector.broadcast %cst_224 : f32 to vector<7x24xf32>
    %316 = arith.subf %315, %314 : vector<7x24xf32>
    %317 = math.exp %316 : vector<7x24xf32>
    %cst_225 = arith.constant 1.000000e+00 : f32
    %318 = vector.broadcast %cst_225 : f32 to vector<7x24xf32>
    %319 = arith.addf %318, %317 : vector<7x24xf32>
    %320 = tpu.reciprocal %319 {approx = true} : vector<7x24xf32> -> vector<7x24xf32>
    %321 = arith.mulf %291, %256 : vector<7x24xf32>
    %322 = arith.mulf %274, %303 : vector<7x24xf32>
    %323 = arith.addf %321, %322 : vector<7x24xf32>
    %324 = math.tanh %323 : vector<7x24xf32>
    %325 = arith.mulf %320, %324 : vector<7x24xf32>
    %c1_226 = arith.constant 1 : index
    %c0_227 = arith.constant 0 : index
    %c0_228 = arith.constant 0 : index
    %326 = vector.load %arg8[%c1_226, %c0_227, %c0_228] : memref<2x7x24xf32, #tpu.memory_space<vmem>>, vector<1x7x24xf32>
    %327 = vector.shape_cast %326 : vector<1x7x24xf32> to vector<7x24xf32>
    %328 = vector.shape_cast %325 : vector<7x24xf32> to vector<1x7x24xf32>
    tpu.vector_store %arg8[%c1_226, %c0_227, %c0_228], %328 {strides = array<i32>} : memref<2x7x24xf32, #tpu.memory_space<vmem>>, vector<1x7x24xf32>,
    return
  }
}

module attributes {stable_mosaic.version = 11 : i64} {
  func.func @kernel(%arg0: memref<2x8x16xf32, #tpu.memory_space<vmem>>, %arg1: memref<2x4x16xf32, #tpu.memory_space<vmem>>, %arg2: memref<2x4x8xf32, #tpu.memory_space<vmem>>, %arg3: memref<2x16x16xf32, #tpu.memory_space<vmem>>, %arg4: memref<1x1x16xf32, #tpu.memory_space<vmem>>, %arg5: memref<2x16x16xf32, #tpu.memory_space<vmem>>, %arg6: memref<1x1x16xf32, #tpu.memory_space<vmem>>, %arg7: memref<2x16x16xf32, #tpu.memory_space<vmem>>, %arg8: memref<1x1x16xf32, #tpu.memory_space<vmem>>, %arg9: memref<2x16x16xf32, #tpu.memory_space<vmem>>, %arg10: memref<1x1x16xf32, #tpu.memory_space<vmem>>, %arg11: memref<2x16x3xf32, #tpu.memory_space<vmem>>, %arg12: memref<1x1x3xf32, #tpu.memory_space<vmem>>, %arg13: memref<2x4x3xf32, #tpu.memory_space<vmem>>) attributes {dimension_semantics = [], scalar_prefetch = 0 : i64, scratch_operands = 0 : i64, tpu.core_type = #tpu.core_type<tc>} {
    %c0 = arith.constant 0 : index
    %c0_0 = arith.constant 0 : index
    %c0_1 = arith.constant 0 : index
    %0 = vector.load %arg0[%c0, %c0_0, %c0_1] : memref<2x8x16xf32, #tpu.memory_space<vmem>>, vector<2x8x16xf32>
    %c0_2 = arith.constant 0 : index
    %c0_3 = arith.constant 0 : index
    %c0_4 = arith.constant 0 : index
    %1 = vector.load %arg1[%c0_2, %c0_3, %c0_4] : memref<2x4x16xf32, #tpu.memory_space<vmem>>, vector<2x4x16xf32>
    %c0_5 = arith.constant 0 : index
    %c0_6 = arith.constant 0 : index
    %c0_7 = arith.constant 0 : index
    %2 = vector.load %arg3[%c0_5, %c0_6, %c0_7] : memref<2x16x16xf32, #tpu.memory_space<vmem>>, vector<2x16x16xf32>
    "tpu.trace_start"() <{level = 10 : i32, message = "blf,bfg->blg"}> : () -> ()
    %cst = arith.constant dense<0.000000e+00> : vector<2x8x16xf32>
    %3 = tpu.matmul %0, %2, %cst {dimension_numbers = #tpu.dot_dimension_numbers<[2], [1], [1], [2], [0, 0, 0, 1, 1, 2], [0], [0]>} : vector<2x8x16xf32>, vector<2x16x16xf32>, vector<2x8x16xf32> -> vector<2x8x16xf32>
    "tpu.trace_stop"() : () -> ()
    %c0_8 = arith.constant 0 : index
    %c0_9 = arith.constant 0 : index
    %c0_10 = arith.constant 0 : index
    %4 = vector.load %arg4[%c0_8, %c0_9, %c0_10] : memref<1x1x16xf32, #tpu.memory_space<vmem>>, vector<1x1x16xf32>
    %5 = vector.broadcast %4 : vector<1x1x16xf32> to vector<2x8x16xf32>
    %6 = arith.addf %3, %5 : vector<2x8x16xf32>
    "tpu.trace_start"() <{level = 10 : i32, message = "bif,blf->bil"}> : () -> ()
    %cst_11 = arith.constant dense<0.000000e+00> : vector<2x4x8xf32>
    %7 = tpu.matmul %1, %6, %cst_11 {dimension_numbers = #tpu.dot_dimension_numbers<[2], [2], [1], [1], [0, 0, 0, 1, 1, 1], [0], [0]>} : vector<2x4x16xf32>, vector<2x8x16xf32>, vector<2x4x8xf32> -> vector<2x4x8xf32>
    "tpu.trace_stop"() : () -> ()
    %c0_12 = arith.constant 0 : index
    %c0_13 = arith.constant 0 : index
    %c0_14 = arith.constant 0 : index
    %8 = vector.load %arg2[%c0_12, %c0_13, %c0_14] : memref<2x4x8xf32, #tpu.memory_space<vmem>>, vector<2x4x8xf32>
    %cst_15 = arith.constant 5.000000e-01 : f32
    %9 = vector.broadcast %cst_15 : f32 to vector<2x4x8xf32>
    %10 = arith.cmpf ogt, %8, %9 : vector<2x4x8xf32>
    %cst_16 = arith.constant -1.000000e+02 : f32
    %11 = vector.broadcast %cst_16 : f32 to vector<2x4x8xf32>
    %12 = arith.select %10, %7, %11 : vector<2x4x8xi1>, vector<2x4x8xf32>
    %cst_17 = arith.constant dense<0xFF800000> : vector<2x4xf32>
    %13 = vector.multi_reduction <maximumf>, %12, %cst_17 [2] : vector<2x4x8xf32> to vector<2x4xf32>
    %14 = vector.shape_cast %13 : vector<2x4xf32> to vector<2x4x1xf32>
    %15 = vector.broadcast %14 : vector<2x4x1xf32> to vector<2x4x8xf32>
    %16 = arith.subf %12, %15 : vector<2x4x8xf32>
    %17 = math.exp %16 : vector<2x4x8xf32>
    %cst_18 = arith.constant dense<0.000000e+00> : vector<2x4xf32>
    %18 = vector.multi_reduction <add>, %17, %cst_18 [2] : vector<2x4x8xf32> to vector<2x4xf32>
    %19 = vector.shape_cast %18 : vector<2x4xf32> to vector<2x4x1xf32>
    %20 = tpu.reciprocal %19 {approx = true} : vector<2x4x1xf32> -> vector<2x4x1xf32>
    %21 = vector.broadcast %20 : vector<2x4x1xf32> to vector<2x4x8xf32>
    %22 = arith.mulf %17, %21 : vector<2x4x8xf32>
    "tpu.trace_start"() <{level = 10 : i32, message = "bil,blf->bif"}> : () -> ()
    %cst_19 = arith.constant dense<0.000000e+00> : vector<2x4x16xf32>
    %23 = tpu.matmul %22, %0, %cst_19 {dimension_numbers = #tpu.dot_dimension_numbers<[2], [1], [1], [2], [0, 0, 0, 1, 1, 2], [0], [0]>} : vector<2x4x8xf32>, vector<2x8x16xf32>, vector<2x4x16xf32> -> vector<2x4x16xf32>
    "tpu.trace_stop"() : () -> ()
    %c0_20 = arith.constant 0 : index
    %c0_21 = arith.constant 0 : index
    %c0_22 = arith.constant 0 : index
    %24 = vector.load %arg5[%c0_20, %c0_21, %c0_22] : memref<2x16x16xf32, #tpu.memory_space<vmem>>, vector<2x16x16xf32>
    "tpu.trace_start"() <{level = 10 : i32, message = "bif,bfg->big"}> : () -> ()
    %cst_23 = arith.constant dense<0.000000e+00> : vector<2x4x16xf32>
    %25 = tpu.matmul %23, %24, %cst_23 {dimension_numbers = #tpu.dot_dimension_numbers<[2], [1], [1], [2], [0, 0, 0, 1, 1, 2], [0], [0]>} : vector<2x4x16xf32>, vector<2x16x16xf32>, vector<2x4x16xf32> -> vector<2x4x16xf32>
    "tpu.trace_stop"() : () -> ()
    %c0_24 = arith.constant 0 : index
    %c0_25 = arith.constant 0 : index
    %c0_26 = arith.constant 0 : index
    %26 = vector.load %arg6[%c0_24, %c0_25, %c0_26] : memref<1x1x16xf32, #tpu.memory_space<vmem>>, vector<1x1x16xf32>
    %27 = vector.broadcast %26 : vector<1x1x16xf32> to vector<2x4x16xf32>
    %28 = arith.addf %25, %27 : vector<2x4x16xf32>
    %c0_27 = arith.constant 0 : index
    %c0_28 = arith.constant 0 : index
    %c0_29 = arith.constant 0 : index
    %29 = vector.load %arg7[%c0_27, %c0_28, %c0_29] : memref<2x16x16xf32, #tpu.memory_space<vmem>>, vector<2x16x16xf32>
    "tpu.trace_start"() <{level = 10 : i32, message = "bif,bfg->big"}> : () -> ()
    %cst_30 = arith.constant dense<0.000000e+00> : vector<2x4x16xf32>
    %30 = tpu.matmul %1, %29, %cst_30 {dimension_numbers = #tpu.dot_dimension_numbers<[2], [1], [1], [2], [0, 0, 0, 1, 1, 2], [0], [0]>} : vector<2x4x16xf32>, vector<2x16x16xf32>, vector<2x4x16xf32> -> vector<2x4x16xf32>
    "tpu.trace_stop"() : () -> ()
    %31 = arith.addf %28, %30 : vector<2x4x16xf32>
    %c0_31 = arith.constant 0 : index
    %c0_32 = arith.constant 0 : index
    %c0_33 = arith.constant 0 : index
    %32 = vector.load %arg8[%c0_31, %c0_32, %c0_33] : memref<1x1x16xf32, #tpu.memory_space<vmem>>, vector<1x1x16xf32>
    %33 = vector.broadcast %32 : vector<1x1x16xf32> to vector<2x4x16xf32>
    %34 = arith.addf %31, %33 : vector<2x4x16xf32>
    %c0_34 = arith.constant 0 : index
    %c0_35 = arith.constant 0 : index
    %c0_36 = arith.constant 0 : index
    %35 = vector.load %arg9[%c0_34, %c0_35, %c0_36] : memref<2x16x16xf32, #tpu.memory_space<vmem>>, vector<2x16x16xf32>
    "tpu.trace_start"() <{level = 10 : i32, message = "bif,bfg->big"}> : () -> ()
    %cst_37 = arith.constant dense<0.000000e+00> : vector<2x4x16xf32>
    %36 = tpu.matmul %34, %35, %cst_37 {dimension_numbers = #tpu.dot_dimension_numbers<[2], [1], [1], [2], [0, 0, 0, 1, 1, 2], [0], [0]>} : vector<2x4x16xf32>, vector<2x16x16xf32>, vector<2x4x16xf32> -> vector<2x4x16xf32>
    "tpu.trace_stop"() : () -> ()
    %c0_38 = arith.constant 0 : index
    %c0_39 = arith.constant 0 : index
    %c0_40 = arith.constant 0 : index
    %37 = vector.load %arg10[%c0_38, %c0_39, %c0_40] : memref<1x1x16xf32, #tpu.memory_space<vmem>>, vector<1x1x16xf32>
    %38 = vector.broadcast %37 : vector<1x1x16xf32> to vector<2x4x16xf32>
    %39 = arith.addf %36, %38 : vector<2x4x16xf32>
    %40 = math.tanh %39 : vector<2x4x16xf32>
    %c0_41 = arith.constant 0 : index
    %c0_42 = arith.constant 0 : index
    %c0_43 = arith.constant 0 : index
    %41 = vector.load %arg11[%c0_41, %c0_42, %c0_43] : memref<2x16x3xf32, #tpu.memory_space<vmem>>, vector<2x16x3xf32>
    "tpu.trace_start"() <{level = 10 : i32, message = "bif,bfg->big"}> : () -> ()
    %cst_44 = arith.constant dense<0.000000e+00> : vector<2x4x3xf32>
    %42 = tpu.matmul %40, %41, %cst_44 {dimension_numbers = #tpu.dot_dimension_numbers<[2], [1], [1], [2], [0, 0, 0, 1, 1, 2], [0], [0]>} : vector<2x4x16xf32>, vector<2x16x3xf32>, vector<2x4x3xf32> -> vector<2x4x3xf32>
    "tpu.trace_stop"() : () -> ()
    %c0_45 = arith.constant 0 : index
    %c0_46 = arith.constant 0 : index
    %c0_47 = arith.constant 0 : index
    %43 = vector.load %arg12[%c0_45, %c0_46, %c0_47] : memref<1x1x3xf32, #tpu.memory_space<vmem>>, vector<1x1x3xf32>
    %44 = vector.broadcast %43 : vector<1x1x3xf32> to vector<2x4x3xf32>
    %45 = arith.addf %42, %44 : vector<2x4x3xf32>
    %c0_48 = arith.constant 0 : index
    %c0_49 = arith.constant 0 : index
    %c0_50 = arith.constant 0 : index
    %46 = vector.load %arg13[%c0_48, %c0_49, %c0_50] : memref<2x4x3xf32, #tpu.memory_space<vmem>>, vector<2x4x3xf32>
    tpu.vector_store %arg13[%c0_48, %c0_49, %c0_50], %45 {strides = array<i32>} : memref<2x4x3xf32, #tpu.memory_space<vmem>>, vector<2x4x3xf32>,
    return
  }
}

module attributes {stable_mosaic.version = 11 : i64} {
  func.func @kernel(%arg0: memref<1xf32, #tpu.memory_space<smem>>, %arg1: memref<3x8x12xf32, #tpu.memory_space<vmem>>, %arg2: memref<8x8x16xf32, #tpu.memory_space<vmem>>, %arg3: memref<8x16xf32, #tpu.memory_space<vmem>>, %arg4: memref<8x8x1xf32, #tpu.memory_space<vmem>>, %arg5: memref<4x12x16xf32, #tpu.memory_space<vmem>>, %arg6: memref<4x16x16xf32, #tpu.memory_space<vmem>>, %arg7: memref<4x1x16xf32, #tpu.memory_space<vmem>>, %arg8: memref<16x16xf32, #tpu.memory_space<vmem>>, %arg9: memref<1x16xf32, #tpu.memory_space<vmem>>, %arg10: memref<8x16x16xf32, #tpu.memory_space<vmem>>, %arg11: memref<1x1x16xf32, #tpu.memory_space<vmem>>, %arg12: memref<16x16xf32, #tpu.memory_space<vmem>>, %arg13: memref<1x16xf32, #tpu.memory_space<vmem>>, %arg14: memref<8x16x1xf32, #tpu.memory_space<vmem>>, %arg15: memref<3x8x8x1xf32, #tpu.memory_space<vmem>>) attributes {dimension_semantics = [], scalar_prefetch = 0 : i64, scratch_operands = 0 : i64, tpu.core_type = #tpu.core_type<tc>} {
    %c0 = arith.constant 0 : index
    %c0_0 = arith.constant 0 : index
    %c0_1 = arith.constant 0 : index
    %0 = vector.load %arg2[%c0, %c0_0, %c0_1] : memref<8x8x16xf32, #tpu.memory_space<vmem>>, vector<8x8x16xf32>
    %c0_2 = arith.constant 0 : index
    %c0_3 = arith.constant 0 : index
    %c0_4 = arith.constant 0 : index
    %1 = vector.load %arg10[%c0_2, %c0_3, %c0_4] : memref<8x16x16xf32, #tpu.memory_space<vmem>>, vector<8x16x16xf32>
    "tpu.trace_start"() <{level = 10 : i32, message = "nlf,nfg->nlg"}> : () -> ()
    %cst = arith.constant dense<0.000000e+00> : vector<8x8x16xf32>
    %2 = tpu.matmul %0, %1, %cst {dimension_numbers = #tpu.dot_dimension_numbers<[2], [1], [1], [2], [0, 0, 0, 1, 1, 2], [0], [0]>} : vector<8x8x16xf32>, vector<8x16x16xf32>, vector<8x8x16xf32> -> vector<8x8x16xf32>
    "tpu.trace_stop"() : () -> ()
    %c0_5 = arith.constant 0 : index
    %c0_6 = arith.constant 0 : index
    %c0_7 = arith.constant 0 : index
    %3 = vector.load %arg11[%c0_5, %c0_6, %c0_7] : memref<1x1x16xf32, #tpu.memory_space<vmem>>, vector<1x1x16xf32>
    %4 = vector.broadcast %3 : vector<1x1x16xf32> to vector<8x8x16xf32>
    %5 = arith.addf %2, %4 : vector<8x8x16xf32>
    %c0_8 = arith.constant 0 : index
    %c0_9 = arith.constant 0 : index
    %6 = vector.load %arg3[%c0_8, %c0_9] : memref<8x16xf32, #tpu.memory_space<vmem>>, vector<8x16xf32>
    %c0_10 = arith.constant 0 : index
    %c0_11 = arith.constant 0 : index
    %7 = vector.load %arg12[%c0_10, %c0_11] : memref<16x16xf32, #tpu.memory_space<vmem>>, vector<16x16xf32>
    %cst_12 = arith.constant dense<0.000000e+00> : vector<8x16xf32>
    %8 = tpu.matmul %6, %7, %cst_12 {dimension_numbers = #tpu.dot_dimension_numbers<[1], [0], [0], [1], [0, 0, 1, 1], [], []>} : vector<8x16xf32>, vector<16x16xf32>, vector<8x16xf32> -> vector<8x16xf32>
    %c0_13 = arith.constant 0 : index
    %c0_14 = arith.constant 0 : index
    %9 = vector.load %arg13[%c0_13, %c0_14] : memref<1x16xf32, #tpu.memory_space<vmem>>, vector<1x16xf32>
    %10 = vector.broadcast %9 : vector<1x16xf32> to vector<8x16xf32>
    %11 = arith.addf %8, %10 : vector<8x16xf32>
    %cst_15 = arith.constant 0.000000e+00 : f32
    %12 = vector.broadcast %cst_15 : f32 to vector<8x16xf32>
    %cst_16 = arith.constant 0.000000e+00 : f32
    %13 = vector.broadcast %cst_16 : f32 to vector<8x16xf32>
    %c0_17 = arith.constant 0 : index
    %c0_18 = arith.constant 0 : index
    %c0_19 = arith.constant 0 : index
    %14 = vector.load %arg1[%c0_17, %c0_18, %c0_19] : memref<3x8x12xf32, #tpu.memory_space<vmem>>, vector<1x8x12xf32>
    %15 = vector.shape_cast %14 : vector<1x8x12xf32> to vector<8x12xf32>
    %c0_20 = arith.constant 0 : index
    %c0_21 = arith.constant 0 : index
    %c0_22 = arith.constant 0 : index
    %16 = vector.load %arg5[%c0_20, %c0_21, %c0_22] : memref<4x12x16xf32, #tpu.memory_space<vmem>>, vector<1x12x16xf32>
    %17 = vector.shape_cast %16 : vector<1x12x16xf32> to vector<12x16xf32>
    %cst_23 = arith.constant dense<0.000000e+00> : vector<8x16xf32>
    %18 = tpu.matmul %15, %17, %cst_23 {dimension_numbers = #tpu.dot_dimension_numbers<[1], [0], [0], [1], [0, 0, 1, 1], [], []>} : vector<8x12xf32>, vector<12x16xf32>, vector<8x16xf32> -> vector<8x16xf32>
    %c0_24 = arith.constant 0 : index
    %c0_25 = arith.constant 0 : index
    %c0_26 = arith.constant 0 : index
    %19 = vector.load %arg6[%c0_24, %c0_25, %c0_26] : memref<4x16x16xf32, #tpu.memory_space<vmem>>, vector<1x16x16xf32>
    %20 = vector.shape_cast %19 : vector<1x16x16xf32> to vector<16x16xf32>
    %cst_27 = arith.constant dense<0.000000e+00> : vector<8x16xf32>
    %21 = tpu.matmul %12, %20, %cst_27 {dimension_numbers = #tpu.dot_dimension_numbers<[1], [0], [0], [1], [0, 0, 1, 1], [], []>} : vector<8x16xf32>, vector<16x16xf32>, vector<8x16xf32> -> vector<8x16xf32>
    %22 = arith.addf %18, %21 : vector<8x16xf32>
    %c0_28 = arith.constant 0 : index
    %c0_29 = arith.constant 0 : index
    %c0_30 = arith.constant 0 : index
    %23 = vector.load %arg7[%c0_28, %c0_29, %c0_30] : memref<4x1x16xf32, #tpu.memory_space<vmem>>, vector<1x1x16xf32>
    %24 = vector.shape_cast %23 : vector<1x1x16xf32> to vector<1x16xf32>
    %25 = vector.broadcast %24 : vector<1x16xf32> to vector<8x16xf32>
    %26 = arith.addf %22, %25 : vector<8x16xf32>
    %cst_31 = arith.constant 0.000000e+00 : f32
    %27 = vector.broadcast %cst_31 : f32 to vector<8x16xf32>
    %28 = arith.subf %27, %26 : vector<8x16xf32>
    %29 = math.exp %28 : vector<8x16xf32>
    %cst_32 = arith.constant 1.000000e+00 : f32
    %30 = vector.broadcast %cst_32 : f32 to vector<8x16xf32>
    %31 = arith.addf %30, %29 : vector<8x16xf32>
    %32 = tpu.reciprocal %31 {approx = true} : vector<8x16xf32> -> vector<8x16xf32>
    %c1 = arith.constant 1 : index
    %c0_33 = arith.constant 0 : index
    %c0_34 = arith.constant 0 : index
    %33 = vector.load %arg5[%c1, %c0_33, %c0_34] : memref<4x12x16xf32, #tpu.memory_space<vmem>>, vector<1x12x16xf32>
    %34 = vector.shape_cast %33 : vector<1x12x16xf32> to vector<12x16xf32>
    %cst_35 = arith.constant dense<0.000000e+00> : vector<8x16xf32>
    %35 = tpu.matmul %15, %34, %cst_35 {dimension_numbers = #tpu.dot_dimension_numbers<[1], [0], [0], [1], [0, 0, 1, 1], [], []>} : vector<8x12xf32>, vector<12x16xf32>, vector<8x16xf32> -> vector<8x16xf32>
    %c1_36 = arith.constant 1 : index
    %c0_37 = arith.constant 0 : index
    %c0_38 = arith.constant 0 : index
    %36 = vector.load %arg6[%c1_36, %c0_37, %c0_38] : memref<4x16x16xf32, #tpu.memory_space<vmem>>, vector<1x16x16xf32>
    %37 = vector.shape_cast %36 : vector<1x16x16xf32> to vector<16x16xf32>
    %cst_39 = arith.constant dense<0.000000e+00> : vector<8x16xf32>
    %38 = tpu.matmul %12, %37, %cst_39 {dimension_numbers = #tpu.dot_dimension_numbers<[1], [0], [0], [1], [0, 0, 1, 1], [], []>} : vector<8x16xf32>, vector<16x16xf32>, vector<8x16xf32> -> vector<8x16xf32>
    %39 = arith.addf %35, %38 : vector<8x16xf32>
    %c1_40 = arith.constant 1 : index
    %c0_41 = arith.constant 0 : index
    %c0_42 = arith.constant 0 : index
    %40 = vector.load %arg7[%c1_40, %c0_41, %c0_42] : memref<4x1x16xf32, #tpu.memory_space<vmem>>, vector<1x1x16xf32>
    %41 = vector.shape_cast %40 : vector<1x1x16xf32> to vector<1x16xf32>
    %42 = vector.broadcast %41 : vector<1x16xf32> to vector<8x16xf32>
    %43 = arith.addf %39, %42 : vector<8x16xf32>
    %cst_43 = arith.constant 0.000000e+00 : f32
    %44 = vector.broadcast %cst_43 : f32 to vector<8x16xf32>
    %45 = arith.subf %44, %43 : vector<8x16xf32>
    %46 = math.exp %45 : vector<8x16xf32>
    %cst_44 = arith.constant 1.000000e+00 : f32
    %47 = vector.broadcast %cst_44 : f32 to vector<8x16xf32>
    %48 = arith.addf %47, %46 : vector<8x16xf32>
    %49 = tpu.reciprocal %48 {approx = true} : vector<8x16xf32> -> vector<8x16xf32>
    %c2 = arith.constant 2 : index
    %c0_45 = arith.constant 0 : index
    %c0_46 = arith.constant 0 : index
    %50 = vector.load %arg5[%c2, %c0_45, %c0_46] : memref<4x12x16xf32, #tpu.memory_space<vmem>>, vector<1x12x16xf32>
    %51 = vector.shape_cast %50 : vector<1x12x16xf32> to vector<12x16xf32>
    %cst_47 = arith.constant dense<0.000000e+00> : vector<8x16xf32>
    %52 = tpu.matmul %15, %51, %cst_47 {dimension_numbers = #tpu.dot_dimension_numbers<[1], [0], [0], [1], [0, 0, 1, 1], [], []>} : vector<8x12xf32>, vector<12x16xf32>, vector<8x16xf32> -> vector<8x16xf32>
    %c2_48 = arith.constant 2 : index
    %c0_49 = arith.constant 0 : index
    %c0_50 = arith.constant 0 : index
    %53 = vector.load %arg6[%c2_48, %c0_49, %c0_50] : memref<4x16x16xf32, #tpu.memory_space<vmem>>, vector<1x16x16xf32>
    %54 = vector.shape_cast %53 : vector<1x16x16xf32> to vector<16x16xf32>
    %cst_51 = arith.constant dense<0.000000e+00> : vector<8x16xf32>
    %55 = tpu.matmul %12, %54, %cst_51 {dimension_numbers = #tpu.dot_dimension_numbers<[1], [0], [0], [1], [0, 0, 1, 1], [], []>} : vector<8x16xf32>, vector<16x16xf32>, vector<8x16xf32> -> vector<8x16xf32>
    %56 = arith.addf %52, %55 : vector<8x16xf32>
    %c2_52 = arith.constant 2 : index
    %c0_53 = arith.constant 0 : index
    %c0_54 = arith.constant 0 : index
    %57 = vector.load %arg7[%c2_52, %c0_53, %c0_54] : memref<4x1x16xf32, #tpu.memory_space<vmem>>, vector<1x1x16xf32>
    %58 = vector.shape_cast %57 : vector<1x1x16xf32> to vector<1x16xf32>
    %59 = vector.broadcast %58 : vector<1x16xf32> to vector<8x16xf32>
    %60 = arith.addf %56, %59 : vector<8x16xf32>
    %61 = math.tanh %60 : vector<8x16xf32>
    %c3 = arith.constant 3 : index
    %c0_55 = arith.constant 0 : index
    %c0_56 = arith.constant 0 : index
    %62 = vector.load %arg5[%c3, %c0_55, %c0_56] : memref<4x12x16xf32, #tpu.memory_space<vmem>>, vector<1x12x16xf32>
    %63 = vector.shape_cast %62 : vector<1x12x16xf32> to vector<12x16xf32>
    %cst_57 = arith.constant dense<0.000000e+00> : vector<8x16xf32>
    %64 = tpu.matmul %15, %63, %cst_57 {dimension_numbers = #tpu.dot_dimension_numbers<[1], [0], [0], [1], [0, 0, 1, 1], [], []>} : vector<8x12xf32>, vector<12x16xf32>, vector<8x16xf32> -> vector<8x16xf32>
    %c3_58 = arith.constant 3 : index
    %c0_59 = arith.constant 0 : index
    %c0_60 = arith.constant 0 : index
    %65 = vector.load %arg6[%c3_58, %c0_59, %c0_60] : memref<4x16x16xf32, #tpu.memory_space<vmem>>, vector<1x16x16xf32>
    %66 = vector.shape_cast %65 : vector<1x16x16xf32> to vector<16x16xf32>
    %cst_61 = arith.constant dense<0.000000e+00> : vector<8x16xf32>
    %67 = tpu.matmul %12, %66, %cst_61 {dimension_numbers = #tpu.dot_dimension_numbers<[1], [0], [0], [1], [0, 0, 1, 1], [], []>} : vector<8x16xf32>, vector<16x16xf32>, vector<8x16xf32> -> vector<8x16xf32>
    %68 = arith.addf %64, %67 : vector<8x16xf32>
    %c3_62 = arith.constant 3 : index
    %c0_63 = arith.constant 0 : index
    %c0_64 = arith.constant 0 : index
    %69 = vector.load %arg7[%c3_62, %c0_63, %c0_64] : memref<4x1x16xf32, #tpu.memory_space<vmem>>, vector<1x1x16xf32>
    %70 = vector.shape_cast %69 : vector<1x1x16xf32> to vector<1x16xf32>
    %71 = vector.broadcast %70 : vector<1x16xf32> to vector<8x16xf32>
    %72 = arith.addf %68, %71 : vector<8x16xf32>
    %cst_65 = arith.constant 0.000000e+00 : f32
    %73 = vector.broadcast %cst_65 : f32 to vector<8x16xf32>
    %74 = arith.subf %73, %72 : vector<8x16xf32>
    %75 = math.exp %74 : vector<8x16xf32>
    %cst_66 = arith.constant 1.000000e+00 : f32
    %76 = vector.broadcast %cst_66 : f32 to vector<8x16xf32>
    %77 = arith.addf %76, %75 : vector<8x16xf32>
    %78 = tpu.reciprocal %77 {approx = true} : vector<8x16xf32> -> vector<8x16xf32>
    %79 = arith.mulf %49, %13 : vector<8x16xf32>
    %80 = arith.mulf %32, %61 : vector<8x16xf32>
    %81 = arith.addf %79, %80 : vector<8x16xf32>
    %82 = math.tanh %81 : vector<8x16xf32>
    %83 = arith.mulf %78, %82 : vector<8x16xf32>
    %c0_67 = arith.constant 0 : index
    %c0_68 = arith.constant 0 : index
    %84 = vector.load %arg8[%c0_67, %c0_68] : memref<16x16xf32, #tpu.memory_space<vmem>>, vector<16x16xf32>
    %cst_69 = arith.constant dense<0.000000e+00> : vector<8x16xf32>
    %85 = tpu.matmul %83, %84, %cst_69 {dimension_numbers = #tpu.dot_dimension_numbers<[1], [0], [0], [1], [0, 0, 1, 1], [], []>} : vector<8x16xf32>, vector<16x16xf32>, vector<8x16xf32> -> vector<8x16xf32>
    %c0_70 = arith.constant 0 : index
    %c0_71 = arith.constant 0 : index
    %86 = vector.load %arg9[%c0_70, %c0_71] : memref<1x16xf32, #tpu.memory_space<vmem>>, vector<1x16xf32>
    %87 = vector.broadcast %86 : vector<1x16xf32> to vector<8x16xf32>
    %88 = arith.addf %85, %87 : vector<8x16xf32>
    %89 = arith.addf %88, %11 : vector<8x16xf32>
    %90 = vector.shape_cast %89 : vector<8x16xf32> to vector<8x1x16xf32>
    %91 = vector.broadcast %90 : vector<8x1x16xf32> to vector<8x8x16xf32>
    %92 = arith.addf %91, %5 : vector<8x8x16xf32>
    %cst_72 = arith.constant 0.000000e+00 : f32
    %93 = vector.broadcast %cst_72 : f32 to vector<8x8x16xf32>
    %94 = arith.maximumf %92, %93 : vector<8x8x16xf32>
    %c0_73 = arith.constant 0 : index
    %c0_74 = arith.constant 0 : index
    %c0_75 = arith.constant 0 : index
    %95 = vector.load %arg14[%c0_73, %c0_74, %c0_75] : memref<8x16x1xf32, #tpu.memory_space<vmem>>, vector<8x16x1xf32>
    "tpu.trace_start"() <{level = 10 : i32, message = "nlf,nfk->nlk"}> : () -> ()
    %cst_76 = arith.constant dense<0.000000e+00> : vector<8x8x1xf32>
    %96 = tpu.matmul %94, %95, %cst_76 {dimension_numbers = #tpu.dot_dimension_numbers<[2], [1], [1], [2], [0, 0, 0, 1, 1, 2], [0], [0]>} : vector<8x8x16xf32>, vector<8x16x1xf32>, vector<8x8x1xf32> -> vector<8x8x1xf32>
    "tpu.trace_stop"() : () -> ()
    %c0_77 = arith.constant 0 : index
    %97 = memref.load %arg0[%c0_77] : memref<1xf32, #tpu.memory_space<smem>>
    %98 = vector.broadcast %97 : f32 to vector<8x8x1xf32>
    %99 = arith.addf %96, %98 : vector<8x8x1xf32>
    %c0_78 = arith.constant 0 : index
    %c0_79 = arith.constant 0 : index
    %c0_80 = arith.constant 0 : index
    %100 = vector.load %arg4[%c0_78, %c0_79, %c0_80] : memref<8x8x1xf32, #tpu.memory_space<vmem>>, vector<8x8x1xf32>
    %cst_81 = arith.constant 5.000000e-01 : f32
    %101 = vector.broadcast %cst_81 : f32 to vector<8x8x1xf32>
    %102 = arith.cmpf ogt, %100, %101 : vector<8x8x1xf32>
    %cst_82 = arith.constant -1.000000e+02 : f32
    %103 = vector.broadcast %cst_82 : f32 to vector<8x8x1xf32>
    %104 = arith.select %102, %99, %103 : vector<8x8x1xi1>, vector<8x8x1xf32>
    %c0_83 = arith.constant 0 : index
    %c0_84 = arith.constant 0 : index
    %c0_85 = arith.constant 0 : index
    %c0_86 = arith.constant 0 : index
    %105 = vector.load %arg15[%c0_83, %c0_84, %c0_85, %c0_86] : memref<3x8x8x1xf32, #tpu.memory_space<vmem>>, vector<1x8x8x1xf32>
    %106 = vector.shape_cast %105 : vector<1x8x8x1xf32> to vector<8x8x1xf32>
    %107 = vector.shape_cast %104 : vector<8x8x1xf32> to vector<1x8x8x1xf32>
    tpu.vector_store %arg15[%c0_83, %c0_84, %c0_85, %c0_86], %107 {strides = array<i32>} : memref<3x8x8x1xf32, #tpu.memory_space<vmem>>, vector<1x8x8x1xf32>,
    %c1_87 = arith.constant 1 : index
    %c0_88 = arith.constant 0 : index
    %c0_89 = arith.constant 0 : index
    %108 = vector.load %arg1[%c1_87, %c0_88, %c0_89] : memref<3x8x12xf32, #tpu.memory_space<vmem>>, vector<1x8x12xf32>
    %109 = vector.shape_cast %108 : vector<1x8x12xf32> to vector<8x12xf32>
    %c0_90 = arith.constant 0 : index
    %c0_91 = arith.constant 0 : index
    %c0_92 = arith.constant 0 : index
    %110 = vector.load %arg5[%c0_90, %c0_91, %c0_92] : memref<4x12x16xf32, #tpu.memory_space<vmem>>, vector<1x12x16xf32>
    %111 = vector.shape_cast %110 : vector<1x12x16xf32> to vector<12x16xf32>
    %cst_93 = arith.constant dense<0.000000e+00> : vector<8x16xf32>
    %112 = tpu.matmul %109, %111, %cst_93 {dimension_numbers = #tpu.dot_dimension_numbers<[1], [0], [0], [1], [0, 0, 1, 1], [], []>} : vector<8x12xf32>, vector<12x16xf32>, vector<8x16xf32> -> vector<8x16xf32>
    %c0_94 = arith.constant 0 : index
    %c0_95 = arith.constant 0 : index
    %c0_96 = arith.constant 0 : index
    %113 = vector.load %arg6[%c0_94, %c0_95, %c0_96] : memref<4x16x16xf32, #tpu.memory_space<vmem>>, vector<1x16x16xf32>
    %114 = vector.shape_cast %113 : vector<1x16x16xf32> to vector<16x16xf32>
    %cst_97 = arith.constant dense<0.000000e+00> : vector<8x16xf32>
    %115 = tpu.matmul %83, %114, %cst_97 {dimension_numbers = #tpu.dot_dimension_numbers<[1], [0], [0], [1], [0, 0, 1, 1], [], []>} : vector<8x16xf32>, vector<16x16xf32>, vector<8x16xf32> -> vector<8x16xf32>
    %116 = arith.addf %112, %115 : vector<8x16xf32>
    %c0_98 = arith.constant 0 : index
    %c0_99 = arith.constant 0 : index
    %c0_100 = arith.constant 0 : index
    %117 = vector.load %arg7[%c0_98, %c0_99, %c0_100] : memref<4x1x16xf32, #tpu.memory_space<vmem>>, vector<1x1x16xf32>
    %118 = vector.shape_cast %117 : vector<1x1x16xf32> to vector<1x16xf32>
    %119 = vector.broadcast %118 : vector<1x16xf32> to vector<8x16xf32>
    %120 = arith.addf %116, %119 : vector<8x16xf32>
    %cst_101 = arith.constant 0.000000e+00 : f32
    %121 = vector.broadcast %cst_101 : f32 to vector<8x16xf32>
    %122 = arith.subf %121, %120 : vector<8x16xf32>
    %123 = math.exp %122 : vector<8x16xf32>
    %cst_102 = arith.constant 1.000000e+00 : f32
    %124 = vector.broadcast %cst_102 : f32 to vector<8x16xf32>
    %125 = arith.addf %124, %123 : vector<8x16xf32>
    %126 = tpu.reciprocal %125 {approx = true} : vector<8x16xf32> -> vector<8x16xf32>
    %c1_103 = arith.constant 1 : index
    %c0_104 = arith.constant 0 : index
    %c0_105 = arith.constant 0 : index
    %127 = vector.load %arg5[%c1_103, %c0_104, %c0_105] : memref<4x12x16xf32, #tpu.memory_space<vmem>>, vector<1x12x16xf32>
    %128 = vector.shape_cast %127 : vector<1x12x16xf32> to vector<12x16xf32>
    %cst_106 = arith.constant dense<0.000000e+00> : vector<8x16xf32>
    %129 = tpu.matmul %109, %128, %cst_106 {dimension_numbers = #tpu.dot_dimension_numbers<[1], [0], [0], [1], [0, 0, 1, 1], [], []>} : vector<8x12xf32>, vector<12x16xf32>, vector<8x16xf32> -> vector<8x16xf32>
    %c1_107 = arith.constant 1 : index
    %c0_108 = arith.constant 0 : index
    %c0_109 = arith.constant 0 : index
    %130 = vector.load %arg6[%c1_107, %c0_108, %c0_109] : memref<4x16x16xf32, #tpu.memory_space<vmem>>, vector<1x16x16xf32>
    %131 = vector.shape_cast %130 : vector<1x16x16xf32> to vector<16x16xf32>
    %cst_110 = arith.constant dense<0.000000e+00> : vector<8x16xf32>
    %132 = tpu.matmul %83, %131, %cst_110 {dimension_numbers = #tpu.dot_dimension_numbers<[1], [0], [0], [1], [0, 0, 1, 1], [], []>} : vector<8x16xf32>, vector<16x16xf32>, vector<8x16xf32> -> vector<8x16xf32>
    %133 = arith.addf %129, %132 : vector<8x16xf32>
    %c1_111 = arith.constant 1 : index
    %c0_112 = arith.constant 0 : index
    %c0_113 = arith.constant 0 : index
    %134 = vector.load %arg7[%c1_111, %c0_112, %c0_113] : memref<4x1x16xf32, #tpu.memory_space<vmem>>, vector<1x1x16xf32>
    %135 = vector.shape_cast %134 : vector<1x1x16xf32> to vector<1x16xf32>
    %136 = vector.broadcast %135 : vector<1x16xf32> to vector<8x16xf32>
    %137 = arith.addf %133, %136 : vector<8x16xf32>
    %cst_114 = arith.constant 0.000000e+00 : f32
    %138 = vector.broadcast %cst_114 : f32 to vector<8x16xf32>
    %139 = arith.subf %138, %137 : vector<8x16xf32>
    %140 = math.exp %139 : vector<8x16xf32>
    %cst_115 = arith.constant 1.000000e+00 : f32
    %141 = vector.broadcast %cst_115 : f32 to vector<8x16xf32>
    %142 = arith.addf %141, %140 : vector<8x16xf32>
    %143 = tpu.reciprocal %142 {approx = true} : vector<8x16xf32> -> vector<8x16xf32>
    %c2_116 = arith.constant 2 : index
    %c0_117 = arith.constant 0 : index
    %c0_118 = arith.constant 0 : index
    %144 = vector.load %arg5[%c2_116, %c0_117, %c0_118] : memref<4x12x16xf32, #tpu.memory_space<vmem>>, vector<1x12x16xf32>
    %145 = vector.shape_cast %144 : vector<1x12x16xf32> to vector<12x16xf32>
    %cst_119 = arith.constant dense<0.000000e+00> : vector<8x16xf32>
    %146 = tpu.matmul %109, %145, %cst_119 {dimension_numbers = #tpu.dot_dimension_numbers<[1], [0], [0], [1], [0, 0, 1, 1], [], []>} : vector<8x12xf32>, vector<12x16xf32>, vector<8x16xf32> -> vector<8x16xf32>
    %c2_120 = arith.constant 2 : index
    %c0_121 = arith.constant 0 : index
    %c0_122 = arith.constant 0 : index
    %147 = vector.load %arg6[%c2_120, %c0_121, %c0_122] : memref<4x16x16xf32, #tpu.memory_space<vmem>>, vector<1x16x16xf32>
    %148 = vector.shape_cast %147 : vector<1x16x16xf32> to vector<16x16xf32>
    %cst_123 = arith.constant dense<0.000000e+00> : vector<8x16xf32>
    %149 = tpu.matmul %83, %148, %cst_123 {dimension_numbers = #tpu.dot_dimension_numbers<[1], [0], [0], [1], [0, 0, 1, 1], [], []>} : vector<8x16xf32>, vector<16x16xf32>, vector<8x16xf32> -> vector<8x16xf32>
    %150 = arith.addf %146, %149 : vector<8x16xf32>
    %c2_124 = arith.constant 2 : index
    %c0_125 = arith.constant 0 : index
    %c0_126 = arith.constant 0 : index
    %151 = vector.load %arg7[%c2_124, %c0_125, %c0_126] : memref<4x1x16xf32, #tpu.memory_space<vmem>>, vector<1x1x16xf32>
    %152 = vector.shape_cast %151 : vector<1x1x16xf32> to vector<1x16xf32>
    %153 = vector.broadcast %152 : vector<1x16xf32> to vector<8x16xf32>
    %154 = arith.addf %150, %153 : vector<8x16xf32>
    %155 = math.tanh %154 : vector<8x16xf32>
    %c3_127 = arith.constant 3 : index
    %c0_128 = arith.constant 0 : index
    %c0_129 = arith.constant 0 : index
    %156 = vector.load %arg5[%c3_127, %c0_128, %c0_129] : memref<4x12x16xf32, #tpu.memory_space<vmem>>, vector<1x12x16xf32>
    %157 = vector.shape_cast %156 : vector<1x12x16xf32> to vector<12x16xf32>
    %cst_130 = arith.constant dense<0.000000e+00> : vector<8x16xf32>
    %158 = tpu.matmul %109, %157, %cst_130 {dimension_numbers = #tpu.dot_dimension_numbers<[1], [0], [0], [1], [0, 0, 1, 1], [], []>} : vector<8x12xf32>, vector<12x16xf32>, vector<8x16xf32> -> vector<8x16xf32>
    %c3_131 = arith.constant 3 : index
    %c0_132 = arith.constant 0 : index
    %c0_133 = arith.constant 0 : index
    %159 = vector.load %arg6[%c3_131, %c0_132, %c0_133] : memref<4x16x16xf32, #tpu.memory_space<vmem>>, vector<1x16x16xf32>
    %160 = vector.shape_cast %159 : vector<1x16x16xf32> to vector<16x16xf32>
    %cst_134 = arith.constant dense<0.000000e+00> : vector<8x16xf32>
    %161 = tpu.matmul %83, %160, %cst_134 {dimension_numbers = #tpu.dot_dimension_numbers<[1], [0], [0], [1], [0, 0, 1, 1], [], []>} : vector<8x16xf32>, vector<16x16xf32>, vector<8x16xf32> -> vector<8x16xf32>
    %162 = arith.addf %158, %161 : vector<8x16xf32>
    %c3_135 = arith.constant 3 : index
    %c0_136 = arith.constant 0 : index
    %c0_137 = arith.constant 0 : index
    %163 = vector.load %arg7[%c3_135, %c0_136, %c0_137] : memref<4x1x16xf32, #tpu.memory_space<vmem>>, vector<1x1x16xf32>
    %164 = vector.shape_cast %163 : vector<1x1x16xf32> to vector<1x16xf32>
    %165 = vector.broadcast %164 : vector<1x16xf32> to vector<8x16xf32>
    %166 = arith.addf %162, %165 : vector<8x16xf32>
    %cst_138 = arith.constant 0.000000e+00 : f32
    %167 = vector.broadcast %cst_138 : f32 to vector<8x16xf32>
    %168 = arith.subf %167, %166 : vector<8x16xf32>
    %169 = math.exp %168 : vector<8x16xf32>
    %cst_139 = arith.constant 1.000000e+00 : f32
    %170 = vector.broadcast %cst_139 : f32 to vector<8x16xf32>
    %171 = arith.addf %170, %169 : vector<8x16xf32>
    %172 = tpu.reciprocal %171 {approx = true} : vector<8x16xf32> -> vector<8x16xf32>
    %173 = arith.mulf %143, %81 : vector<8x16xf32>
    %174 = arith.mulf %126, %155 : vector<8x16xf32>
    %175 = arith.addf %173, %174 : vector<8x16xf32>
    %176 = math.tanh %175 : vector<8x16xf32>
    %177 = arith.mulf %172, %176 : vector<8x16xf32>
    %c0_140 = arith.constant 0 : index
    %c0_141 = arith.constant 0 : index
    %178 = vector.load %arg8[%c0_140, %c0_141] : memref<16x16xf32, #tpu.memory_space<vmem>>, vector<16x16xf32>
    %cst_142 = arith.constant dense<0.000000e+00> : vector<8x16xf32>
    %179 = tpu.matmul %177, %178, %cst_142 {dimension_numbers = #tpu.dot_dimension_numbers<[1], [0], [0], [1], [0, 0, 1, 1], [], []>} : vector<8x16xf32>, vector<16x16xf32>, vector<8x16xf32> -> vector<8x16xf32>
    %c0_143 = arith.constant 0 : index
    %c0_144 = arith.constant 0 : index
    %180 = vector.load %arg9[%c0_143, %c0_144] : memref<1x16xf32, #tpu.memory_space<vmem>>, vector<1x16xf32>
    %181 = vector.broadcast %180 : vector<1x16xf32> to vector<8x16xf32>
    %182 = arith.addf %179, %181 : vector<8x16xf32>
    %183 = arith.addf %182, %11 : vector<8x16xf32>
    %184 = vector.shape_cast %183 : vector<8x16xf32> to vector<8x1x16xf32>
    %185 = vector.broadcast %184 : vector<8x1x16xf32> to vector<8x8x16xf32>
    %186 = arith.addf %185, %5 : vector<8x8x16xf32>
    %cst_145 = arith.constant 0.000000e+00 : f32
    %187 = vector.broadcast %cst_145 : f32 to vector<8x8x16xf32>
    %188 = arith.maximumf %186, %187 : vector<8x8x16xf32>
    %c0_146 = arith.constant 0 : index
    %c0_147 = arith.constant 0 : index
    %c0_148 = arith.constant 0 : index
    %189 = vector.load %arg14[%c0_146, %c0_147, %c0_148] : memref<8x16x1xf32, #tpu.memory_space<vmem>>, vector<8x16x1xf32>
    "tpu.trace_start"() <{level = 10 : i32, message = "nlf,nfk->nlk"}> : () -> ()
    %cst_149 = arith.constant dense<0.000000e+00> : vector<8x8x1xf32>
    %190 = tpu.matmul %188, %189, %cst_149 {dimension_numbers = #tpu.dot_dimension_numbers<[2], [1], [1], [2], [0, 0, 0, 1, 1, 2], [0], [0]>} : vector<8x8x16xf32>, vector<8x16x1xf32>, vector<8x8x1xf32> -> vector<8x8x1xf32>
    "tpu.trace_stop"() : () -> ()
    %c0_150 = arith.constant 0 : index
    %191 = memref.load %arg0[%c0_150] : memref<1xf32, #tpu.memory_space<smem>>
    %192 = vector.broadcast %191 : f32 to vector<8x8x1xf32>
    %193 = arith.addf %190, %192 : vector<8x8x1xf32>
    %c0_151 = arith.constant 0 : index
    %c0_152 = arith.constant 0 : index
    %c0_153 = arith.constant 0 : index
    %194 = vector.load %arg4[%c0_151, %c0_152, %c0_153] : memref<8x8x1xf32, #tpu.memory_space<vmem>>, vector<8x8x1xf32>
    %cst_154 = arith.constant 5.000000e-01 : f32
    %195 = vector.broadcast %cst_154 : f32 to vector<8x8x1xf32>
    %196 = arith.cmpf ogt, %194, %195 : vector<8x8x1xf32>
    %cst_155 = arith.constant -1.000000e+02 : f32
    %197 = vector.broadcast %cst_155 : f32 to vector<8x8x1xf32>
    %198 = arith.select %196, %193, %197 : vector<8x8x1xi1>, vector<8x8x1xf32>
    %c1_156 = arith.constant 1 : index
    %c0_157 = arith.constant 0 : index
    %c0_158 = arith.constant 0 : index
    %c0_159 = arith.constant 0 : index
    %199 = vector.load %arg15[%c1_156, %c0_157, %c0_158, %c0_159] : memref<3x8x8x1xf32, #tpu.memory_space<vmem>>, vector<1x8x8x1xf32>
    %200 = vector.shape_cast %199 : vector<1x8x8x1xf32> to vector<8x8x1xf32>
    %201 = vector.shape_cast %198 : vector<8x8x1xf32> to vector<1x8x8x1xf32>
    tpu.vector_store %arg15[%c1_156, %c0_157, %c0_158, %c0_159], %201 {strides = array<i32>} : memref<3x8x8x1xf32, #tpu.memory_space<vmem>>, vector<1x8x8x1xf32>,
    %c2_160 = arith.constant 2 : index
    %c0_161 = arith.constant 0 : index
    %c0_162 = arith.constant 0 : index
    %202 = vector.load %arg1[%c2_160, %c0_161, %c0_162] : memref<3x8x12xf32, #tpu.memory_space<vmem>>, vector<1x8x12xf32>
    %203 = vector.shape_cast %202 : vector<1x8x12xf32> to vector<8x12xf32>
    %c0_163 = arith.constant 0 : index
    %c0_164 = arith.constant 0 : index
    %c0_165 = arith.constant 0 : index
    %204 = vector.load %arg5[%c0_163, %c0_164, %c0_165] : memref<4x12x16xf32, #tpu.memory_space<vmem>>, vector<1x12x16xf32>
    %205 = vector.shape_cast %204 : vector<1x12x16xf32> to vector<12x16xf32>
    %cst_166 = arith.constant dense<0.000000e+00> : vector<8x16xf32>
    %206 = tpu.matmul %203, %205, %cst_166 {dimension_numbers = #tpu.dot_dimension_numbers<[1], [0], [0], [1], [0, 0, 1, 1], [], []>} : vector<8x12xf32>, vector<12x16xf32>, vector<8x16xf32> -> vector<8x16xf32>
    %c0_167 = arith.constant 0 : index
    %c0_168 = arith.constant 0 : index
    %c0_169 = arith.constant 0 : index
    %207 = vector.load %arg6[%c0_167, %c0_168, %c0_169] : memref<4x16x16xf32, #tpu.memory_space<vmem>>, vector<1x16x16xf32>
    %208 = vector.shape_cast %207 : vector<1x16x16xf32> to vector<16x16xf32>
    %cst_170 = arith.constant dense<0.000000e+00> : vector<8x16xf32>
    %209 = tpu.matmul %177, %208, %cst_170 {dimension_numbers = #tpu.dot_dimension_numbers<[1], [0], [0], [1], [0, 0, 1, 1], [], []>} : vector<8x16xf32>, vector<16x16xf32>, vector<8x16xf32> -> vector<8x16xf32>
    %210 = arith.addf %206, %209 : vector<8x16xf32>
    %c0_171 = arith.constant 0 : index
    %c0_172 = arith.constant 0 : index
    %c0_173 = arith.constant 0 : index
    %211 = vector.load %arg7[%c0_171, %c0_172, %c0_173] : memref<4x1x16xf32, #tpu.memory_space<vmem>>, vector<1x1x16xf32>
    %212 = vector.shape_cast %211 : vector<1x1x16xf32> to vector<1x16xf32>
    %213 = vector.broadcast %212 : vector<1x16xf32> to vector<8x16xf32>
    %214 = arith.addf %210, %213 : vector<8x16xf32>
    %cst_174 = arith.constant 0.000000e+00 : f32
    %215 = vector.broadcast %cst_174 : f32 to vector<8x16xf32>
    %216 = arith.subf %215, %214 : vector<8x16xf32>
    %217 = math.exp %216 : vector<8x16xf32>
    %cst_175 = arith.constant 1.000000e+00 : f32
    %218 = vector.broadcast %cst_175 : f32 to vector<8x16xf32>
    %219 = arith.addf %218, %217 : vector<8x16xf32>
    %220 = tpu.reciprocal %219 {approx = true} : vector<8x16xf32> -> vector<8x16xf32>
    %c1_176 = arith.constant 1 : index
    %c0_177 = arith.constant 0 : index
    %c0_178 = arith.constant 0 : index
    %221 = vector.load %arg5[%c1_176, %c0_177, %c0_178] : memref<4x12x16xf32, #tpu.memory_space<vmem>>, vector<1x12x16xf32>
    %222 = vector.shape_cast %221 : vector<1x12x16xf32> to vector<12x16xf32>
    %cst_179 = arith.constant dense<0.000000e+00> : vector<8x16xf32>
    %223 = tpu.matmul %203, %222, %cst_179 {dimension_numbers = #tpu.dot_dimension_numbers<[1], [0], [0], [1], [0, 0, 1, 1], [], []>} : vector<8x12xf32>, vector<12x16xf32>, vector<8x16xf32> -> vector<8x16xf32>
    %c1_180 = arith.constant 1 : index
    %c0_181 = arith.constant 0 : index
    %c0_182 = arith.constant 0 : index
    %224 = vector.load %arg6[%c1_180, %c0_181, %c0_182] : memref<4x16x16xf32, #tpu.memory_space<vmem>>, vector<1x16x16xf32>
    %225 = vector.shape_cast %224 : vector<1x16x16xf32> to vector<16x16xf32>
    %cst_183 = arith.constant dense<0.000000e+00> : vector<8x16xf32>
    %226 = tpu.matmul %177, %225, %cst_183 {dimension_numbers = #tpu.dot_dimension_numbers<[1], [0], [0], [1], [0, 0, 1, 1], [], []>} : vector<8x16xf32>, vector<16x16xf32>, vector<8x16xf32> -> vector<8x16xf32>
    %227 = arith.addf %223, %226 : vector<8x16xf32>
    %c1_184 = arith.constant 1 : index
    %c0_185 = arith.constant 0 : index
    %c0_186 = arith.constant 0 : index
    %228 = vector.load %arg7[%c1_184, %c0_185, %c0_186] : memref<4x1x16xf32, #tpu.memory_space<vmem>>, vector<1x1x16xf32>
    %229 = vector.shape_cast %228 : vector<1x1x16xf32> to vector<1x16xf32>
    %230 = vector.broadcast %229 : vector<1x16xf32> to vector<8x16xf32>
    %231 = arith.addf %227, %230 : vector<8x16xf32>
    %cst_187 = arith.constant 0.000000e+00 : f32
    %232 = vector.broadcast %cst_187 : f32 to vector<8x16xf32>
    %233 = arith.subf %232, %231 : vector<8x16xf32>
    %234 = math.exp %233 : vector<8x16xf32>
    %cst_188 = arith.constant 1.000000e+00 : f32
    %235 = vector.broadcast %cst_188 : f32 to vector<8x16xf32>
    %236 = arith.addf %235, %234 : vector<8x16xf32>
    %237 = tpu.reciprocal %236 {approx = true} : vector<8x16xf32> -> vector<8x16xf32>
    %c2_189 = arith.constant 2 : index
    %c0_190 = arith.constant 0 : index
    %c0_191 = arith.constant 0 : index
    %238 = vector.load %arg5[%c2_189, %c0_190, %c0_191] : memref<4x12x16xf32, #tpu.memory_space<vmem>>, vector<1x12x16xf32>
    %239 = vector.shape_cast %238 : vector<1x12x16xf32> to vector<12x16xf32>
    %cst_192 = arith.constant dense<0.000000e+00> : vector<8x16xf32>
    %240 = tpu.matmul %203, %239, %cst_192 {dimension_numbers = #tpu.dot_dimension_numbers<[1], [0], [0], [1], [0, 0, 1, 1], [], []>} : vector<8x12xf32>, vector<12x16xf32>, vector<8x16xf32> -> vector<8x16xf32>
    %c2_193 = arith.constant 2 : index
    %c0_194 = arith.constant 0 : index
    %c0_195 = arith.constant 0 : index
    %241 = vector.load %arg6[%c2_193, %c0_194, %c0_195] : memref<4x16x16xf32, #tpu.memory_space<vmem>>, vector<1x16x16xf32>
    %242 = vector.shape_cast %241 : vector<1x16x16xf32> to vector<16x16xf32>
    %cst_196 = arith.constant dense<0.000000e+00> : vector<8x16xf32>
    %243 = tpu.matmul %177, %242, %cst_196 {dimension_numbers = #tpu.dot_dimension_numbers<[1], [0], [0], [1], [0, 0, 1, 1], [], []>} : vector<8x16xf32>, vector<16x16xf32>, vector<8x16xf32> -> vector<8x16xf32>
    %244 = arith.addf %240, %243 : vector<8x16xf32>
    %c2_197 = arith.constant 2 : index
    %c0_198 = arith.constant 0 : index
    %c0_199 = arith.constant 0 : index
    %245 = vector.load %arg7[%c2_197, %c0_198, %c0_199] : memref<4x1x16xf32, #tpu.memory_space<vmem>>, vector<1x1x16xf32>
    %246 = vector.shape_cast %245 : vector<1x1x16xf32> to vector<1x16xf32>
    %247 = vector.broadcast %246 : vector<1x16xf32> to vector<8x16xf32>
    %248 = arith.addf %244, %247 : vector<8x16xf32>
    %249 = math.tanh %248 : vector<8x16xf32>
    %c3_200 = arith.constant 3 : index
    %c0_201 = arith.constant 0 : index
    %c0_202 = arith.constant 0 : index
    %250 = vector.load %arg5[%c3_200, %c0_201, %c0_202] : memref<4x12x16xf32, #tpu.memory_space<vmem>>, vector<1x12x16xf32>
    %251 = vector.shape_cast %250 : vector<1x12x16xf32> to vector<12x16xf32>
    %cst_203 = arith.constant dense<0.000000e+00> : vector<8x16xf32>
    %252 = tpu.matmul %203, %251, %cst_203 {dimension_numbers = #tpu.dot_dimension_numbers<[1], [0], [0], [1], [0, 0, 1, 1], [], []>} : vector<8x12xf32>, vector<12x16xf32>, vector<8x16xf32> -> vector<8x16xf32>
    %c3_204 = arith.constant 3 : index
    %c0_205 = arith.constant 0 : index
    %c0_206 = arith.constant 0 : index
    %253 = vector.load %arg6[%c3_204, %c0_205, %c0_206] : memref<4x16x16xf32, #tpu.memory_space<vmem>>, vector<1x16x16xf32>
    %254 = vector.shape_cast %253 : vector<1x16x16xf32> to vector<16x16xf32>
    %cst_207 = arith.constant dense<0.000000e+00> : vector<8x16xf32>
    %255 = tpu.matmul %177, %254, %cst_207 {dimension_numbers = #tpu.dot_dimension_numbers<[1], [0], [0], [1], [0, 0, 1, 1], [], []>} : vector<8x16xf32>, vector<16x16xf32>, vector<8x16xf32> -> vector<8x16xf32>
    %256 = arith.addf %252, %255 : vector<8x16xf32>
    %c3_208 = arith.constant 3 : index
    %c0_209 = arith.constant 0 : index
    %c0_210 = arith.constant 0 : index
    %257 = vector.load %arg7[%c3_208, %c0_209, %c0_210] : memref<4x1x16xf32, #tpu.memory_space<vmem>>, vector<1x1x16xf32>
    %258 = vector.shape_cast %257 : vector<1x1x16xf32> to vector<1x16xf32>
    %259 = vector.broadcast %258 : vector<1x16xf32> to vector<8x16xf32>
    %260 = arith.addf %256, %259 : vector<8x16xf32>
    %cst_211 = arith.constant 0.000000e+00 : f32
    %261 = vector.broadcast %cst_211 : f32 to vector<8x16xf32>
    %262 = arith.subf %261, %260 : vector<8x16xf32>
    %263 = math.exp %262 : vector<8x16xf32>
    %cst_212 = arith.constant 1.000000e+00 : f32
    %264 = vector.broadcast %cst_212 : f32 to vector<8x16xf32>
    %265 = arith.addf %264, %263 : vector<8x16xf32>
    %266 = tpu.reciprocal %265 {approx = true} : vector<8x16xf32> -> vector<8x16xf32>
    %267 = arith.mulf %237, %175 : vector<8x16xf32>
    %268 = arith.mulf %220, %249 : vector<8x16xf32>
    %269 = arith.addf %267, %268 : vector<8x16xf32>
    %270 = math.tanh %269 : vector<8x16xf32>
    %271 = arith.mulf %266, %270 : vector<8x16xf32>
    %c0_213 = arith.constant 0 : index
    %c0_214 = arith.constant 0 : index
    %272 = vector.load %arg8[%c0_213, %c0_214] : memref<16x16xf32, #tpu.memory_space<vmem>>, vector<16x16xf32>
    %cst_215 = arith.constant dense<0.000000e+00> : vector<8x16xf32>
    %273 = tpu.matmul %271, %272, %cst_215 {dimension_numbers = #tpu.dot_dimension_numbers<[1], [0], [0], [1], [0, 0, 1, 1], [], []>} : vector<8x16xf32>, vector<16x16xf32>, vector<8x16xf32> -> vector<8x16xf32>
    %c0_216 = arith.constant 0 : index
    %c0_217 = arith.constant 0 : index
    %274 = vector.load %arg9[%c0_216, %c0_217] : memref<1x16xf32, #tpu.memory_space<vmem>>, vector<1x16xf32>
    %275 = vector.broadcast %274 : vector<1x16xf32> to vector<8x16xf32>
    %276 = arith.addf %273, %275 : vector<8x16xf32>
    %277 = arith.addf %276, %11 : vector<8x16xf32>
    %278 = vector.shape_cast %277 : vector<8x16xf32> to vector<8x1x16xf32>
    %279 = vector.broadcast %278 : vector<8x1x16xf32> to vector<8x8x16xf32>
    %280 = arith.addf %279, %5 : vector<8x8x16xf32>
    %cst_218 = arith.constant 0.000000e+00 : f32
    %281 = vector.broadcast %cst_218 : f32 to vector<8x8x16xf32>
    %282 = arith.maximumf %280, %281 : vector<8x8x16xf32>
    %c0_219 = arith.constant 0 : index
    %c0_220 = arith.constant 0 : index
    %c0_221 = arith.constant 0 : index
    %283 = vector.load %arg14[%c0_219, %c0_220, %c0_221] : memref<8x16x1xf32, #tpu.memory_space<vmem>>, vector<8x16x1xf32>
    "tpu.trace_start"() <{level = 10 : i32, message = "nlf,nfk->nlk"}> : () -> ()
    %cst_222 = arith.constant dense<0.000000e+00> : vector<8x8x1xf32>
    %284 = tpu.matmul %282, %283, %cst_222 {dimension_numbers = #tpu.dot_dimension_numbers<[2], [1], [1], [2], [0, 0, 0, 1, 1, 2], [0], [0]>} : vector<8x8x16xf32>, vector<8x16x1xf32>, vector<8x8x1xf32> -> vector<8x8x1xf32>
    "tpu.trace_stop"() : () -> ()
    %c0_223 = arith.constant 0 : index
    %285 = memref.load %arg0[%c0_223] : memref<1xf32, #tpu.memory_space<smem>>
    %286 = vector.broadcast %285 : f32 to vector<8x8x1xf32>
    %287 = arith.addf %284, %286 : vector<8x8x1xf32>
    %c0_224 = arith.constant 0 : index
    %c0_225 = arith.constant 0 : index
    %c0_226 = arith.constant 0 : index
    %288 = vector.load %arg4[%c0_224, %c0_225, %c0_226] : memref<8x8x1xf32, #tpu.memory_space<vmem>>, vector<8x8x1xf32>
    %cst_227 = arith.constant 5.000000e-01 : f32
    %289 = vector.broadcast %cst_227 : f32 to vector<8x8x1xf32>
    %290 = arith.cmpf ogt, %288, %289 : vector<8x8x1xf32>
    %cst_228 = arith.constant -1.000000e+02 : f32
    %291 = vector.broadcast %cst_228 : f32 to vector<8x8x1xf32>
    %292 = arith.select %290, %287, %291 : vector<8x8x1xi1>, vector<8x8x1xf32>
    %c2_229 = arith.constant 2 : index
    %c0_230 = arith.constant 0 : index
    %c0_231 = arith.constant 0 : index
    %c0_232 = arith.constant 0 : index
    %293 = vector.load %arg15[%c2_229, %c0_230, %c0_231, %c0_232] : memref<3x8x8x1xf32, #tpu.memory_space<vmem>>, vector<1x8x8x1xf32>
    %294 = vector.shape_cast %293 : vector<1x8x8x1xf32> to vector<8x8x1xf32>
    %295 = vector.shape_cast %292 : vector<8x8x1xf32> to vector<1x8x8x1xf32>
    tpu.vector_store %arg15[%c2_229, %c0_230, %c0_231, %c0_232], %295 {strides = array<i32>} : memref<3x8x8x1xf32, #tpu.memory_space<vmem>>, vector<1x8x8x1xf32>,
    return
  }
}

</mosaic_0001>

<bundles_post_ra>
// kernel: fwd.6
= control target key start
LH: loop header
LB: loop body
LE: loop exit
PB: predicated region body
PF: predicated region fallthrough
CT: control target
= control target key end

     0   :  { %vm120_vm1 = vcmask 523264   ;;  %s264_s1 = inlined_call_operand.vmem [shape: f32[128,64], index: 1, kind: input, shape index: {}]   ;;  %s265_s0 = inlined_call_operand.vmem [shape: f32[16,128], index: 0, kind: input, shape index: {}]   ;;  %s266_s2 = inlined_call_operand.vmem [shape: f32[1,64], index: 2, kind: input, shape index: {}]   ;;  %s267_s3 = inlined_call_operand.vmem [shape: f32[16,64], index: 3, kind: output, shape index: {}]  }
   0x1   :  { %v31_v0 = vld [vmem:[%s264_s1 + $0x78] sm:$0xff]  ;;  %v30_v1 = vld [vmem:[%s264_s1 + $0x70] sm:$0xff]  ;;  %v29_v2 = vld [vmem:[%s264_s1 + $0x68] sm:$0xff] }
   0x2   :  { %146 = vmatprep.subr.mxu0 %v31_v0  ;;  %v28_v3 = vld [vmem:[%s264_s1 + $0x60] sm:$0xff]  ;;  %v27_v5 = vld [vmem:[%s264_s1 + $0x58] sm:$0xff]  ;;  %v26_v6 = vld [vmem:[%s264_s1 + $0x50] sm:$0xff] }
   0x3   :  { %147 = vmatpush3.msra.mxu0 %v31_v0  ;;  %v14_v4 = vld [vmem:[%s265_s0] sm:$0xff]  ;;  %v25_v7 = vld [vmem:[%s264_s1 + $0x48] sm:$0xff]  ;;  %v23_v9 = vld [vmem:[%s264_s1 + $0x38] sm:$0xff] }
   0x4   :  { %148 = vmatprep.subr.mxu0 %v30_v1  ;;  %178 = vmatprep.mubr.f32.mxu0 %v14_v4  ;;  %v24_v8 = vld [vmem:[%s264_s1 + $0x40] sm:$0xff]  ;;  %v22_v10 = vld [vmem:[%s264_s1 + $0x30] sm:$0xff]  ;;  %v21_v11 = vld [vmem:[%s264_s1 + $0x28] sm:$0xff] }
   0x5   :  { %149 = vmatpush3.msra.mxu0 %v30_v1  ;;  %v20_v12 = vld [vmem:[%s264_s1 + $0x20] sm:$0xff]  ;;  %v19_v13 = vld [vmem:[%s264_s1 + $0x18] sm:$0xff]  ;;  %v18_v14 = vld [vmem:[%s264_s1 + $0x10] sm:$0xff] }
   0x6   :  { %150 = vmatprep.subr.mxu0 %v29_v2  ;;  %v17_v15 = vld [vmem:[%s264_s1 + $0x8] sm:$0xff]  ;;  %v16_v16 = vld [vmem:[%s264_s1] sm:$0xff] }
   0x7   :  { %151 = vmatpush3.msra.mxu0 %v29_v2  ;;  %v15_v17 = vld [vmem:[%s265_s0 + $0x8] sm:$0xff]  ;;  %v127_v18 = vld [vmem:[%s266_s2] ss:$0 sm:$0xff] }
   0x8   :  { %152 = vmatprep.subr.mxu0 %v28_v3 }
   0x9   :  { %153 = vmatpush3.msra.mxu0 %v28_v3 }
   0xa   :  { %154 = vmatprep.subr.mxu0 %v27_v5 }
   0xb   :  { %155 = vmatpush3.msra.mxu0 %v27_v5 }
   0xc   :  { %156 = vmatprep.subr.mxu0 %v26_v6 }
   0xd   :  { %157 = vmatpush3.msra.mxu0 %v26_v6 }
   0xe   :  { %158 = vmatprep.subr.mxu0 %v25_v7 }
   0xf   :  { %159 = vmatpush3.msra.mxu0 %v25_v7 }
  0x10   :  { %160 = vmatprep.subr.mxu0 %v24_v8 }
  0x11   :  { %161 = vmatpush3.msra.mxu0 %v24_v8 }
  0x12   :  { %162 = vmatprep.subr.mxu0 %v23_v9 }
  0x13   :  { %163 = vmatpush3.msra.mxu0 %v23_v9 }
  0x14   :  { %164 = vmatprep.subr.mxu0 %v22_v10 }
  0x15   :  { %165 = vmatpush3.msra.mxu0 %v22_v10 }
  0x16   :  { %166 = vmatprep.subr.mxu0 %v21_v11 }
  0x17   :  { %167 = vmatpush3.msra.mxu0 %v21_v11 }
  0x18   :  { %168 = vmatprep.subr.mxu0 %v20_v12 }
  0x19   :  { %169 = vmatpush3.msra.mxu0 %v20_v12 }
  0x1a   :  { %170 = vmatprep.subr.mxu0 %v19_v13 }
  0x1b   :  { %171 = vmatpush3.msra.mxu0 %v19_v13 }
  0x1c   :  { %172 = vmatprep.subr.mxu0 %v18_v14 }
  0x1d   :  { %173 = vmatpush3.msra.mxu0 %v18_v14 }
  0x1e   :  { %174 = vmatprep.subr.mxu0 %v17_v15 }
  0x1f   :  { %175 = vmatpush3.msra.mxu0 %v17_v15 }
  0x20   :  { %176 = vmatprep.subr.mxu0 %v16_v16 }
  0x21   :  { %177 = vmatpush3.msra.mxu0 %v16_v16 }
  0x22   :  { %179 = vmatmul.mubr.f32.vlgmr.msra.gmra.mxu0 %v15_v17 }
  0xe2   :  { %v180_v19 = vpop.f32.mrf.mxu0 }
  0xe3   :  { %v111_v20 = vadd.f32 %v180_v19, %v127_v18 }
  0xe4   :  { %v105_v21 = vpop.f32.mrf.mxu0 }
  0xe5   :  { %vm115_vm0 = vcmp.ge.f32.partialorder %v111_v20, 0.0  ;;  %v117_v22 = vmul.f32 0.22916667, %v111_v20  ;;  %v106_v23 = vadd.f32 %v127_v18, %v105_v21 }
  0xe7   :  { %v119_v24 = vsel %vm115_vm0, %v111_v20, %v117_v22  ;;  %vm114_vm2 = vcmp.ge.f32.partialorder %v106_v23, 0.0  ;;  %v116_v25 = vmul.f32 0.22916667, %v106_v23 }
  0xe8   :  { %122 = vst.msk [vmem:[%s267_s3 + $0x8] sm:$0xff] %vm120_vm1, %v119_v24 }
  0xe9   :  { %v118_v26 = vsel %vm114_vm2, %v106_v23, %v116_v25 }
  0xea   :  { %121 = vst.msk [vmem:[%s267_s3] sm:$0xff] %vm120_vm1, %v118_v26 }

// kernel: fwd.8
= control target key start
LH: loop header
LB: loop body
LE: loop exit
PB: predicated region body
PF: predicated region fallthrough
CT: control target
= control target key end

     0   :  { %vm37_vm0 = vcmask 130048   ;;  %v806_v2 = vmov 0.0   ;;  %s950_s0 = inlined_call_operand.<no memory space> [shape: f32[1], index: 0, kind: input, shape index: {}]   ;;  %s951_s1 = inlined_call_operand.vmem [shape: f32[2,8,16], index: 1, kind: input, shape index: {}]   ;;  %s952_s2 = inlined_call_operand.vmem [shape: f32[2,1,8], index: 2, kind: input, shape index: {}]   ;;  %s953_s3 = inlined_call_operand.vmem [shape: f32[2,1,16], index: 3, kind: input, shape index: {}]   ;;  %s954_s4 = inlined_call_operand.vmem [shape: f32[2,16,16], index: 4, kind: input, shape index: {}]   ;;  %s955_s5 = inlined_call_operand.vmem [shape: f32[1,1,16], index: 5, kind: input, shape index: {}]   ;;  %s956_s6 = inlined_call_operand.vmem [shape: f32[2,16,5], index: 6, kind: input, shape index: {}]   ;;  %s957_s7 = inlined_call_operand.vmem [shape: f32[1,1,5], index: 7, kind: input, shape index: {}]   ;;  %s958_s8 = inlined_call_operand.hbm [shape: f32[2,1,5], index: 8, kind: output, shape index: {}]  }
   0x1   :  { %v31_v0 = vld [vmem:[%s951_s1] sm:$0xff]  ;;  %v32_v1 = vld [vmem:[%s951_s1 + $0x8] sm:$0xff]  ;;  %719 = vmatprep.subr.mxu0 %v806_v2  ;;  %724 = vmatprep.subr.mxu1 %v806_v2 }
   0x2   :  { %14 = vsyncpa [#allocation4], 0  ;;  %720 = vmatpush3.xpose.msk.msra.mxu0 %vm37_vm0, %v31_v0  ;;  %vm807_vm1 = vmmov 0   ;;  %v33_v3 = vld [vmem:[%s953_s3] sm:$0x1]  ;;  %725 = vmatpush3.xpose.msk.msra.mxu1 %vm37_vm0, %v32_v1  ;;  %v36_v6 = vstv %s950_s0  ;;  %vm196_vm3 = vcmask 57344  }
   0x3   :  { %721 = vmatprep.mubr.msk.f32.mxu0 %vm807_vm1, %v806_v2  ;;  %726 = vmatprep.mubr.msk.f32.mxu1 %vm807_vm1, %v806_v2  ;;  %v34_v4 = vld [vmem:[%s953_s3 + $0x1] sm:$0x1]  ;;  %v190_v5 = vld [vmem:[%s952_s2] sm:$0x1]  ;;  %vm219_vm5 = vcmask 64512   ;;  %v367_v32 = vld [vmem:[%s954_s4 + $0x8] sm:$0xff] }
   0x4   :  { %729 = vmatprep.subr.mxu0 %v806_v2  ;;  %734 = vmatprep.subr.mxu1 %v806_v2  ;;  %v191_v7 = vld [vmem:[%s952_s2 + $0x1] sm:$0x1]  ;;  %vm192_vm2 = vcmp.gt.f32.partialorder %v190_v5, 0.5  ;;  %v369_v36 = vld [vmem:[%s954_s4 + $0x18] sm:$0xff]  ;;  %v368_v37 = vld [vmem:[%s954_s4 + $0x10] sm:$0xff]  ;;  %vm670_vm6 = vcmask 32768  }
   0x5   :  { %722 = vmatmul.mubr.msk.f32.vlgmr.msra.gmra.mxu0 %vm37_vm0, %v33_v3  ;;  %727 = vmatmul.mubr.msk.f32.vlgmr.msra.gmra.mxu1 %vm37_vm0, %v34_v4  ;;  %vm193_vm4 = vcmp.gt.f32.partialorder %v191_v7, 0.5  ;;  %v366_v35 = vld [vmem:[%s954_s4] sm:$0xff]  ;;  %v520_v42 = vld [vmem:[%s956_s6 + $0x8] sm:$0xff]  ;;  %v522_v44 = vld [vmem:[%s956_s6 + $0x18] sm:$0xff] }
   0x6   :  { %730 = vmatpush3.msra.mxu0 %v31_v0  ;;  %731 = vmatprep.mubr.msk.f32.mxu0 %vm807_vm1, %v806_v2  ;;  %v519_v43 = vld [vmem:[%s956_s6] sm:$0xff]  ;;  %v521_v45 = vld [vmem:[%s956_s6 + $0x10] sm:$0xff] }
   0x7   :  { %735 = vmatpush3.msra.mxu1 %v32_v1  ;;  %736 = vmatprep.mubr.msk.f32.mxu1 %vm807_vm1, %v806_v2  ;;  %v370_v46 = vld [vmem:[%s955_s5] sm:$0x1]  ;;  %s808_s5 = smov [#allocation3]  }
   0x8   :  { %739 = vmatprep.subr.mxu0 %v806_v2  ;;  %746 = vmatprep.subr.mxu1 %v806_v2  ;;  %v523_v55 = vld [vmem:[%s957_s7] sm:$0x1]  ;;  %s678_s1 = sshll.u32 %s808_s5, 4  ;;  %s679_s1 = int_to_ptr.vmem [resolvable:$true] %s678_s1 }
   0x9   :  { %s784_s11 = scalar_lea.vmem %s679_s1, 32  ;;  %p789_p1 = scmp.lt.s32.totalorder %s679_s1, %s679_s1 }
   0xa   :  { %p785_p0 = scmp.ne.s32.totalorder %s679_s1, %s784_s11  ;;  %p790_p2 = scmp.lt.s32.totalorder %s784_s11, %s784_s11 }
   0xc   :  { %p791_p3 = por %p790_p2, %p789_p1 }
   0xe   :  { %p792_p4 = pnand %p791_p3, %p785_p0 }
  0xc5   :  { %v110_v8 = vpop.f32.mrf.mxu0  ;;  %v186_v10 = vpop.f32.mrf.mxu1 }
  0xc6   :  { %v111_v9 = vadd.f32 %v110_v8, %v36_v6  ;;  %v187_v12 = vadd.f32 %v186_v10, %v36_v6 }
  0xc7   :  { %v723_v11 = vpop.f32.mrf.mxu0  ;;  %v728_v13 = vpop.f32.mrf.mxu1 }
  0xc8   :  { %v194_v14 = vsel %vm192_vm2, %v111_v9, -100.0  ;;  %v195_v16 = vsel %vm193_vm4, %v187_v12, -100.0 }
  0xc9   :  { %v197_v15 = vsel %vm196_vm3, %v194_v14, -inf  ;;  %v200_v17 = vsel %vm196_vm3, %v195_v16, -inf }
  0xca   :  { %198 = vmax.xlane.f32.xlu0 %v197_v15 }
  0xce   :  { %201 = vmax.xlane.f32.xlu0 %v200_v17 }
 0x153   :  { %v199_v18 = vpop.xlane.xlu0 %198 }
 0x154   :  { %v203_v19 = vsub.f32 %v194_v14, %v199_v18 }
 0x156   :  { %v205_v20 = vmul.f32 1.442695, %v203_v19 }
 0x157   :  { %v202_v21 = vpop.xlane.xlu0 %201 }
 0x158   :  { %772 = vpow2.f32 %v205_v20  ;;  %v204_v22 = vsub.f32 %v195_v16, %v202_v21 }
 0x15a   :  { %v207_v23 = vmul.f32 1.442695, %v204_v22 }
 0x15c   :  { %774 = vpow2.f32 %v207_v23 }
 0x165   :  { %v773_v24 = vpop.eup %772 }
 0x166   :  { %v209_v25 = vsel %vm196_vm3, %v773_v24, 0.0 }
 0x167   :  { %210 = vadd.xlane.f32.xlu1 %v209_v25 }
 0x169   :  { %v775_v26 = vpop.eup %774 }
 0x16a   :  { %v212_v27 = vsel %vm196_vm3, %v775_v26, 0.0 }
 0x16b   :  { %213 = vadd.xlane.f32.xlu1 %v212_v27 }
 0x1f0   :  { %v211_v28 = vpop.xlane.xlu1 %210 }
 0x1f1   :  { %776 = vrcp.f32 %v211_v28 }
 0x1f4   :  { %v214_v29 = vpop.xlane.xlu1 %213 }
 0x1f5   :  { %778 = vrcp.f32 %v214_v29 }
 0x1fe   :  { %v777_v30 = vpop.eup %776 }
 0x1ff   :  { %v217_v31 = vmul.f32 %v777_v30, %v773_v24 }
 0x201   :  { %732 = vmatmul.mubr.msk.f32.vlgmr.msra.gmra.mxu0 %vm219_vm5, %v217_v31 }
 0x202   :  { %v779_v33 = vpop.eup %778  ;;  %740 = vmatpush3.msra.mxu0 %v367_v32  ;;  %743 = vmatprep.mubr.msk.f32.mxu0 %vm807_vm1, %v806_v2 }
 0x203   :  { %v218_v34 = vmul.f32 %v779_v33, %v775_v26  ;;  %741 = vmatprep.subr.mxu0 %v806_v2 }
 0x204   :  { %742 = vmatpush3.msra.mxu0 %v366_v35 }
 0x205   :  { %737 = vmatmul.mubr.msk.f32.vlgmr.msra.gmra.mxu1 %vm219_vm5, %v218_v34  ;;  %753 = vmatprep.subr.mxu0 %v806_v2 }
 0x206   :  { %750 = vmatprep.mubr.msk.f32.mxu1 %vm807_vm1, %v806_v2  ;;  %747 = vmatpush3.msra.mxu1 %v369_v36 }
 0x207   :  { %748 = vmatprep.subr.mxu1 %v806_v2 }
 0x208   :  { %749 = vmatpush3.msra.mxu1 %v368_v37 }
 0x209   :  { %760 = vmatprep.subr.mxu1 %v806_v2 }
 0x2c1   :  { %v289_v38 = vpop.f32.mrf.mxu0 }
 0x2c2   :  { %744 = vmatmul.mubr.msk.f32.vlgmr.msra.gmra.mxu0 %vm37_vm0, %v289_v38 }
 0x2c3   :  { %v733_v39 = vpop.f32.mrf.mxu0  ;;  %757 = vmatprep.mubr.msk.f32.mxu0 %vm807_vm1, %v806_v2  ;;  %754 = vmatpush3.msra.mxu0 %v520_v42 }
 0x2c4   :  { %755 = vmatprep.subr.mxu0 %v806_v2 }
 0x2c5   :  { %v362_v40 = vpop.f32.mrf.mxu1  ;;  %756 = vmatpush3.msra.mxu0 %v519_v43 }
 0x2c6   :  { %751 = vmatmul.mubr.msk.f32.vlgmr.msra.gmra.mxu1 %vm37_vm0, %v362_v40 }
 0x2c7   :  { %v738_v41 = vpop.f32.mrf.mxu1  ;;  %764 = vmatprep.mubr.msk.f32.mxu1 %vm807_vm1, %v806_v2  ;;  %761 = vmatpush3.msra.mxu1 %v522_v44 }
 0x2c8   :  { %762 = vmatprep.subr.mxu1 %v806_v2 }
 0x2c9   :  { %763 = vmatpush3.msra.mxu1 %v521_v45 }
 0x382   :  { %v440_v47 = vpop.f32.mrf.mxu0 }
 0x383   :  { %v441_v48 = vadd.f32 %v440_v47, %v370_v46 }
 0x384   :  { %v745_v49 = vpop.f32.mrf.mxu0 }
 0x385   :  { %780 = vtanh.f32 %v441_v48 }
 0x386   :  { %v513_v50 = vpop.f32.mrf.mxu1 }
 0x387   :  { %v514_v51 = vadd.f32 %v513_v50, %v370_v46 }
 0x388   :  { %v752_v52 = vpop.f32.mrf.mxu1 }
 0x389   :  { %782 = vtanh.f32 %v514_v51 }
 0x392   :  { %v781_v53 = vpop.eup %780 }
 0x393   :  { %758 = vmatmul.mubr.msk.f32.vlgmr.msra.gmra.mxu0 %vm37_vm0, %v781_v53 }
 0x396   :  { %v783_v54 = vpop.eup %782 }
 0x397   :  { %765 = vmatmul.mubr.msk.f32.vlgmr.msra.gmra.mxu1 %vm37_vm0, %v783_v54 }
 0x453   :  { %v593_v56 = vpop.f32.mrf.mxu0 }
 0x454   :  { %v594_v57 = vadd.f32 %v593_v56, %v523_v55 }
 0x455   :  { %v759_v58 = vpop.f32.mrf.mxu0 }
 0x456   :  { %671 = vst.msk [vmem:[#allocation3] sm:$0x1] %vm670_vm6, %v594_v57 }
 0x457   :  { %v666_v59 = vpop.f32.mrf.mxu1 }
 0x458   :  { %v667_v60 = vadd.f32 %v666_v59, %v523_v55 }
 0x459   :  { %v766_v61 = vpop.f32.mrf.mxu1 }
 0x45a   :  { %672 = vst.msk [vmem:[#allocation3 + $0x1] sm:$0x1] %vm670_vm6, %v667_v60 }
 0x45b   :  { %795 = shalt.err (!%p792_p4)
}
 0x45c   :  { %s809_s7 = smov 16   ;;  %s810_s3 = smov 1  }
 0x45d   :  { %684 = dma.vmem_to_hbm [thread:$0]  %s679_s1, 32, %s958_s8, [#allocation4], %s809_s7, %s809_s7, %s810_s3  }
 0x45e   :  { %804 = dma.done.wait [#allocation4], 32  }
 0x45f   :  { %805 = vsyncadd [#allocation4], 4294967264 }
 0x460   :  { %688 = vsyncpa [#allocation4], 1 }

// kernel: fwd.9
= control target key start
LH: loop header
LB: loop body
LE: loop exit
PB: predicated region body
PF: predicated region fallthrough
CT: control target
= control target key end

     0   :  { %vm40_vm0 = vcmask 130048   ;;  %v960_v0 = vmov 0.0   ;;  %vm961_vm1 = vmmov 0   ;;  %vm199_vm4 = vcmask 60416   ;;  %s1150_s2 = inlined_call_operand.vmem [shape: f32[2,8,16], index: 2, kind: input, shape index: {}]   ;;  %s1151_s1 = inlined_call_operand.vmem [shape: f32[2,4,16], index: 1, kind: input, shape index: {}]   ;;  %s1152_s3 = inlined_call_operand.vmem [shape: f32[2,4,8], index: 3, kind: input, shape index: {}]   ;;  %s1153_s5 = inlined_call_operand.vmem [shape: f32[2,16,16], index: 5, kind: input, shape index: {}]   ;;  %s1154_s7 = inlined_call_operand.vmem [shape: f32[2,16,16], index: 7, kind: input, shape index: {}]   ;;  %s1155_s9 = inlined_call_operand.vmem [shape: f32[2,16,1], index: 9, kind: input, shape index: {}]   ;;  %s1156_s6 = inlined_call_operand.vmem [shape: f32[1,1,16], index: 6, kind: input, shape index: {}]   ;;  %s1157_s8 = inlined_call_operand.vmem [shape: f32[1,1,16], index: 8, kind: input, shape index: {}]   ;;  %s1158_s4 = inlined_call_operand.vmem [shape: f32[2,4,1], index: 4, kind: input, shape index: {}]   ;;  %s1159_s0 = inlined_call_operand.<no memory space> [shape: f32[1], index: 0, kind: input, shape index: {}]   ;;  %s1160_s10 = inlined_call_operand.vmem [shape: f32[2,4,1], index: 10, kind: output, shape index: {}]  }
   0x1   :  { %888 = vmatprep.subr.mxu0 %v960_v0  ;;  %v38_v1 = vld [vmem:[%s1150_s2] sm:$0xff]  ;;  %893 = vmatprep.subr.mxu1 %v960_v0  ;;  %v39_v2 = vld [vmem:[%s1150_s2 + $0x8] sm:$0xff]  ;;  %vm222_vm5 = vcmask 64512   ;;  %v372_v33 = vld [vmem:[%s1153_s5 + $0x18] sm:$0xff]  ;;  %vm841_vm7 = vcmask 3072  }
   0x2   :  { %889 = vmatpush3.xpose.msk.msra.mxu0 %vm40_vm0, %v38_v1  ;;  %890 = vmatprep.mubr.msk.f32.mxu0 %vm961_vm1, %v960_v0  ;;  %v1031_v3 = vld [vmem:[%s1151_s1] sm:$0xf]  ;;  %v1039_v4 = vld [vmem:[%s1151_s1 + $0x4] sm:$0xf]  ;;  %v370_v29 = vld [vmem:[%s1153_s5 + $0x8] sm:$0xff] }
   0x3   :  { %894 = vmatpush3.xpose.msk.msra.mxu1 %vm40_vm0, %v39_v2  ;;  %895 = vmatprep.mubr.msk.f32.mxu1 %vm961_vm1, %v960_v0  ;;  %v193_v5 = vld [vmem:[%s1152_s3] sm:$0xf]  ;;  %v194_v6 = vld [vmem:[%s1152_s3 + $0x4] sm:$0xf]  ;;  %v371_v34 = vld [vmem:[%s1153_s5 + $0x10] sm:$0xff] }
   0x4   :  { %898 = vmatprep.subr.mxu0 %v960_v0  ;;  %903 = vmatprep.subr.mxu1 %v960_v0  ;;  %vm195_vm2 = vcmp.gt.f32.partialorder %v193_v5, 0.5  ;;  %vm196_vm3 = vcmp.gt.f32.partialorder %v194_v6, 0.5  ;;  %v369_v32 = vld [vmem:[%s1153_s5] sm:$0xff]  ;;  %v527_v35 = vld [vmem:[%s1154_s7 + $0x8] sm:$0xff]  ;;  %v529_v39 = vld [vmem:[%s1154_s7 + $0x18] sm:$0xff] }
   0x5   :  { %891 = vmatmul.mubr.msk.f32.vlgmr.msra.gmra.mxu0 %vm40_vm0, %v1031_v3  ;;  %v526_v37 = vld [vmem:[%s1154_s7] sm:$0xff]  ;;  %v528_v41 = vld [vmem:[%s1154_s7 + $0x10] sm:$0xff]  ;;  %v684_v43 = vld [vmem:[%s1155_s9 + $0x8] sm:$0xff] }
   0x6   :  { %896 = vmatmul.mubr.msk.f32.vlgmr.msra.gmra.mxu1 %vm40_vm0, %v1039_v4  ;;  %899 = vmatpush3.msra.mxu0 %v38_v1  ;;  %v683_v44 = vld [vmem:[%s1155_s9] sm:$0xff]  ;;  %v686_v45 = vld [vmem:[%s1155_s9 + $0x18] sm:$0xff]  ;;  %v685_v46 = vld [vmem:[%s1155_s9 + $0x10] sm:$0xff] }
   0x7   :  { %900 = vmatprep.mubr.msk.f32.mxu0 %vm961_vm1, %v960_v0  ;;  %904 = vmatpush3.msra.mxu1 %v39_v2  ;;  %v854_v47 = vld [vmem:[%s1156_s6] ss:$0 sm:$0xff]  ;;  %v688_v2 = vstv %s1159_s0  ;;  %v836_v5 = vld [vmem:[%s1158_s4 + $0x4] sm:$0xf] }
   0x8   :  { %905 = vmatprep.mubr.msk.f32.mxu1 %vm961_vm1, %v960_v0  ;;  %908 = vmatprep.subr.mxu0 %v960_v0  ;;  %v859_v53 = vld [vmem:[%s1157_s8] ss:$0 sm:$0xff]  ;;  %vm838_vm8 = vcmp.gt.f32.partialorder %v836_v5, 0.5 }
   0x9   :  { %915 = vmatprep.subr.mxu1 %v960_v0  ;;  %v835_v1 = vld [vmem:[%s1158_s4] sm:$0xf] }
   0xa   :  { %vm837_vm6 = vcmp.gt.f32.partialorder %v835_v1, 0.5 }
  0xc5   :  { %v113_v7 = vpop.f32.mrf.mxu0 }
  0xc6   :  { %v197_v8 = vsel %vm195_vm2, %v113_v7, -100.0  ;;  %v189_v9 = vpop.f32.mrf.mxu1 }
  0xc7   :  { %v892_v10 = vpop.f32.mrf.mxu0  ;;  %v198_v11 = vsel %vm196_vm3, %v189_v9, -100.0  ;;  %v200_v12 = vsel %vm199_vm4, %v197_v8, -inf }
  0xc8   :  { %201 = vmax.xlane.f32.xlu0 %v200_v12  ;;  %v897_v13 = vpop.f32.mrf.mxu1  ;;  %v203_v14 = vsel %vm199_vm4, %v198_v11, -inf }
  0xcc   :  { %204 = vmax.xlane.f32.xlu0 %v203_v14 }
 0x151   :  { %v202_v15 = vpop.xlane.xlu0 %201 }
 0x152   :  { %v206_v16 = vsub.f32 %v197_v8, %v202_v15 }
 0x154   :  { %v208_v17 = vmul.f32 1.442695, %v206_v16 }
 0x155   :  { %v205_v18 = vpop.xlane.xlu0 %204 }
 0x156   :  { %952 = vpow2.f32 %v208_v17  ;;  %v207_v19 = vsub.f32 %v198_v11, %v205_v18 }
 0x158   :  { %v210_v20 = vmul.f32 1.442695, %v207_v19 }
 0x15a   :  { %954 = vpow2.f32 %v210_v20 }
 0x163   :  { %v953_v21 = vpop.eup %952 }
 0x164   :  { %v212_v22 = vsel %vm199_vm4, %v953_v21, 0.0 }
 0x165   :  { %213 = vadd.xlane.f32.xlu1 %v212_v22 }
 0x167   :  { %v955_v23 = vpop.eup %954 }
 0x168   :  { %v215_v24 = vsel %vm199_vm4, %v955_v23, 0.0 }
 0x169   :  { %216 = vadd.xlane.f32.xlu1 %v215_v24 }
 0x1ee   :  { %v214_v25 = vpop.xlane.xlu1 %213 }
 0x1ef   :  { %956 = vrcp.f32 %v214_v25 }
 0x1f2   :  { %v217_v26 = vpop.xlane.xlu1 %216 }
 0x1f3   :  { %958 = vrcp.f32 %v217_v26 }
 0x1fc   :  { %v957_v27 = vpop.eup %956 }
 0x1fd   :  { %v220_v28 = vmul.f32 %v957_v27, %v953_v21 }
 0x1ff   :  { %901 = vmatmul.mubr.msk.f32.vlgmr.msra.gmra.mxu0 %vm222_vm5, %v220_v28 }
 0x200   :  { %v959_v30 = vpop.eup %958  ;;  %909 = vmatpush3.msra.mxu0 %v370_v29  ;;  %912 = vmatprep.mubr.msk.f32.mxu0 %vm961_vm1, %v960_v0 }
 0x201   :  { %v221_v31 = vmul.f32 %v959_v30, %v955_v23  ;;  %910 = vmatprep.subr.mxu0 %v960_v0 }
 0x202   :  { %911 = vmatpush3.msra.mxu0 %v369_v32 }
 0x203   :  { %906 = vmatmul.mubr.msk.f32.vlgmr.msra.gmra.mxu1 %vm222_vm5, %v221_v31  ;;  %922 = vmatprep.subr.mxu0 %v960_v0 }
 0x204   :  { %919 = vmatprep.mubr.msk.f32.mxu1 %vm961_vm1, %v960_v0  ;;  %916 = vmatpush3.msra.mxu1 %v372_v33 }
 0x205   :  { %917 = vmatprep.subr.mxu1 %v960_v0 }
 0x206   :  { %918 = vmatpush3.msra.mxu1 %v371_v34 }
 0x207   :  { %929 = vmatprep.subr.mxu1 %v960_v0 }
 0x2bf   :  { %v292_v36 = vpop.f32.mrf.mxu0 }
 0x2c0   :  { %913 = vmatmul.mubr.msk.f32.vlgmr.msra.gmra.mxu0 %vm40_vm0, %v292_v36 }
 0x2c1   :  { %v902_v38 = vpop.f32.mrf.mxu0  ;;  %923 = vmatpush3.msra.mxu0 %v527_v35  ;;  %926 = vmatprep.mubr.msk.f32.mxu0 %vm961_vm1, %v960_v0 }
 0x2c2   :  { %924 = vmatprep.subr.mxu0 %v960_v0 }
 0x2c3   :  { %v365_v40 = vpop.f32.mrf.mxu1  ;;  %925 = vmatpush3.msra.mxu0 %v526_v37 }
 0x2c4   :  { %920 = vmatmul.mubr.msk.f32.vlgmr.msra.gmra.mxu1 %vm40_vm0, %v365_v40  ;;  %927 = vmatmul.mubr.msk.f32.vlgmr.msra.gmra.mxu0 %vm40_vm0, %v1031_v3 }
 0x2c5   :  { %930 = vmatpush3.msra.mxu1 %v529_v39  ;;  %v907_v42 = vpop.f32.mrf.mxu1  ;;  %933 = vmatprep.mubr.msk.f32.mxu1 %vm961_vm1, %v960_v0 }
 0x2c6   :  { %931 = vmatprep.subr.mxu1 %v960_v0  ;;  %936 = vmatprep.subr.mxu0 %v960_v0 }
 0x2c7   :  { %932 = vmatpush3.msra.mxu1 %v528_v41  ;;  %940 = vmatprep.mubr.msk.f32.mxu0 %vm961_vm1, %v960_v0 }
 0x2c8   :  { %934 = vmatmul.mubr.msk.f32.vlgmr.msra.gmra.mxu1 %vm40_vm0, %v1039_v4  ;;  %943 = vmatprep.subr.mxu1 %v960_v0 }
 0x2c9   :  { %947 = vmatprep.mubr.msk.f32.mxu1 %vm961_vm1, %v960_v0  ;;  %937 = vmatpush3.msra.mxu0 %v684_v43 }
 0x2ca   :  { %938 = vmatprep.subr.mxu0 %v960_v0  ;;  %944 = vmatpush3.msra.mxu1 %v686_v45 }
 0x2cb   :  { %939 = vmatpush3.msra.mxu0 %v683_v44  ;;  %945 = vmatprep.subr.mxu1 %v960_v0 }
 0x2cc   :  { %946 = vmatpush3.msra.mxu1 %v685_v46 }
 0x380   :  { %v449_v48 = vpop.f32.mrf.mxu0 }
 0x381   :  { %v450_v50 = vadd.f32 %v854_v47, %v449_v48 }
 0x382   :  { %v914_v49 = vpop.f32.mrf.mxu0 }
 0x384   :  { %v522_v51 = vpop.f32.mrf.mxu1  ;;  %v596_v52 = vpop.f32.mrf.mxu0 }
 0x385   :  { %v670_v54 = vadd.f32 %v596_v52, %v450_v50  ;;  %v523_v57 = vadd.f32 %v854_v47, %v522_v51 }
 0x386   :  { %v921_v55 = vpop.f32.mrf.mxu1  ;;  %v928_v56 = vpop.f32.mrf.mxu0 }
 0x387   :  { %v679_v58 = vadd.f32 %v859_v53, %v670_v54 }
 0x388   :  { %v666_v59 = vpop.f32.mrf.mxu1 }
 0x389   :  { %v681_v60 = vmax.f32 %v679_v58, 0.0  ;;  %v671_v61 = vadd.f32 %v666_v59, %v523_v57 }
 0x38a   :  { %v935_v62 = vpop.f32.mrf.mxu1 }
 0x38b   :  { %v680_v63 = vadd.f32 %v859_v53, %v671_v61  ;;  %941 = vmatmul.mubr.msk.f32.vlgmr.msra.gmra.mxu0 %vm40_vm0, %v681_v60 }
 0x38d   :  { %v682_v0 = vmax.f32 %v680_v63, 0.0 }
 0x38f   :  { %948 = vmatmul.mubr.msk.f32.vlgmr.msra.gmra.mxu1 %vm40_vm0, %v682_v0 }
 0x44b   :  { %v758_v3 = vpop.f32.mrf.mxu0 }
 0x44c   :  { %v759_v4 = vadd.f32 %v758_v3, %v688_v2 }
 0x44d   :  { %v942_v6 = vpop.f32.mrf.mxu0 }
 0x44e   :  { %v839_v7 = vsel %vm837_vm6, %v759_v4, -100.0 }
 0x44f   :  { %842 = vst.msk [vmem:[%s1160_s10] sm:$0xf] %vm841_vm7, %v839_v7  ;;  %v831_v8 = vpop.f32.mrf.mxu1 }
 0x450   :  { %v832_v9 = vadd.f32 %v831_v8, %v688_v2 }
 0x451   :  { %v949_v10 = vpop.f32.mrf.mxu1 }
 0x452   :  { %v840_v11 = vsel %vm838_vm8, %v832_v9, -100.0 }
 0x453   :  { %843 = vst.msk [vmem:[%s1160_s10 + $0x4] sm:$0xf] %vm841_vm7, %v840_v11 }

// kernel: fwd.10
= control target key start
LH: loop header
LB: loop body
LE: loop exit
PB: predicated region body
PF: predicated region fallthrough
CT: control target
= control target key end

     0   :  { %v1332_v0 = vmov 0.0   ;;  %vm1333_vm0 = vmmov 0   ;;  %vm59_vm1 = vcmask 130048   ;;  %vm364_vm3 = vcmask 60416   ;;  %s1581_s3 = inlined_call_operand.vmem [shape: f32[2,16,16], index: 3, kind: input, shape index: {}]   ;;  %s1582_s0 = inlined_call_operand.vmem [shape: f32[2,8,16], index: 0, kind: input, shape index: {}]   ;;  %s1583_s4 = inlined_call_operand.vmem [shape: f32[1,1,16], index: 4, kind: input, shape index: {}]   ;;  %s1584_s1 = inlined_call_operand.vmem [shape: f32[2,4,16], index: 1, kind: input, shape index: {}]   ;;  %s1585_s2 = inlined_call_operand.vmem [shape: f32[2,4,8], index: 2, kind: input, shape index: {}]   ;;  %s1586_s5 = inlined_call_operand.vmem [shape: f32[2,16,16], index: 5, kind: input, shape index: {}]   ;;  %s1587_s7 = inlined_call_operand.vmem [shape: f32[2,16,16], index: 7, kind: input, shape index: {}]   ;;  %s1588_s9 = inlined_call_operand.vmem [shape: f32[2,16,16], index: 9, kind: input, shape index: {}]   ;;  %s1589_s6 = inlined_call_operand.vmem [shape: f32[1,1,16], index: 6, kind: input, shape index: {}]   ;;  %s1590_s8 = inlined_call_operand.vmem [shape: f32[1,1,16], index: 8, kind: input, shape index: {}]   ;;  %s1591_s11 = inlined_call_operand.vmem [shape: f32[2,16,3], index: 11, kind: input, shape index: {}]   ;;  %s1592_s10 = inlined_call_operand.vmem [shape: f32[1,1,16], index: 10, kind: input, shape index: {}]   ;;  %s1593_s12 = inlined_call_operand.vmem [shape: f32[1,1,3], index: 12, kind: input, shape index: {}]   ;;  %s1594_s13 = inlined_call_operand.vmem [shape: f32[2,4,3], index: 13, kind: output, shape index: {}]  }
   0x1   :  { %1228 = vmatprep.subr.mxu0 %v1332_v0  ;;  %v49_v1 = vld [vmem:[%s1581_s3 + $0x8] sm:$0xff]  ;;  %1235 = vmatprep.subr.mxu1 %v1332_v0  ;;  %v48_v2 = vld [vmem:[%s1581_s3] sm:$0xff]  ;;  %v51_v3 = vld [vmem:[%s1581_s3 + $0x18] sm:$0xff]  ;;  %vm387_vm5 = vcmask 64512   ;;  %vm1162_vm6 = vcmask 19456  }
   0x2   :  { %1229 = vmatpush3.msra.mxu0 %v49_v1  ;;  %1232 = vmatprep.mubr.msk.f32.mxu0 %vm1333_vm0, %v1332_v0  ;;  %v44_v4 = vld [vmem:[%s1582_s0] sm:$0xff]  ;;  %v50_v5 = vld [vmem:[%s1581_s3 + $0x10] sm:$0xff]  ;;  %v45_v6 = vld [vmem:[%s1582_s0 + $0x8] sm:$0xff] }
   0x3   :  { %1230 = vmatprep.subr.mxu0 %v1332_v0  ;;  %1236 = vmatpush3.msra.mxu1 %v51_v3  ;;  %v1169_v7 = vld [vmem:[%s1583_s4] ss:$0 sm:$0xff]  ;;  %v1452_v15 = vld [vmem:[%s1584_s1 + $0x4] sm:$0xf]  ;;  %v535_v40 = vld [vmem:[%s1586_s5 + $0x8] sm:$0xff] }
   0x4   :  { %1231 = vmatpush3.msra.mxu0 %v48_v2  ;;  %1237 = vmatprep.subr.mxu1 %v1332_v0  ;;  %v1445_v13 = vld [vmem:[%s1584_s1] sm:$0xf]  ;;  %v359_v17 = vld [vmem:[%s1585_s2 + $0x4] sm:$0xf]  ;;  %v537_v44 = vld [vmem:[%s1586_s5 + $0x18] sm:$0xff] }
   0x5   :  { %1233 = vmatmul.mubr.msk.f32.vlgmr.msra.gmra.mxu0 %vm59_vm1, %v44_v4  ;;  %1238 = vmatpush3.msra.mxu1 %v50_v5  ;;  %v358_v16 = vld [vmem:[%s1585_s2] sm:$0xf]  ;;  %vm361_vm4 = vcmp.gt.f32.partialorder %v359_v17, 0.5  ;;  %v536_v45 = vld [vmem:[%s1586_s5 + $0x10] sm:$0xff]  ;;  %v692_v46 = vld [vmem:[%s1587_s7 + $0x8] sm:$0xff] }
   0x6   :  { %1239 = vmatprep.mubr.msk.f32.mxu1 %vm1333_vm0, %v1332_v0  ;;  %1242 = vmatprep.subr.mxu0 %v1332_v0  ;;  %vm360_vm2 = vcmp.gt.f32.partialorder %v358_v16, 0.5  ;;  %v534_v43 = vld [vmem:[%s1586_s5] sm:$0xff]  ;;  %v694_v50 = vld [vmem:[%s1587_s7 + $0x18] sm:$0xff]  ;;  %v693_v52 = vld [vmem:[%s1587_s7 + $0x10] sm:$0xff] }
   0x7   :  { %1240 = vmatmul.mubr.msk.f32.vlgmr.msra.gmra.mxu1 %vm59_vm1, %v45_v6  ;;  %1244 = vmatprep.mubr.msk.f32.mxu0 %vm1333_vm0, %v1332_v0  ;;  %v691_v48 = vld [vmem:[%s1587_s7] sm:$0xff]  ;;  %v847_v54 = vld [vmem:[%s1588_s9 + $0x8] sm:$0xff]  ;;  %v849_v56 = vld [vmem:[%s1588_s9 + $0x18] sm:$0xff] }
   0x8   :  { %1247 = vmatprep.subr.mxu1 %v1332_v0  ;;  %1249 = vmatprep.mubr.msk.f32.mxu1 %vm1333_vm0, %v1332_v0  ;;  %v846_v55 = vld [vmem:[%s1588_s9] sm:$0xff]  ;;  %v848_v57 = vld [vmem:[%s1588_s9 + $0x10] sm:$0xff] }
   0x9   :  { %v1178_v58 = vld [vmem:[%s1589_s6] ss:$0 sm:$0xff] }
   0xa   :  { %v1183_v1 = vld [vmem:[%s1590_s8] ss:$0 sm:$0xff] }
  0xc5   :  { %v129_v8 = vpop.f32.mrf.mxu0 }
  0xc6   :  { %v130_v9 = vadd.f32 %v1169_v7, %v129_v8 }
  0xc7   :  { %v1234_v10 = vpop.f32.mrf.mxu0  ;;  %v202_v11 = vpop.f32.mrf.mxu1 }
  0xc8   :  { %v203_v12 = vadd.f32 %v1169_v7, %v202_v11  ;;  %1243 = vmatpush3.xpose.msk.msra.mxu0 %vm59_vm1, %v130_v9  ;;  %v1006_v11 = vld [vmem:[%s1591_s11 + $0x8] sm:$0xff] }
  0xc9   :  { %v1241_v14 = vpop.f32.mrf.mxu1  ;;  %1252 = vmatprep.subr.mxu0 %v1332_v0 }
  0xca   :  { %1248 = vmatpush3.xpose.msk.msra.mxu1 %vm59_vm1, %v203_v12  ;;  %v1005_v12 = vld [vmem:[%s1591_s11] sm:$0xff]  ;;  %v1007_v14 = vld [vmem:[%s1591_s11 + $0x10] sm:$0xff] }
  0xcb   :  { %1245 = vmatmul.mubr.msk.f32.vlgmr.msra.gmra.mxu0 %vm59_vm1, %v1445_v13  ;;  %1257 = vmatprep.subr.mxu1 %v1332_v0 }
  0xcc   :  { %1253 = vmatpush3.msra.mxu0 %v44_v4  ;;  %1254 = vmatprep.mubr.msk.f32.mxu0 %vm1333_vm0, %v1332_v0 }
  0xcd   :  { %1250 = vmatmul.mubr.msk.f32.vlgmr.msra.gmra.mxu1 %vm59_vm1, %v1452_v15  ;;  %1262 = vmatprep.subr.mxu0 %v1332_v0 }
  0xce   :  { %1258 = vmatpush3.msra.mxu1 %v45_v6  ;;  %1259 = vmatprep.mubr.msk.f32.mxu1 %vm1333_vm0, %v1332_v0 }
  0xcf   :  { %1269 = vmatprep.subr.mxu1 %v1332_v0 }
 0x18b   :  { %v278_v18 = vpop.f32.mrf.mxu0 }
 0x18c   :  { %v362_v19 = vsel %vm360_vm2, %v278_v18, -100.0 }
 0x18d   :  { %v1246_v20 = vpop.f32.mrf.mxu0  ;;  %v354_v21 = vpop.f32.mrf.mxu1  ;;  %v365_v22 = vsel %vm364_vm3, %v362_v19, -inf }
 0x18e   :  { %v363_v23 = vsel %vm361_vm4, %v354_v21, -100.0  ;;  %366 = vmax.xlane.f32.xlu0 %v365_v22 }
 0x18f   :  { %v1251_v24 = vpop.f32.mrf.mxu1  ;;  %v368_v25 = vsel %vm364_vm3, %v363_v23, -inf }
 0x192   :  { %369 = vmax.xlane.f32.xlu0 %v368_v25 }
 0x217   :  { %v367_v26 = vpop.xlane.xlu0 %366 }
 0x218   :  { %v371_v27 = vsub.f32 %v362_v19, %v367_v26 }
 0x21a   :  { %v373_v28 = vmul.f32 1.442695, %v371_v27 }
 0x21b   :  { %v370_v29 = vpop.xlane.xlu0 %369 }
 0x21c   :  { %1320 = vpow2.f32 %v373_v28  ;;  %v372_v30 = vsub.f32 %v363_v23, %v370_v29 }
 0x21e   :  { %v375_v31 = vmul.f32 1.442695, %v372_v30 }
 0x220   :  { %1322 = vpow2.f32 %v375_v31 }
 0x229   :  { %v1321_v32 = vpop.eup %1320 }
 0x22a   :  { %v377_v33 = vsel %vm364_vm3, %v1321_v32, 0.0 }
 0x22b   :  { %378 = vadd.xlane.f32.xlu1 %v377_v33 }
 0x22d   :  { %v1323_v34 = vpop.eup %1322 }
 0x22e   :  { %v380_v35 = vsel %vm364_vm3, %v1323_v34, 0.0 }
 0x22f   :  { %381 = vadd.xlane.f32.xlu1 %v380_v35 }
 0x2b4   :  { %v379_v36 = vpop.xlane.xlu1 %378 }
 0x2b5   :  { %1324 = vrcp.f32 %v379_v36 }
 0x2b8   :  { %v382_v37 = vpop.xlane.xlu1 %381 }
 0x2b9   :  { %1326 = vrcp.f32 %v382_v37 }
 0x2c2   :  { %v1325_v38 = vpop.eup %1324 }
 0x2c3   :  { %v385_v39 = vmul.f32 %v1325_v38, %v1321_v32 }
 0x2c5   :  { %1255 = vmatmul.mubr.msk.f32.vlgmr.msra.gmra.mxu0 %vm387_vm5, %v385_v39 }
 0x2c6   :  { %v1327_v41 = vpop.eup %1326  ;;  %1263 = vmatpush3.msra.mxu0 %v535_v40  ;;  %1266 = vmatprep.mubr.msk.f32.mxu0 %vm1333_vm0, %v1332_v0 }
 0x2c7   :  { %v386_v42 = vmul.f32 %v1327_v41, %v1323_v34  ;;  %1264 = vmatprep.subr.mxu0 %v1332_v0 }
 0x2c8   :  { %1265 = vmatpush3.msra.mxu0 %v534_v43 }
 0x2c9   :  { %1260 = vmatmul.mubr.msk.f32.vlgmr.msra.gmra.mxu1 %vm387_vm5, %v386_v42  ;;  %1276 = vmatprep.subr.mxu0 %v1332_v0 }
 0x2ca   :  { %1273 = vmatprep.mubr.msk.f32.mxu1 %vm1333_vm0, %v1332_v0  ;;  %1270 = vmatpush3.msra.mxu1 %v537_v44 }
 0x2cb   :  { %1271 = vmatprep.subr.mxu1 %v1332_v0 }
 0x2cc   :  { %1272 = vmatpush3.msra.mxu1 %v536_v45 }
 0x2cd   :  { %1283 = vmatprep.subr.mxu1 %v1332_v0 }
 0x385   :  { %v457_v47 = vpop.f32.mrf.mxu0 }
 0x386   :  { %1267 = vmatmul.mubr.msk.f32.vlgmr.msra.gmra.mxu0 %vm59_vm1, %v457_v47 }
 0x387   :  { %v1256_v49 = vpop.f32.mrf.mxu0  ;;  %1277 = vmatpush3.msra.mxu0 %v692_v46  ;;  %1280 = vmatprep.mubr.msk.f32.mxu0 %vm1333_vm0, %v1332_v0 }
 0x388   :  { %1278 = vmatprep.subr.mxu0 %v1332_v0 }
 0x389   :  { %v530_v51 = vpop.f32.mrf.mxu1  ;;  %1279 = vmatpush3.msra.mxu0 %v691_v48 }
 0x38a   :  { %1274 = vmatmul.mubr.msk.f32.vlgmr.msra.gmra.mxu1 %vm59_vm1, %v530_v51  ;;  %1281 = vmatmul.mubr.msk.f32.vlgmr.msra.gmra.mxu0 %vm59_vm1, %v1445_v13  ;;  %v1008_v13 = vld [vmem:[%s1591_s11 + $0x18] sm:$0xff] }
 0x38b   :  { %v1261_v53 = vpop.f32.mrf.mxu1  ;;  %1284 = vmatpush3.msra.mxu1 %v694_v50  ;;  %1287 = vmatprep.mubr.msk.f32.mxu1 %vm1333_vm0, %v1332_v0 }
 0x38c   :  { %1285 = vmatprep.subr.mxu1 %v1332_v0  ;;  %1290 = vmatprep.subr.mxu0 %v1332_v0 }
 0x38d   :  { %1286 = vmatpush3.msra.mxu1 %v693_v52  ;;  %1294 = vmatprep.mubr.msk.f32.mxu0 %vm1333_vm0, %v1332_v0 }
 0x38e   :  { %1288 = vmatmul.mubr.msk.f32.vlgmr.msra.gmra.mxu1 %vm59_vm1, %v1452_v15  ;;  %1297 = vmatprep.subr.mxu1 %v1332_v0  ;;  %v1184_v15 = vld [vmem:[%s1592_s10] ss:$0 sm:$0xff] }
 0x38f   :  { %1301 = vmatprep.mubr.msk.f32.mxu1 %vm1333_vm0, %v1332_v0  ;;  %1291 = vmatpush3.msra.mxu0 %v847_v54 }
 0x390   :  { %1292 = vmatprep.subr.mxu0 %v1332_v0  ;;  %1298 = vmatpush3.msra.mxu1 %v849_v56 }
 0x391   :  { %1293 = vmatpush3.msra.mxu0 %v846_v55  ;;  %1299 = vmatprep.subr.mxu1 %v1332_v0 }
 0x392   :  { %1304 = vmatprep.subr.mxu0 %v1332_v0  ;;  %1300 = vmatpush3.msra.mxu1 %v848_v57 }
 0x393   :  { %1311 = vmatprep.subr.mxu1 %v1332_v0 }
 0x446   :  { %v614_v59 = vpop.f32.mrf.mxu0 }
 0x447   :  { %v615_v61 = vadd.f32 %v1178_v58, %v614_v59 }
 0x448   :  { %v1268_v60 = vpop.f32.mrf.mxu0 }
 0x44a   :  { %v687_v62 = vpop.f32.mrf.mxu1  ;;  %v761_v63 = vpop.f32.mrf.mxu0 }
 0x44b   :  { %v835_v2 = vadd.f32 %v761_v63, %v615_v61  ;;  %v688_v5 = vadd.f32 %v1178_v58, %v687_v62 }
 0x44c   :  { %v1275_v3 = vpop.f32.mrf.mxu1  ;;  %v1282_v4 = vpop.f32.mrf.mxu0 }
 0x44d   :  { %v844_v6 = vadd.f32 %v1183_v1, %v835_v2 }
 0x44e   :  { %v831_v7 = vpop.f32.mrf.mxu1 }
 0x44f   :  { %v836_v8 = vadd.f32 %v831_v7, %v688_v5  ;;  %1295 = vmatmul.mubr.msk.f32.vlgmr.msra.gmra.mxu0 %vm59_vm1, %v844_v6 }
 0x450   :  { %v1289_v9 = vpop.f32.mrf.mxu1  ;;  %1308 = vmatprep.mubr.msk.f32.mxu0 %vm1333_vm0, %v1332_v0  ;;  %1305 = vmatpush3.msra.mxu0 %v1006_v11 }
 0x451   :  { %v845_v10 = vadd.f32 %v1183_v1, %v836_v8  ;;  %1306 = vmatprep.subr.mxu0 %v1332_v0 }
 0x452   :  { %1307 = vmatpush3.msra.mxu0 %v1005_v12 }
 0x453   :  { %1302 = vmatmul.mubr.msk.f32.vlgmr.msra.gmra.mxu1 %vm59_vm1, %v845_v10 }
 0x454   :  { %1315 = vmatprep.mubr.msk.f32.mxu1 %vm1333_vm0, %v1332_v0  ;;  %1312 = vmatpush3.msra.mxu1 %v1008_v13 }
 0x455   :  { %1313 = vmatprep.subr.mxu1 %v1332_v0  ;;  %v1187_v0 = vld [vmem:[%s1593_s12] ss:$0 sm:$0xff] }
 0x456   :  { %1314 = vmatpush3.msra.mxu1 %v1007_v14 }
 0x50f   :  { %v926_v16 = vpop.f32.mrf.mxu0 }
 0x510   :  { %v927_v17 = vadd.f32 %v1184_v15, %v926_v16 }
 0x511   :  { %v1296_v18 = vpop.f32.mrf.mxu0 }
 0x512   :  { %1328 = vtanh.f32 %v927_v17 }
 0x513   :  { %v999_v19 = vpop.f32.mrf.mxu1 }
 0x514   :  { %v1000_v20 = vadd.f32 %v1184_v15, %v999_v19 }
 0x515   :  { %v1303_v21 = vpop.f32.mrf.mxu1 }
 0x516   :  { %1330 = vtanh.f32 %v1000_v20 }
 0x51f   :  { %v1329_v22 = vpop.eup %1328 }
 0x520   :  { %1309 = vmatmul.mubr.msk.f32.vlgmr.msra.gmra.mxu0 %vm59_vm1, %v1329_v22 }
 0x523   :  { %v1331_v23 = vpop.eup %1330 }
 0x524   :  { %1316 = vmatmul.mubr.msk.f32.vlgmr.msra.gmra.mxu1 %vm59_vm1, %v1331_v23 }
 0x5e0   :  { %v1085_v24 = vpop.f32.mrf.mxu0 }
 0x5e1   :  { %v1086_v25 = vadd.f32 %v1187_v0, %v1085_v24 }
 0x5e2   :  { %v1310_v26 = vpop.f32.mrf.mxu0 }
 0x5e3   :  { %1163 = vst.msk [vmem:[%s1594_s13] sm:$0xf] %vm1162_vm6, %v1086_v25 }
 0x5e4   :  { %v1158_v27 = vpop.f32.mrf.mxu1 }
 0x5e5   :  { %v1159_v28 = vadd.f32 %v1187_v0, %v1158_v27 }
 0x5e6   :  { %v1317_v29 = vpop.f32.mrf.mxu1 }
 0x5e7   :  { %1164 = vst.msk [vmem:[%s1594_s13 + $0x4] sm:$0xf] %vm1162_vm6, %v1159_v28 }

// kernel: fwd.7
= control target key start
LH: loop header
LB: loop body
LE: loop exit
PB: predicated region body
PF: predicated region fallthrough
CT: control target
= control target key end

     0   :  { %v3079_v0 = vmov 0.0   ;;  %vm109_vm0 = vcmask 130048   ;;  %vm3080_vm1 = vmmov 0   ;;  %v3081_v24 = vmov 0   ;;  %s3618_s4 = inlined_call_operand.vmem [shape: f32[4,24,24], index: 4, kind: input, shape index: {}]   ;;  %s3619_s3 = inlined_call_operand.vmem [shape: f32[4,16,24], index: 3, kind: input, shape index: {}]   ;;  %s3620_s0 = inlined_call_operand.vmem [shape: f32[3,7,16], index: 0, kind: input, shape index: {}]   ;;  %s3621_s1 = inlined_call_operand.vmem [shape: f32[3,7,1], index: 1, kind: input, shape index: {}]   ;;  %s3622_s5 = inlined_call_operand.vmem [shape: f32[4,1,24], index: 5, kind: input, shape index: {}]   ;;  %s3623_s6 = inlined_call_operand.vmem [shape: f32[4,16,24], index: 6, kind: input, shape index: {}]   ;;  %s3624_s2 = inlined_call_operand.vmem [shape: f32[7,16], index: 2, kind: input, shape index: {}]   ;;  %s3625_s7 = inlined_call_operand.vmem [shape: f32[4,1,24], index: 7, kind: input, shape index: {}]   ;;  %s3626_s8 = inlined_call_operand.vmem [shape: f32[2,7,24], index: 8, kind: output, shape index: {}]  }
   0x1   :  { %2754 = vmatprep.subr.mxu0 %v3079_v0  ;;  %2763 = vmatprep.subr.mxu1 %v3079_v0  ;;  %v3132_v1 = vld [vmem:[%s3618_s4 + $0x10] sm:$0xff]  ;;  %v3137_v2 = vld [vmem:[%s3619_s3 + $0x8] sm:$0xff]  ;;  %v3149_v4 = vld [vmem:[%s3619_s3] sm:$0xff]  ;;  %vm35_vm2 = vcmask 195584   ;;  %vm1918_vm3 = vcmask 194560  }
   0x2   :  { %v3142_v3 = vld [vmem:[%s3618_s4 + $0x8] sm:$0xff]  ;;  %2755 = vmatpush3.msra.mxu0 %v3132_v1  ;;  %2764 = vmatpush3.msra.mxu1 %v3137_v2  ;;  %v3156_v5 = vld [vmem:[%s3620_s0] sm:$0x7f]  ;;  %v3187_v9 = vld [vmem:[%s3619_s3 + $0x18] sm:$0xff] }
   0x3   :  { %2756 = vmatprep.subr.mxu0 %v3079_v0  ;;  %2765 = vmatprep.subr.mxu1 %v3079_v0  ;;  %v3163_v6 = vld [vmem:[%s3618_s4] sm:$0xff]  ;;  %v3171_v7 = vld [vmem:[%s3618_s4 + $0x28] sm:$0xff]  ;;  %v3196_v10 = vld [vmem:[%s3618_s4 + $0x18] sm:$0xff] }
   0x4   :  { %2757 = vmatpush3.msra.mxu0 %v3142_v3  ;;  %2766 = vmatpush3.msra.mxu1 %v3149_v4  ;;  %v3182_v8 = vld [vmem:[%s3618_s4 + $0x20] sm:$0xff]  ;;  %v3203_v11 = vld [vmem:[%s3619_s3 + $0x10] sm:$0xff]  ;;  %v3221_v13 = vld [vmem:[%s3619_s3 + $0x28] sm:$0xff] }
   0x5   :  { %2767 = vmatprep.mubr.msk.f32.mxu1 %vm3080_vm1, %v3079_v0  ;;  %2758 = vmatprep.subr.mxu0 %v3079_v0  ;;  %v3216_v12 = vld [vmem:[%s3618_s4 + $0x40] sm:$0xff]  ;;  %v3231_v14 = vld [vmem:[%s3618_s4 + $0x38] sm:$0xff]  ;;  %v3245_v16 = vld [vmem:[%s3618_s4 + $0x30] sm:$0xff] }
   0x6   :  { %2768 = vmatmul.mubr.msk.f32.vlgmr.msra.gmra.mxu1 %vm109_vm0, %v3156_v5  ;;  %2770 = vmatprep.subr.mxu1 %v3079_v0  ;;  %v3236_v15 = vld [vmem:[%s3619_s3 + $0x20] sm:$0xff]  ;;  %v3255_v17 = vld [vmem:[%s3618_s4 + $0x58] sm:$0xff]  ;;  %v3266_v18 = vld [vmem:[%s3618_s4 + $0x50] sm:$0xff] }
   0x7   :  { %2759 = vmatpush3.msra.mxu0 %v3163_v6  ;;  %2760 = vmatprep.mubr.msk.f32.mxu0 %vm3080_vm1, %v3079_v0  ;;  %v3271_v19 = vld [vmem:[%s3619_s3 + $0x38] sm:$0xff]  ;;  %v3280_v20 = vld [vmem:[%s3618_s4 + $0x48] sm:$0xff]  ;;  %v3287_v21 = vld [vmem:[%s3619_s3 + $0x30] sm:$0xff] }
   0x8   :  { %2771 = vmatpush3.msra.mxu1 %v3171_v7  ;;  %2761 = vmatmul.mubr.f32.vlgmr.msra.gmra.mxu0 %v3079_v0  ;;  %v680_v22 = vld [vmem:[%s3621_s1] sm:$0x7f]  ;;  %v2604_v23 = vld [vmem:[%s3621_s1 + $0x8] sm:$0x7f]  ;;  %v2614_v27 = vld [vmem:[%s3621_s1 + $0x10] sm:$0x7f] }
   0x9   :  { %2772 = vmatprep.subr.mxu1 %v3079_v0  ;;  %2779 = vmatprep.subr.mxu0 %v3079_v0  ;;  %v687_v25 = vsub.f32 1.0, %v680_v22  ;;  %v1298_v26 = vsub.f32 1.0, %v2604_v23  ;;  %v1910_v28 = vsub.f32 1.0, %v2614_v27  ;;  %v3328_v29 = vld [vmem:[%s3620_s0 + $0x8] sm:$0x7f] }
   0xa   :  { %2773 = vmatpush3.msra.mxu1 %v3182_v8  ;;  %2780 = vmatpush3.msra.mxu0 %v3187_v9  ;;  %v3343_v32 = vld [vmem:[%s3622_s5] ss:$0 sm:$0xff]  ;;  %v3349_v40 = vld [vmem:[%s3622_s5 + $0x1] ss:$0 sm:$0xff]  ;;  %v3355_v54 = vld [vmem:[%s3622_s5 + $0x3] ss:$0 sm:$0xff] }
   0xb   :  { %2774 = vmatprep.subr.mxu1 %v3079_v0  ;;  %2781 = vmatprep.subr.mxu0 %v3079_v0  ;;  %v3360_v60 = vld [vmem:[%s3622_s5 + $0x2] ss:$0 sm:$0xff] }
   0xc   :  { %2775 = vmatpush3.msra.mxu1 %v3196_v10  ;;  %2776 = vmatprep.mubr.msk.f32.mxu1 %vm3080_vm1, %v3079_v0 }
   0xd   :  { %2782 = vmatpush3.msra.mxu0 %v3203_v11  ;;  %2783 = vmatprep.mubr.msk.f32.mxu0 %vm3080_vm1, %v3079_v0 }
   0xe   :  { %2777 = vmatmul.mubr.f32.vlgmr.msra.gmra.mxu1 %v3079_v0  ;;  %2784 = vmatmul.mubr.msk.f32.vlgmr.msra.gmra.mxu0 %vm109_vm0, %v3156_v5 }
   0xf   :  { %2786 = vmatprep.subr.mxu0 %v3079_v0  ;;  %2795 = vmatprep.subr.mxu1 %v3079_v0 }
  0x10   :  { %2787 = vmatpush3.msra.mxu0 %v3216_v12  ;;  %2796 = vmatpush3.msra.mxu1 %v3221_v13 }
  0x11   :  { %2788 = vmatprep.subr.mxu0 %v3079_v0  ;;  %2797 = vmatprep.subr.mxu1 %v3079_v0 }
  0x12   :  { %2789 = vmatpush3.msra.mxu0 %v3231_v14  ;;  %2798 = vmatpush3.msra.mxu1 %v3236_v15 }
  0x13   :  { %2790 = vmatprep.subr.mxu0 %v3079_v0  ;;  %2799 = vmatprep.mubr.msk.f32.mxu1 %vm3080_vm1, %v3079_v0 }
  0x14   :  { %2802 = vmatprep.subr.mxu1 %v3079_v0  ;;  %2791 = vmatpush3.msra.mxu0 %v3245_v16 }
  0x15   :  { %2792 = vmatprep.mubr.msk.f32.mxu0 %vm3080_vm1, %v3079_v0  ;;  %2800 = vmatmul.mubr.msk.f32.vlgmr.msra.gmra.mxu1 %vm109_vm0, %v3156_v5 }
  0x16   :  { %2803 = vmatpush3.msra.mxu1 %v3255_v17  ;;  %2793 = vmatmul.mubr.f32.vlgmr.msra.gmra.mxu0 %v3079_v0 }
  0x17   :  { %2804 = vmatprep.subr.mxu1 %v3079_v0  ;;  %2811 = vmatprep.subr.mxu0 %v3079_v0 }
  0x18   :  { %2805 = vmatpush3.msra.mxu1 %v3266_v18  ;;  %2812 = vmatpush3.msra.mxu0 %v3271_v19 }
  0x19   :  { %2806 = vmatprep.subr.mxu1 %v3079_v0  ;;  %2813 = vmatprep.subr.mxu0 %v3079_v0 }
  0x1a   :  { %2807 = vmatpush3.msra.mxu1 %v3280_v20  ;;  %2808 = vmatprep.mubr.msk.f32.mxu1 %vm3080_vm1, %v3079_v0 }
  0x1b   :  { %2814 = vmatpush3.msra.mxu0 %v3287_v21  ;;  %2815 = vmatprep.mubr.msk.f32.mxu0 %vm3080_vm1, %v3079_v0 }
  0x1c   :  { %2809 = vmatmul.mubr.f32.vlgmr.msra.gmra.mxu1 %v3079_v0  ;;  %2816 = vmatmul.mubr.msk.f32.vlgmr.msra.gmra.mxu0 %vm109_vm0, %v3156_v5 }
  0x1d   :  { %3013 = vset.pattern.permute.xlu0 %v3081_v24  ;;  %3014 = vset.pattern.permute.xlu1 %v3081_v24 }
  0x1e   :  { %683 = vperm.xlu0 %3013, %v680_v22   ;;  %1294 = vperm.xlu1 %3014, %v2604_v23  }
  0x1f   :  { %2827 = vmatprep.subr.mxu1 %v3079_v0  ;;  %2818 = vmatprep.subr.mxu0 %v3079_v0 }
  0x20   :  { %2828 = vmatpush3.msra.mxu1 %v3137_v2  ;;  %2831 = vmatprep.mubr.msk.f32.mxu1 %vm3080_vm1, %v3079_v0 }
  0x21   :  { %2829 = vmatprep.subr.mxu1 %v3079_v0  ;;  %2819 = vmatpush3.msra.mxu0 %v3132_v1 }
  0x22   :  { %690 = vperm.xlu0 %3013, %v687_v25   ;;  %1301 = vperm.xlu1 %3014, %v1298_v26  }
  0x23   :  { %2830 = vmatpush3.msra.mxu1 %v3149_v4  ;;  %2820 = vmatprep.subr.mxu0 %v3079_v0 }
  0x24   :  { %2834 = vmatprep.subr.mxu1 %v3079_v0  ;;  %2821 = vmatpush3.msra.mxu0 %v3142_v3 }
  0x25   :  { %2822 = vmatprep.subr.mxu0 %v3079_v0  ;;  %2824 = vmatprep.mubr.msk.f32.mxu0 %vm3080_vm1, %v3079_v0 }
  0x26   :  { %1906 = vperm.xlu0 %3013, %v2614_v27   ;;  %2823 = vmatpush3.msra.mxu0 %v3163_v6 }
  0x27   :  { %2843 = vmatprep.subr.mxu0 %v3079_v0  ;;  %1913 = vperm.xlu1 %3014, %v1910_v28  }
  0x28   :  { %2832 = vmatmul.mubr.msk.f32.vlgmr.msra.gmra.mxu1 %vm109_vm0, %v3328_v29 }
  0x29   :  { %2835 = vmatpush3.msra.mxu1 %v3171_v7  ;;  %2840 = vmatprep.mubr.msk.f32.mxu1 %vm3080_vm1, %v3079_v0 }
  0x2a   :  { %2836 = vmatprep.subr.mxu1 %v3079_v0 }
  0x2b   :  { %2837 = vmatpush3.msra.mxu1 %v3182_v8 }
  0x2c   :  { %2838 = vmatprep.subr.mxu1 %v3079_v0 }
  0x2d   :  { %2839 = vmatpush3.msra.mxu1 %v3196_v10 }
  0x2e   :  { %2859 = vmatprep.subr.mxu1 %v3079_v0 }
  0x99   :  { %v684_v25 = vpop.permute.xlu0 %683 }
  0xc6   :  { %v179_v30 = vpop.f32.mrf.mxu1 }
  0xc8   :  { %v105_v31 = vpop.f32.mrf.mxu0  ;;  %v2769_v33 = vpop.f32.mrf.mxu1 }
  0xc9   :  { %v180_v34 = vadd.f32 %v179_v30, %v105_v31  ;;  %v691_v33 = vpop.permute.xlu0 %690 }
  0xca   :  { %v2762_v35 = vpop.f32.mrf.mxu0 }
  0xcb   :  { %v190_v36 = vadd.f32 %v3343_v32, %v180_v34 }
  0xcd   :  { %v191_v37 = vsub.f32 0.0, %v190_v36 }
  0xce   :  { %v269_v38 = vpop.f32.mrf.mxu1  ;;  %v339_v39 = vpop.f32.mrf.mxu0 }
  0xcf   :  { %v192_v41 = vmul.f32 1.442695, %v191_v37  ;;  %v340_v42 = vadd.f32 %v339_v39, %v269_v38  ;;  %v693_v37 = vmul.f32 0.0, %v691_v33 }
  0xd0   :  { %v2778_v43 = vpop.f32.mrf.mxu1  ;;  %v2785_v44 = vpop.f32.mrf.mxu0 }
  0xd1   :  { %3015 = vpow2.f32 %v192_v41  ;;  %v351_v45 = vadd.f32 %v3349_v40, %v340_v42 }
  0xd3   :  { %v352_v46 = vsub.f32 0.0, %v351_v45 }
  0xd5   :  { %v353_v47 = vmul.f32 1.442695, %v352_v46  ;;  %v500_v48 = vpop.f32.mrf.mxu1 }
  0xd6   :  { %v430_v49 = vpop.f32.mrf.mxu0 }
  0xd7   :  { %3017 = vpow2.f32 %v353_v47  ;;  %v2801_v50 = vpop.f32.mrf.mxu1  ;;  %v501_v57 = vadd.f32 %v500_v48, %v430_v49 }
  0xd8   :  { %v2794_v51 = vpop.f32.mrf.mxu0 }
  0xd9   :  { %v512_v5 = vadd.f32 %v3360_v60, %v501_v57 }
  0xdc   :  { %v587_v52 = vpop.f32.mrf.mxu1  ;;  %v657_v53 = vpop.f32.mrf.mxu0 }
  0xdd   :  { %v658_v55 = vadd.f32 %v657_v53, %v587_v52 }
  0xde   :  { %v3016_v56 = vpop.eup %3015  ;;  %v2810_v58 = vpop.f32.mrf.mxu1 }
  0xdf   :  { %v2817_v59 = vpop.f32.mrf.mxu0  ;;  %v669_v61 = vadd.f32 %v3355_v54, %v658_v55  ;;  %v194_v62 = vadd.f32 1.0, %v3016_v56 }
  0xe1   :  { %v670_v63 = vsub.f32 0.0, %v669_v61  ;;  %3019 = vrcp.f32 %v194_v62 }
  0xe3   :  { %v671_v22 = vmul.f32 1.442695, %v670_v63 }
  0xe4   :  { %v3018_v23 = vpop.eup %3017 }
  0xe5   :  { %v355_v24 = vadd.f32 1.0, %v3018_v23  ;;  %3021 = vpow2.f32 %v671_v22 }
  0xe6   :  { %3023 = vtanh.f32 %v512_v5 }
  0xe7   :  { %3025 = vrcp.f32 %v355_v24 }
  0xee   :  { %v3020_v26 = vpop.eup %3019 }
  0xf2   :  { %v3022_v27 = vpop.eup %3021 }
  0xf3   :  { %v3024_v28 = vpop.eup %3023  ;;  %v673_v30 = vadd.f32 1.0, %v3022_v27 }
  0xf4   :  { %v3026_v31 = vpop.eup %3025  ;;  %v676_v35 = vmul.f32 %v3024_v28, %v3020_v26 }
  0xf5   :  { %v675_v34 = vmul.f32 0.0, %v3026_v31  ;;  %3027 = vrcp.f32 %v673_v30 }
  0xf7   :  { %v677_v36 = vadd.f32 %v676_v35, %v675_v34 }
  0xf9   :  { %3029 = vtanh.f32 %v677_v36  ;;  %v695_v38 = vmul.f32 %v684_v25, %v677_v36 }
  0xfb   :  { %v3364_v39 = vadd.f32 %v695_v38, %v693_v37 }
 0x102   :  { %v3028_v41 = vpop.eup %3027 }
 0x106   :  { %v3030_v42 = vpop.eup %3029 }
 0x107   :  { %v679_v43 = vmul.f32 %v3030_v42, %v3028_v41 }
 0x109   :  { %v686_v44 = vmul.f32 %v684_v25, %v679_v43 }
 0x10b   :  { %v3366_v45 = vadd.f32 %v693_v37, %v686_v44 }
 0x10d   :  { %2825 = vmatmul.mubr.msk.f32.vlgmr.msra.gmra.mxu0 %vm35_vm2, %v3366_v45  ;;  %2841 = vmatmul.mubr.msk.f32.vlgmr.msra.gmra.mxu1 %vm35_vm2, %v3366_v45 }
 0x10e   :  { %2844 = vmatpush3.msra.mxu0 %v3187_v9  ;;  %2860 = vmatpush3.msra.mxu1 %v3221_v13 }
 0x10f   :  { %2845 = vmatprep.subr.mxu0 %v3079_v0  ;;  %2861 = vmatprep.subr.mxu1 %v3079_v0 }
 0x110   :  { %2846 = vmatpush3.msra.mxu0 %v3203_v11  ;;  %2862 = vmatpush3.msra.mxu1 %v3236_v15 }
 0x111   :  { %2847 = vmatprep.mubr.msk.f32.mxu0 %vm3080_vm1, %v3079_v0  ;;  %2850 = vmatprep.subr.mxu0 %v3079_v0 }
 0x112   :  { %2863 = vmatprep.mubr.msk.f32.mxu1 %vm3080_vm1, %v3079_v0  ;;  %2866 = vmatprep.subr.mxu1 %v3079_v0 }
 0x113   :  { %2848 = vmatmul.mubr.msk.f32.vlgmr.msra.gmra.mxu0 %vm109_vm0, %v3328_v29  ;;  %2864 = vmatmul.mubr.msk.f32.vlgmr.msra.gmra.mxu1 %vm109_vm0, %v3328_v29 }
 0x114   :  { %2851 = vmatpush3.msra.mxu0 %v3216_v12  ;;  %2867 = vmatpush3.msra.mxu1 %v3255_v17 }
 0x115   :  { %2852 = vmatprep.subr.mxu0 %v3079_v0  ;;  %2868 = vmatprep.subr.mxu1 %v3079_v0 }
 0x116   :  { %2853 = vmatpush3.msra.mxu0 %v3231_v14  ;;  %2869 = vmatpush3.msra.mxu1 %v3266_v18 }
 0x117   :  { %2854 = vmatprep.subr.mxu0 %v3079_v0  ;;  %2870 = vmatprep.subr.mxu1 %v3079_v0 }
 0x118   :  { %2855 = vmatpush3.msra.mxu0 %v3245_v16  ;;  %2856 = vmatprep.mubr.msk.f32.mxu0 %vm3080_vm1, %v3079_v0 }
 0x119   :  { %2871 = vmatpush3.msra.mxu1 %v3280_v20  ;;  %2872 = vmatprep.mubr.msk.f32.mxu1 %vm3080_vm1, %v3079_v0 }
 0x11a   :  { %2857 = vmatmul.mubr.msk.f32.vlgmr.msra.gmra.mxu0 %vm35_vm2, %v3366_v45  ;;  %2873 = vmatmul.mubr.msk.f32.vlgmr.msra.gmra.mxu1 %vm35_vm2, %v3366_v45 }
 0x11b   :  { %2875 = vmatprep.subr.mxu0 %v3079_v0  ;;  %2879 = vmatprep.mubr.msk.f32.mxu0 %vm3080_vm1, %v3079_v0 }
 0x11c   :  { %2876 = vmatpush3.msra.mxu0 %v3271_v19  ;;  %2891 = vmatprep.subr.mxu1 %v3079_v0 }
 0x11d   :  { %2877 = vmatprep.subr.mxu0 %v3079_v0  ;;  %2892 = vmatpush3.msra.mxu1 %v3137_v2  ;;  %v841_v2 = vpop.f32.mrf.mxu1 }
 0x11e   :  { %2878 = vmatpush3.msra.mxu0 %v3287_v21  ;;  %2893 = vmatprep.subr.mxu1 %v3079_v0 }
 0x11f   :  { %2880 = vmatmul.mubr.msk.f32.vlgmr.msra.gmra.mxu0 %vm109_vm0, %v3328_v29  ;;  %2894 = vmatpush3.msra.mxu1 %v3149_v4  ;;  %v2833_v4 = vpop.f32.mrf.mxu1  ;;  %v3433_v29 = vld [vmem:[%s3620_s0 + $0x10] sm:$0x7f] }
 0x120   :  { %2882 = vmatprep.subr.mxu0 %v3079_v0  ;;  %2895 = vmatprep.mubr.msk.f32.mxu1 %vm3080_vm1, %v3079_v0 }
 0x121   :  { %2898 = vmatprep.subr.mxu1 %v3079_v0  ;;  %2883 = vmatpush3.msra.mxu0 %v3132_v1 }
 0x122   :  { %2884 = vmatprep.subr.mxu0 %v3079_v0  ;;  %2888 = vmatprep.mubr.msk.f32.mxu0 %vm3080_vm1, %v3079_v0 }
 0x123   :  { %2885 = vmatpush3.msra.mxu0 %v3142_v3  ;;  %2896 = vmatmul.mubr.msk.f32.vlgmr.msra.gmra.mxu1 %vm109_vm0, %v3433_v29 }
 0x124   :  { %2886 = vmatprep.subr.mxu0 %v3079_v0  ;;  %2899 = vmatpush3.msra.mxu1 %v3171_v7 }
 0x125   :  { %2887 = vmatpush3.msra.mxu0 %v3163_v6  ;;  %2904 = vmatprep.mubr.msk.f32.mxu1 %vm3080_vm1, %v3079_v0 }
 0x126   :  { %2907 = vmatprep.subr.mxu0 %v3079_v0  ;;  %2900 = vmatprep.subr.mxu1 %v3079_v0 }
 0x127   :  { %2901 = vmatpush3.msra.mxu1 %v3182_v8 }
 0x128   :  { %2902 = vmatprep.subr.mxu1 %v3079_v0 }
 0x129   :  { %2903 = vmatpush3.msra.mxu1 %v3196_v10 }
 0x12a   :  { %2923 = vmatprep.subr.mxu1 %v3079_v0 }
 0x1cd   :  { %v768_v46 = vpop.f32.mrf.mxu0  ;;  %v917_v47 = vpop.f32.mrf.mxu1 }
 0x1ce   :  { %v842_v48 = vadd.f32 %v841_v2, %v768_v46 }
 0x1cf   :  { %v2826_v49 = vpop.f32.mrf.mxu0  ;;  %v2842_v50 = vpop.f32.mrf.mxu1 }
 0x1d0   :  { %v845_v51 = vadd.f32 %v3343_v32, %v842_v48  ;;  %v3453_v48 = vpop.permute.xlu1 %1294 }
 0x1d2   :  { %v846_v52 = vsub.f32 0.0, %v845_v51 }
 0x1d3   :  { %v987_v53 = vpop.f32.mrf.mxu0  ;;  %v1133_v55 = vpop.f32.mrf.mxu1 }
 0x1d4   :  { %v847_v56 = vmul.f32 1.442695, %v846_v52  ;;  %v988_v57 = vadd.f32 %v987_v53, %v917_v47  ;;  %v3455_v52 = vpop.permute.xlu1 %1301 }
 0x1d5   :  { %v2849_v58 = vpop.f32.mrf.mxu0  ;;  %v2865_v59 = vpop.f32.mrf.mxu1  ;;  %v1304_v53 = vmul.f32 %v3455_v52, %v3366_v45 }
 0x1d6   :  { %3031 = vpow2.f32 %v847_v56  ;;  %v991_v61 = vadd.f32 %v3349_v40, %v988_v57 }
 0x1d8   :  { %v992_v62 = vsub.f32 0.0, %v991_v61 }
 0x1da   :  { %v993_v63 = vmul.f32 1.442695, %v992_v62  ;;  %v1063_v5 = vpop.f32.mrf.mxu0  ;;  %v1205_v22 = vpop.f32.mrf.mxu1 }
 0x1db   :  { %v1134_v31 = vadd.f32 %v1133_v55, %v1063_v5 }
 0x1dc   :  { %3033 = vpow2.f32 %v993_v63  ;;  %v2858_v23 = vpop.f32.mrf.mxu0  ;;  %v2874_v24 = vpop.f32.mrf.mxu1 }
 0x1dd   :  { %v1137_v36 = vadd.f32 %v3360_v60, %v1134_v31 }
 0x1df   :  { %v1275_v25 = vpop.f32.mrf.mxu0 }
 0x1e0   :  { %v1276_v26 = vadd.f32 %v1275_v25, %v1205_v22 }
 0x1e1   :  { %v2881_v27 = vpop.f32.mrf.mxu0 }
 0x1e2   :  { %v1279_v28 = vadd.f32 %v3355_v54, %v1276_v26 }
 0x1e3   :  { %v3032_v30 = vpop.eup %3031 }
 0x1e4   :  { %v1280_v33 = vsub.f32 0.0, %v1279_v28  ;;  %v849_v34 = vadd.f32 1.0, %v3032_v30 }
 0x1e6   :  { %v1281_v35 = vmul.f32 1.442695, %v1280_v33 }
 0x1e8   :  { %3035 = vpow2.f32 %v1281_v35 }
 0x1e9   :  { %v3034_v37 = vpop.eup %3033  ;;  %3037 = vrcp.f32 %v849_v34 }
 0x1ea   :  { %v995_v38 = vadd.f32 1.0, %v3034_v37  ;;  %3039 = vtanh.f32 %v1137_v36  ;;  %v2616_v37 = vld [vmem:[%s3625_s7] ss:$0 sm:$0xff] }
 0x1ec   :  { %3041 = vrcp.f32 %v995_v38 }
 0x1f5   :  { %v3036_v41 = vpop.eup %3035 }
 0x1f6   :  { %v3038_v42 = vpop.eup %3037  ;;  %v1283_v2 = vadd.f32 1.0, %v3036_v41 }
 0x1f7   :  { %v3040_v43 = vpop.eup %3039 }
 0x1f8   :  { %v1286_v46 = vmul.f32 %v3040_v43, %v3038_v42  ;;  %3043 = vrcp.f32 %v1283_v2 }
 0x1f9   :  { %v3042_v44 = vpop.eup %3041 }
 0x1fa   :  { %v1285_v4 = vmul.f32 %v3042_v44, %v3364_v39 }
 0x1fc   :  { %v3450_v47 = vadd.f32 %v1286_v46, %v1285_v4 }
 0x1fe   :  { %3045 = vtanh.f32 %v3450_v47 }
 0x205   :  { %v3044_v49 = vpop.eup %3043 }
 0x20b   :  { %v3046_v50 = vpop.eup %3045 }
 0x20c   :  { %v1289_v51 = vmul.f32 %v3046_v50, %v3044_v49  ;;  %v2624_v49 = vld [vmem:[%s3625_s7 + $0x1] ss:$0 sm:$0xff] }
 0x20e   :  { %v1297_v55 = vmul.f32 %v3453_v48, %v1289_v51 }
 0x210   :  { %v3460_v56 = vadd.f32 %v1304_v53, %v1297_v55 }
 0x212   :  { %2889 = vmatmul.mubr.msk.f32.vlgmr.msra.gmra.mxu0 %vm35_vm2, %v3460_v56  ;;  %2905 = vmatmul.mubr.msk.f32.vlgmr.msra.gmra.mxu1 %vm35_vm2, %v3460_v56 }
 0x213   :  { %2908 = vmatpush3.msra.mxu0 %v3187_v9  ;;  %2924 = vmatpush3.msra.mxu1 %v3221_v13  ;;  %v1922_v9 = vld [vmem:[%s3623_s6 + $0x8] sm:$0xff]  ;;  %v1920_v13 = vld [vmem:[%s3624_s2] sm:$0x7f] }
 0x214   :  { %2909 = vmatprep.subr.mxu0 %v3079_v0  ;;  %2925 = vmatprep.subr.mxu1 %v3079_v0 }
 0x215   :  { %2910 = vmatpush3.msra.mxu0 %v3203_v11  ;;  %2926 = vmatpush3.msra.mxu1 %v3236_v15  ;;  %v1921_v11 = vld [vmem:[%s3623_s6] sm:$0xff] }
 0x216   :  { %2911 = vmatprep.mubr.msk.f32.mxu0 %vm3080_vm1, %v3079_v0  ;;  %2914 = vmatprep.subr.mxu0 %v3079_v0 }
 0x217   :  { %2927 = vmatprep.mubr.msk.f32.mxu1 %vm3080_vm1, %v3079_v0  ;;  %2930 = vmatprep.subr.mxu1 %v3079_v0 }
 0x218   :  { %2912 = vmatmul.mubr.msk.f32.vlgmr.msra.gmra.mxu0 %vm109_vm0, %v3433_v29  ;;  %2928 = vmatmul.mubr.msk.f32.vlgmr.msra.gmra.mxu1 %vm109_vm0, %v3433_v29 }
 0x219   :  { %2915 = vmatpush3.msra.mxu0 %v3216_v12  ;;  %2931 = vmatpush3.msra.mxu1 %v3255_v17 }
 0x21a   :  { %2916 = vmatprep.subr.mxu0 %v3079_v0  ;;  %2932 = vmatprep.subr.mxu1 %v3079_v0 }
 0x21b   :  { %2917 = vmatpush3.msra.mxu0 %v3231_v14  ;;  %2933 = vmatpush3.msra.mxu1 %v3266_v18 }
 0x21c   :  { %2918 = vmatprep.subr.mxu0 %v3079_v0  ;;  %2934 = vmatprep.subr.mxu1 %v3079_v0 }
 0x21d   :  { %2919 = vmatpush3.msra.mxu0 %v3245_v16  ;;  %2920 = vmatprep.mubr.msk.f32.mxu0 %vm3080_vm1, %v3079_v0 }
 0x21e   :  { %2935 = vmatpush3.msra.mxu1 %v3280_v20  ;;  %2936 = vmatprep.mubr.msk.f32.mxu1 %vm3080_vm1, %v3079_v0 }
 0x21f   :  { %2921 = vmatmul.mubr.msk.f32.vlgmr.msra.gmra.mxu0 %vm35_vm2, %v3460_v56  ;;  %2937 = vmatmul.mubr.msk.f32.vlgmr.msra.gmra.mxu1 %vm35_vm2, %v3460_v56 }
 0x220   :  { %2939 = vmatprep.subr.mxu0 %v3079_v0  ;;  %2943 = vmatprep.mubr.msk.f32.mxu0 %vm3080_vm1, %v3079_v0 }
 0x221   :  { %2940 = vmatpush3.msra.mxu0 %v3271_v19  ;;  %2955 = vmatprep.subr.mxu1 %v3079_v0 }
 0x222   :  { %2941 = vmatprep.subr.mxu0 %v3079_v0  ;;  %2956 = vmatpush3.msra.mxu1 %v1922_v9 }
 0x223   :  { %2942 = vmatpush3.msra.mxu0 %v3287_v21  ;;  %2957 = vmatprep.subr.mxu1 %v3079_v0 }
 0x224   :  { %2944 = vmatmul.mubr.msk.f32.vlgmr.msra.gmra.mxu0 %vm109_vm0, %v3433_v29  ;;  %2946 = vmatprep.subr.mxu0 %v3079_v0 }
 0x225   :  { %2947 = vmatpush3.msra.mxu0 %v3132_v1  ;;  %2958 = vmatpush3.msra.mxu1 %v1921_v11  ;;  %v2618_v1 = vld [vmem:[%s3623_s6 + $0x18] sm:$0xff] }
 0x226   :  { %2948 = vmatprep.subr.mxu0 %v3079_v0  ;;  %2959 = vmatprep.mubr.msk.f32.mxu1 %vm3080_vm1, %v3079_v0 }
 0x227   :  { %2949 = vmatpush3.msra.mxu0 %v3142_v3  ;;  %2962 = vmatprep.subr.mxu1 %v3079_v0  ;;  %v2617_v3 = vld [vmem:[%s3623_s6 + $0x10] sm:$0xff] }
 0x228   :  { %2950 = vmatprep.subr.mxu0 %v3079_v0  ;;  %2960 = vmatmul.mubr.msk.f32.vlgmr.msra.gmra.mxu1 %vm109_vm0, %v1920_v13 }
 0x229   :  { %2963 = vmatpush3.msra.mxu1 %v3171_v7  ;;  %2951 = vmatpush3.msra.mxu0 %v3163_v6  ;;  %v2626_v6 = vld [vmem:[%s3623_s6 + $0x28] sm:$0xff]  ;;  %v2625_v7 = vld [vmem:[%s3623_s6 + $0x20] sm:$0xff] }
 0x22a   :  { %2952 = vmatprep.mubr.msk.f32.mxu0 %vm3080_vm1, %v3079_v0  ;;  %2964 = vmatprep.subr.mxu1 %v3079_v0 }
 0x22b   :  { %2953 = vmatmul.mubr.f32.vlgmr.msra.gmra.mxu0 %v3079_v0  ;;  %2965 = vmatpush3.msra.mxu1 %v3182_v8  ;;  %v2634_v8 = vld [vmem:[%s3623_s6 + $0x38] sm:$0xff] }
 0x22c   :  { %2971 = vmatprep.subr.mxu0 %v3079_v0  ;;  %2966 = vmatprep.subr.mxu1 %v3079_v0 }
 0x22d   :  { %2972 = vmatpush3.msra.mxu0 %v2618_v1  ;;  %2967 = vmatpush3.msra.mxu1 %v3196_v10  ;;  %v2633_v10 = vld [vmem:[%s3623_s6 + $0x30] sm:$0xff] }
 0x22e   :  { %2968 = vmatprep.mubr.msk.f32.mxu1 %vm3080_vm1, %v3079_v0  ;;  %2973 = vmatprep.subr.mxu0 %v3079_v0 }
 0x22f   :  { %2969 = vmatmul.mubr.f32.vlgmr.msra.gmra.mxu1 %v3079_v0  ;;  %2974 = vmatpush3.msra.mxu0 %v2617_v3  ;;  %v1306_v3 = vmul.f32 %v3453_v48, %v3450_v47 }
 0x230   :  { %2975 = vmatprep.mubr.msk.f32.mxu0 %vm3080_vm1, %v3079_v0  ;;  %2978 = vmatprep.subr.mxu0 %v3079_v0 }
 0x231   :  { %2976 = vmatmul.mubr.msk.f32.vlgmr.msra.gmra.mxu0 %vm109_vm0, %v1920_v13  ;;  %2987 = vmatprep.subr.mxu1 %v3079_v0 }
 0x232   :  { %2979 = vmatpush3.msra.mxu0 %v3216_v12  ;;  %2988 = vmatpush3.msra.mxu1 %v2626_v6  ;;  %v1453_v12 = vpop.f32.mrf.mxu1 }
 0x233   :  { %2980 = vmatprep.subr.mxu0 %v3079_v0  ;;  %2989 = vmatprep.subr.mxu1 %v3079_v0 }
 0x234   :  { %2981 = vmatpush3.msra.mxu0 %v3231_v14  ;;  %2990 = vmatpush3.msra.mxu1 %v2625_v7  ;;  %v2897_v14 = vpop.f32.mrf.mxu1 }
 0x235   :  { %2982 = vmatprep.subr.mxu0 %v3079_v0  ;;  %2991 = vmatprep.mubr.msk.f32.mxu1 %vm3080_vm1, %v3079_v0 }
 0x236   :  { %2994 = vmatprep.subr.mxu1 %v3079_v0  ;;  %2983 = vmatpush3.msra.mxu0 %v3245_v16 }
 0x237   :  { %2984 = vmatprep.mubr.msk.f32.mxu0 %vm3080_vm1, %v3079_v0  ;;  %2992 = vmatmul.mubr.msk.f32.vlgmr.msra.gmra.mxu1 %vm109_vm0, %v1920_v13 }
 0x238   :  { %2995 = vmatpush3.msra.mxu1 %v3255_v17  ;;  %2985 = vmatmul.mubr.f32.vlgmr.msra.gmra.mxu0 %v3079_v0 }
 0x239   :  { %2996 = vmatprep.subr.mxu1 %v3079_v0  ;;  %3003 = vmatprep.subr.mxu0 %v3079_v0 }
 0x23a   :  { %2997 = vmatpush3.msra.mxu1 %v3266_v18  ;;  %3004 = vmatpush3.msra.mxu0 %v2634_v8 }
 0x23b   :  { %2998 = vmatprep.subr.mxu1 %v3079_v0  ;;  %3005 = vmatprep.subr.mxu0 %v3079_v0 }
 0x23c   :  { %2999 = vmatpush3.msra.mxu1 %v3280_v20  ;;  %3000 = vmatprep.mubr.msk.f32.mxu1 %vm3080_vm1, %v3079_v0 }
 0x23d   :  { %3006 = vmatpush3.msra.mxu0 %v2633_v10  ;;  %3007 = vmatprep.mubr.msk.f32.mxu0 %vm3080_vm1, %v3079_v0  ;;  %v1307_v10 = vmul.f32 %v3455_v52, %v3364_v39  ;;  %v2632_v52 = vld [vmem:[%s3625_s7 + $0x2] ss:$0 sm:$0xff] }
 0x23e   :  { %3001 = vmatmul.mubr.f32.vlgmr.msra.gmra.mxu1 %v3079_v0  ;;  %3008 = vmatmul.mubr.msk.f32.vlgmr.msra.gmra.mxu0 %vm109_vm0, %v1920_v13 }
 0x2d2   :  { %v1380_v15 = vpop.f32.mrf.mxu0  ;;  %v1529_v16 = vpop.f32.mrf.mxu1 }
 0x2d3   :  { %v1454_v17 = vadd.f32 %v1453_v12, %v1380_v15  ;;  %v1308_v15 = vadd.f32 %v1307_v10, %v1306_v3 }
 0x2d4   :  { %v2890_v18 = vpop.f32.mrf.mxu0  ;;  %v2906_v19 = vpop.f32.mrf.mxu1 }
 0x2d5   :  { %v1457_v20 = vadd.f32 %v3343_v32, %v1454_v17 }
 0x2d7   :  { %v1458_v21 = vsub.f32 0.0, %v1457_v20  ;;  %v2640_v20 = vld [vmem:[%s3625_s7 + $0x3] ss:$0 sm:$0xff] }
 0x2d8   :  { %v1599_v45 = vpop.f32.mrf.mxu0  ;;  %v1745_v29 = vpop.f32.mrf.mxu1 }
 0x2d9   :  { %v1459_v57 = vmul.f32 1.442695, %v1458_v21  ;;  %v1600_v58 = vadd.f32 %v1599_v45, %v1529_v16 }
 0x2da   :  { %v2913_v59 = vpop.f32.mrf.mxu0  ;;  %v2929_v61 = vpop.f32.mrf.mxu1 }
 0x2db   :  { %3047 = vpow2.f32 %v1459_v57  ;;  %v1603_v0 = vadd.f32 %v3349_v40, %v1600_v58 }
 0x2dd   :  { %v1604_v62 = vsub.f32 0.0, %v1603_v0 }
 0x2df   :  { %v1605_v63 = vmul.f32 1.442695, %v1604_v62  ;;  %v1675_v5 = vpop.f32.mrf.mxu0  ;;  %v1817_v22 = vpop.f32.mrf.mxu1 }
 0x2e0   :  { %v1746_v30 = vadd.f32 %v1745_v29, %v1675_v5 }
 0x2e1   :  { %3049 = vpow2.f32 %v1605_v63  ;;  %v2922_v23 = vpop.f32.mrf.mxu0  ;;  %v2938_v24 = vpop.f32.mrf.mxu1 }
 0x2e2   :  { %v1749_v38 = vadd.f32 %v3360_v60, %v1746_v30 }
 0x2e4   :  { %v1887_v25 = vpop.f32.mrf.mxu0 }
 0x2e5   :  { %v1888_v26 = vadd.f32 %v1887_v25, %v1817_v22 }
 0x2e6   :  { %v2945_v32 = vpop.f32.mrf.mxu0 }
 0x2e7   :  { %v1891_v27 = vadd.f32 %v3355_v54, %v1888_v26  ;;  %v1907_v26 = vpop.permute.xlu0 %1906  ;;  %v1914_v32 = vpop.permute.xlu1 %1913 }
 0x2e8   :  { %v3048_v28 = vpop.eup %3047  ;;  %v2065_v31 = vpop.f32.mrf.mxu1 }
 0x2e9   :  { %v1892_v33 = vsub.f32 0.0, %v1891_v27  ;;  %v1461_v35 = vadd.f32 1.0, %v3048_v28  ;;  %v1916_v27 = vmul.f32 %v1914_v32, %v3460_v56 }
 0x2ea   :  { %v2961_v34 = vpop.f32.mrf.mxu1 }
 0x2eb   :  { %v1893_v36 = vmul.f32 1.442695, %v1892_v33  ;;  %v1992_v40 = vpop.f32.mrf.mxu0 }
 0x2ec   :  { %v2066_v41 = vadd.f32 %v2065_v31, %v1992_v40 }
 0x2ed   :  { %v2954_v42 = vpop.f32.mrf.mxu0  ;;  %3051 = vpow2.f32 %v1893_v36 }
 0x2ee   :  { %v3050_v43 = vpop.eup %3049  ;;  %v2076_v44 = vadd.f32 %v2616_v37, %v2066_v41  ;;  %3053 = vrcp.f32 %v1461_v35 }
 0x2ef   :  { %v1607_v54 = vadd.f32 1.0, %v3050_v43  ;;  %v2154_v2 = vpop.f32.mrf.mxu1  ;;  %3055 = vtanh.f32 %v1749_v38 }
 0x2f0   :  { %v2077_v4 = vsub.f32 0.0, %v2076_v44 }
 0x2f1   :  { %3057 = vrcp.f32 %v1607_v54  ;;  %v2224_v46 = vpop.f32.mrf.mxu0  ;;  %v2970_v50 = vpop.f32.mrf.mxu1 }
 0x2f2   :  { %v2078_v51 = vmul.f32 1.442695, %v2077_v4  ;;  %v2225_v53 = vadd.f32 %v2224_v46, %v2154_v2 }
 0x2f3   :  { %v2977_v60 = vpop.f32.mrf.mxu0 }
 0x2f4   :  { %3059 = vpow2.f32 %v2078_v51  ;;  %v2236_v55 = vadd.f32 %v2624_v49, %v2225_v53 }
 0x2f6   :  { %v2237_v9 = vsub.f32 0.0, %v2236_v55 }
 0x2f7   :  { %v2384_v11 = vpop.f32.mrf.mxu1 }
 0x2f8   :  { %v2238_v13 = vmul.f32 1.442695, %v2237_v9  ;;  %v2314_v1 = vpop.f32.mrf.mxu0 }
 0x2f9   :  { %v2993_v6 = vpop.f32.mrf.mxu1  ;;  %v2385_v59 = vadd.f32 %v2384_v11, %v2314_v1 }
 0x2fa   :  { %3061 = vpow2.f32 %v2238_v13  ;;  %v2986_v7 = vpop.f32.mrf.mxu0  ;;  %v3052_v8 = vpop.eup %3051 }
 0x2fb   :  { %v3054_v12 = vpop.eup %3053  ;;  %v1895_v17 = vadd.f32 1.0, %v3052_v8  ;;  %v2396_v62 = vadd.f32 %v2632_v52, %v2385_v59 }
 0x2fc   :  { %v3056_v14 = vpop.eup %3055 }
 0x2fd   :  { %v1898_v47 = vmul.f32 %v3056_v14, %v3054_v12  ;;  %3063 = vrcp.f32 %v1895_v17 }
 0x2fe   :  { %v3058_v16 = vpop.eup %3057  ;;  %v2470_v18 = vpop.f32.mrf.mxu1 }
 0x2ff   :  { %v2540_v19 = vpop.f32.mrf.mxu0  ;;  %v1897_v21 = vmul.f32 %v3058_v16, %v1308_v15 }
 0x300   :  { %v2541_v48 = vadd.f32 %v2540_v19, %v2470_v18  ;;  %v3002_v45 = vpop.f32.mrf.mxu1 }
 0x301   :  { %v3009_v29 = vpop.f32.mrf.mxu0  ;;  %v3060_v57 = vpop.eup %3059  ;;  %v1899_v58 = vadd.f32 %v1898_v47, %v1897_v21 }
 0x302   :  { %v2552_v39 = vadd.f32 %v2640_v20, %v2541_v48  ;;  %v2080_v0 = vadd.f32 1.0, %v3060_v57 }
 0x303   :  { %3065 = vtanh.f32 %v1899_v58 }
 0x304   :  { %v2553_v61 = vsub.f32 0.0, %v2552_v39 }
 0x306   :  { %v2554_v63 = vmul.f32 1.442695, %v2553_v61 }
 0x307   :  { %v3062_v5 = vpop.eup %3061 }
 0x308   :  { %3067 = vpow2.f32 %v2554_v63  ;;  %v2240_v22 = vadd.f32 1.0, %v3062_v5 }
 0x309   :  { %3069 = vrcp.f32 %v2080_v0 }
 0x30a   :  { %3071 = vtanh.f32 %v2396_v62  ;;  %v3064_v23 = vpop.eup %3063 }
 0x30b   :  { %3073 = vrcp.f32 %v2240_v22 }
 0x310   :  { %v3066_v24 = vpop.eup %3065 }
 0x311   :  { %v1901_v25 = vmul.f32 %v3066_v24, %v3064_v23 }
 0x313   :  { %v1909_v28 = vmul.f32 %v1907_v26, %v1901_v25 }
 0x315   :  { %v3068_v30 = vpop.eup %3067  ;;  %v1917_v33 = vadd.f32 %v1916_v27, %v1909_v28 }
 0x316   :  { %v3070_v31 = vpop.eup %3069  ;;  %v2556_v35 = vadd.f32 1.0, %v3068_v30 }
 0x317   :  { %v3072_v34 = vpop.eup %3071  ;;  %1919 = vst.msk [vmem:[%s3626_s8] sm:$0x7f] %vm1918_vm3, %v1917_v33 }
 0x318   :  { %v3074_v36 = vpop.eup %3073  ;;  %v2559_v37 = vmul.f32 %v3072_v34, %v3070_v31  ;;  %3075 = vrcp.f32 %v2556_v35 }
 0x319   :  { %v2558_v40 = vmul.f32 0.0, %v3074_v36 }
 0x31b   :  { %v2560_v38 = vadd.f32 %v2559_v37, %v2558_v40 }
 0x31d   :  { %3077 = vtanh.f32 %v2560_v38 }
 0x325   :  { %v3076_v41 = vpop.eup %3075 }
 0x32a   :  { %v3078_v42 = vpop.eup %3077 }
 0x32b   :  { %v2562_v56 = vmul.f32 %v3078_v42, %v3076_v41 }
 0x32d   :  { %2641 = vst.msk [vmem:[%s3626_s8 + $0x8] sm:$0x7f] %vm1918_vm3, %v2562_v56 }

// kernel: fwd.11
= control target key start
LH: loop header
LB: loop body
LE: loop exit
PB: predicated region body
PF: predicated region fallthrough
CT: control target
= control target key end

     0   :  { %v5976_v0 = vmov 0.0   ;;  %vm5977_vm0 = vmmov 0   ;;  %vm82_vm1 = vcmask 130048   ;;  %vm832_vm2 = vcmask 1043456   ;;  %s7224_s10 = inlined_call_operand.vmem [shape: f32[8,16,16], index: 10, kind: input, shape index: {}]   ;;  %s7225_s2 = inlined_call_operand.vmem [shape: f32[8,8,16], index: 2, kind: input, shape index: {}]   ;;  %s7226_s12 = inlined_call_operand.vmem [shape: f32[16,16], index: 12, kind: input, shape index: {}]   ;;  %s7227_s3 = inlined_call_operand.vmem [shape: f32[8,16], index: 3, kind: input, shape index: {}]   ;;  %s7228_s6 = inlined_call_operand.vmem [shape: f32[4,16,16], index: 6, kind: input, shape index: {}]   ;;  %s7229_s5 = inlined_call_operand.vmem [shape: f32[4,12,16], index: 5, kind: input, shape index: {}]   ;;  %s7230_s1 = inlined_call_operand.vmem [shape: f32[3,8,12], index: 1, kind: input, shape index: {}]   ;;  %s7231_s8 = inlined_call_operand.vmem [shape: f32[16,16], index: 8, kind: input, shape index: {}]   ;;  %s7232_s7 = inlined_call_operand.vmem [shape: f32[4,1,16], index: 7, kind: input, shape index: {}]   ;;  %s7233_s14 = inlined_call_operand.vmem [shape: f32[8,16,1], index: 14, kind: input, shape index: {}]   ;;  %s7234_s13 = inlined_call_operand.vmem [shape: f32[1,16], index: 13, kind: input, shape index: {}]   ;;  %s7235_s9 = inlined_call_operand.vmem [shape: f32[1,16], index: 9, kind: input, shape index: {}]   ;;  %s7236_s11 = inlined_call_operand.vmem [shape: f32[1,1,16], index: 11, kind: input, shape index: {}]   ;;  %s7237_s4 = inlined_call_operand.vmem [shape: f32[8,8,1], index: 4, kind: input, shape index: {}]   ;;  %s7238_s0 = inlined_call_operand.<no memory space> [shape: f32[1], index: 0, kind: input, shape index: {}]   ;;  %s7239_s15 = inlined_call_operand.vmem [shape: f32[3,8,8,1], index: 15, kind: output, shape index: {}]  }
   0x1   :  { %5505 = vmatprep.subr.mxu0 %v5976_v0  ;;  %v60_v1 = vld [vmem:[%s7224_s10 + $0x8] sm:$0xff]  ;;  %v59_v2 = vld [vmem:[%s7224_s10] sm:$0xff]  ;;  %5509 = vmatprep.mubr.msk.f32.mxu0 %vm5977_vm0, %v5976_v0  ;;  %v62_v4 = vld [vmem:[%s7224_s10 + $0x18] sm:$0xff]  ;;  %vm828_vm3 = vcmask 97280   ;;  %vm2224_vm5 = vcmask 7168  }
   0x2   :  { %5506 = vmatpush3.msra.mxu0 %v60_v1  ;;  %5512 = vmatprep.subr.mxu1 %v5976_v0  ;;  %v51_v3 = vld [vmem:[%s7225_s2] sm:$0xff]  ;;  %v64_v5 = vld [vmem:[%s7224_s10 + $0x28] sm:$0xff]  ;;  %v61_v6 = vld [vmem:[%s7224_s10 + $0x10] sm:$0xff] }
   0x3   :  { %5507 = vmatprep.subr.mxu0 %v5976_v0  ;;  %5513 = vmatpush3.msra.mxu1 %v62_v4  ;;  %v52_v7 = vld [vmem:[%s7225_s2 + $0x8] sm:$0xff]  ;;  %v63_v8 = vld [vmem:[%s7224_s10 + $0x20] sm:$0xff]  ;;  %v53_v9 = vld [vmem:[%s7225_s2 + $0x10] sm:$0xff] }
   0x4   :  { %5508 = vmatpush3.msra.mxu0 %v59_v2  ;;  %5514 = vmatprep.subr.mxu1 %v5976_v0  ;;  %v66_v10 = vld [vmem:[%s7224_s10 + $0x38] sm:$0xff]  ;;  %v68_v11 = vld [vmem:[%s7224_s10 + $0x48] sm:$0xff]  ;;  %v65_v12 = vld [vmem:[%s7224_s10 + $0x30] sm:$0xff] }
   0x5   :  { %5510 = vmatmul.mubr.msk.f32.vlgmr.msra.gmra.mxu0 %vm82_vm1, %v51_v3  ;;  %5519 = vmatprep.subr.mxu0 %v5976_v0  ;;  %v54_v13 = vld [vmem:[%s7225_s2 + $0x18] sm:$0xff]  ;;  %v67_v14 = vld [vmem:[%s7224_s10 + $0x40] sm:$0xff]  ;;  %v72_v17 = vld [vmem:[%s7224_s10 + $0x68] sm:$0xff] }
   0x6   :  { %5520 = vmatpush3.msra.mxu0 %v64_v5  ;;  %5515 = vmatpush3.msra.mxu1 %v61_v6  ;;  %v55_v15 = vld [vmem:[%s7225_s2 + $0x20] sm:$0xff]  ;;  %v70_v16 = vld [vmem:[%s7224_s10 + $0x58] sm:$0xff]  ;;  %v69_v18 = vld [vmem:[%s7224_s10 + $0x50] sm:$0xff] }
   0x7   :  { %5516 = vmatprep.mubr.msk.f32.mxu1 %vm5977_vm0, %v5976_v0  ;;  %5521 = vmatprep.subr.mxu0 %v5976_v0  ;;  %v56_v19 = vld [vmem:[%s7225_s2 + $0x28] sm:$0xff]  ;;  %v71_v20 = vld [vmem:[%s7224_s10 + $0x60] sm:$0xff]  ;;  %v57_v21 = vld [vmem:[%s7225_s2 + $0x30] sm:$0xff] }
   0x8   :  { %5517 = vmatmul.mubr.msk.f32.vlgmr.msra.gmra.mxu1 %vm82_vm1, %v52_v7  ;;  %5522 = vmatpush3.msra.mxu0 %v63_v8  ;;  %v74_v22 = vld [vmem:[%s7224_s10 + $0x78] sm:$0xff]  ;;  %v669_v23 = vld [vmem:[%s7226_s12 + $0x8] sm:$0xff]  ;;  %v73_v24 = vld [vmem:[%s7224_s10 + $0x70] sm:$0xff] }
   0x9   :  { %5523 = vmatprep.mubr.msk.f32.mxu0 %vm5977_vm0, %v5976_v0  ;;  %5526 = vmatprep.subr.mxu1 %v5976_v0  ;;  %v58_v25 = vld [vmem:[%s7225_s2 + $0x38] sm:$0xff]  ;;  %v668_v26 = vld [vmem:[%s7226_s12] sm:$0xff]  ;;  %v6184_v28 = vld [vmem:[%s7228_s6 + $0x8] sm:$0xff] }
   0xa   :  { %5524 = vmatmul.mubr.msk.f32.vlgmr.msra.gmra.mxu0 %vm82_vm1, %v53_v9  ;;  %5527 = vmatpush3.msra.mxu1 %v66_v10  ;;  %v667_v27 = vld [vmem:[%s7227_s3] sm:$0xff]  ;;  %v752_v29 = vld [vmem:[%s7229_s5 + $0x8] sm:$0xf]  ;;  %v6218_v33 = vld [vmem:[%s7228_s6 + $0x18] sm:$0xff] }
   0xb   :  { %5533 = vmatprep.subr.mxu0 %v5976_v0  ;;  %5528 = vmatprep.subr.mxu1 %v5976_v0  ;;  %v6196_v30 = vld [vmem:[%s7228_s6] sm:$0xff]  ;;  %v5192_v34 = vld [vmem:[%s7229_s5 + $0x18] sm:$0xf]  ;;  %v6231_v35 = vld [vmem:[%s7228_s6 + $0x10] sm:$0xff] }
   0xc   :  { %5534 = vmatpush3.msra.mxu0 %v68_v11  ;;  %5529 = vmatpush3.msra.mxu1 %v65_v12  ;;  %v6205_v31 = vld [vmem:[%s7229_s5] sm:$0xff]  ;;  %v6240_v36 = vld [vmem:[%s7229_s5 + $0x10] sm:$0xff]  ;;  %v6252_v37 = vld [vmem:[%s7228_s6 + $0x28] sm:$0xff] }
   0xd   :  { %5530 = vmatprep.mubr.msk.f32.mxu1 %vm5977_vm0, %v5976_v0  ;;  %5535 = vmatprep.subr.mxu0 %v5976_v0  ;;  %v750_v32 = vld [vmem:[%s7230_s1] sm:$0xff]  ;;  %v5200_v38 = vld [vmem:[%s7229_s5 + $0x28] sm:$0xf]  ;;  %v6285_v41 = vld [vmem:[%s7228_s6 + $0x38] sm:$0xff] }
   0xe   :  { %5531 = vmatmul.mubr.msk.f32.vlgmr.msra.gmra.mxu1 %vm82_vm1, %v54_v13  ;;  %5536 = vmatpush3.msra.mxu0 %v67_v14  ;;  %v6265_v39 = vld [vmem:[%s7228_s6 + $0x20] sm:$0xff]  ;;  %v5208_v42 = vld [vmem:[%s7229_s5 + $0x38] sm:$0xf]  ;;  %v6297_v43 = vld [vmem:[%s7228_s6 + $0x30] sm:$0xff] }
   0xf   :  { %5537 = vmatprep.mubr.msk.f32.mxu0 %vm5977_vm0, %v5976_v0  ;;  %5540 = vmatprep.subr.mxu1 %v5976_v0  ;;  %v6272_v40 = vld [vmem:[%s7229_s5 + $0x20] sm:$0xff]  ;;  %v6304_v44 = vld [vmem:[%s7229_s5 + $0x30] sm:$0xff]  ;;  %v6325_v45 = vld [vmem:[%s7231_s8 + $0x8] sm:$0xff] }
  0x10   :  { %5538 = vmatmul.mubr.msk.f32.vlgmr.msra.gmra.mxu0 %vm82_vm1, %v55_v15  ;;  %5541 = vmatpush3.msra.mxu1 %v70_v16  ;;  %v6330_v46 = vld [vmem:[%s7231_s8] sm:$0xff] }
  0x11   :  { %5547 = vmatprep.subr.mxu0 %v5976_v0  ;;  %5542 = vmatprep.subr.mxu1 %v5976_v0  ;;  %v6357_v4 = vld [vmem:[%s7232_s7] ss:$0 sm:$0xff]  ;;  %v6363_v12 = vld [vmem:[%s7232_s7 + $0x1] ss:$0 sm:$0xff] }
  0x12   :  { %5548 = vmatpush3.msra.mxu0 %v72_v17  ;;  %5543 = vmatpush3.msra.mxu1 %v69_v18 }
  0x13   :  { %5544 = vmatprep.mubr.msk.f32.mxu1 %vm5977_vm0, %v5976_v0  ;;  %5549 = vmatprep.subr.mxu0 %v5976_v0 }
  0x14   :  { %5545 = vmatmul.mubr.msk.f32.vlgmr.msra.gmra.mxu1 %vm82_vm1, %v56_v19  ;;  %5550 = vmatpush3.msra.mxu0 %v71_v20 }
  0x15   :  { %5551 = vmatprep.mubr.msk.f32.mxu0 %vm5977_vm0, %v5976_v0  ;;  %5554 = vmatprep.subr.mxu1 %v5976_v0 }
  0x16   :  { %5552 = vmatmul.mubr.msk.f32.vlgmr.msra.gmra.mxu0 %vm82_vm1, %v57_v21  ;;  %5555 = vmatpush3.msra.mxu1 %v74_v22 }
  0x17   :  { %5561 = vmatprep.subr.mxu0 %v5976_v0  ;;  %5556 = vmatprep.subr.mxu1 %v5976_v0 }
  0x18   :  { %5562 = vmatpush3.msra.mxu0 %v669_v23  ;;  %5557 = vmatpush3.msra.mxu1 %v73_v24 }
  0x19   :  { %5558 = vmatprep.mubr.msk.f32.mxu1 %vm5977_vm0, %v5976_v0  ;;  %5563 = vmatprep.subr.mxu0 %v5976_v0 }
  0x1a   :  { %5559 = vmatmul.mubr.msk.f32.vlgmr.msra.gmra.mxu1 %vm82_vm1, %v58_v25  ;;  %5564 = vmatpush3.msra.mxu0 %v668_v26  ;;  %v6369_v26 = vld [vmem:[%s7232_s7 + $0x3] ss:$0 sm:$0xff] }
  0x1b   :  { %5565 = vmatprep.mubr.msk.f32.mxu0 %vm5977_vm0, %v5976_v0  ;;  %5568 = vmatprep.subr.mxu1 %v5976_v0 }
  0x1c   :  { %5566 = vmatmul.mubr.msk.f32.vlgmr.msra.gmra.mxu0 %vm82_vm1, %v667_v27  ;;  %5569 = vmatpush3.msra.mxu1 %v6184_v28 }
  0x1d   :  { %5575 = vmatprep.subr.mxu0 %v5976_v0  ;;  %5570 = vmatprep.subr.mxu1 %v5976_v0 }
  0x1e   :  { %5576 = vmatpush3.msk.msra.mxu0 %vm832_vm2, %v752_v29  ;;  %5571 = vmatpush3.msra.mxu1 %v6196_v30 }
  0x1f   :  { %5572 = vmatprep.mubr.msk.f32.mxu1 %vm5977_vm0, %v5976_v0  ;;  %5577 = vmatprep.subr.mxu0 %v5976_v0 }
  0x20   :  { %5573 = vmatmul.mubr.f32.vlgmr.msra.gmra.mxu1 %v5976_v0  ;;  %5578 = vmatpush3.msra.mxu0 %v6205_v31 }
  0x21   :  { %5579 = vmatprep.mubr.msk.f32.mxu0 %vm5977_vm0, %v5976_v0  ;;  %5582 = vmatprep.subr.mxu1 %v5976_v0 }
  0x22   :  { %5580 = vmatmul.mubr.msk.f32.vlgmr.msra.gmra.mxu0 %vm828_vm3, %v750_v32  ;;  %5583 = vmatpush3.msra.mxu1 %v6218_v33 }
  0x23   :  { %5589 = vmatprep.subr.mxu0 %v5976_v0  ;;  %5584 = vmatprep.subr.mxu1 %v5976_v0 }
  0x24   :  { %5590 = vmatpush3.msk.msra.mxu0 %vm832_vm2, %v5192_v34  ;;  %5585 = vmatpush3.msra.mxu1 %v6231_v35 }
  0x25   :  { %5586 = vmatprep.mubr.msk.f32.mxu1 %vm5977_vm0, %v5976_v0  ;;  %5591 = vmatprep.subr.mxu0 %v5976_v0 }
  0x26   :  { %5587 = vmatmul.mubr.f32.vlgmr.msra.gmra.mxu1 %v5976_v0  ;;  %5592 = vmatpush3.msra.mxu0 %v6240_v36 }
  0x27   :  { %5593 = vmatprep.mubr.msk.f32.mxu0 %vm5977_vm0, %v5976_v0  ;;  %5596 = vmatprep.subr.mxu1 %v5976_v0 }
  0x28   :  { %5594 = vmatmul.mubr.msk.f32.vlgmr.msra.gmra.mxu0 %vm828_vm3, %v750_v32  ;;  %5603 = vmatprep.subr.mxu0 %v5976_v0 }
  0x29   :  { %5597 = vmatpush3.msra.mxu1 %v6252_v37  ;;  %5604 = vmatpush3.msk.msra.mxu0 %vm832_vm2, %v5200_v38 }
  0x2a   :  { %5598 = vmatprep.subr.mxu1 %v5976_v0  ;;  %5605 = vmatprep.subr.mxu0 %v5976_v0 }
  0x2b   :  { %5599 = vmatpush3.msra.mxu1 %v6265_v39  ;;  %5600 = vmatprep.mubr.msk.f32.mxu1 %vm5977_vm0, %v5976_v0 }
  0x2c   :  { %5606 = vmatpush3.msra.mxu0 %v6272_v40  ;;  %5607 = vmatprep.mubr.msk.f32.mxu0 %vm5977_vm0, %v5976_v0 }
  0x2d   :  { %5601 = vmatmul.mubr.f32.vlgmr.msra.gmra.mxu1 %v5976_v0  ;;  %5608 = vmatmul.mubr.msk.f32.vlgmr.msra.gmra.mxu0 %vm828_vm3, %v750_v32 }
  0x2e   :  { %5610 = vmatprep.subr.mxu1 %v5976_v0  ;;  %5617 = vmatprep.subr.mxu0 %v5976_v0 }
  0x2f   :  { %5611 = vmatpush3.msra.mxu1 %v6285_v41  ;;  %5618 = vmatpush3.msk.msra.mxu0 %vm832_vm2, %v5208_v42 }
  0x30   :  { %5612 = vmatprep.subr.mxu1 %v5976_v0  ;;  %5619 = vmatprep.subr.mxu0 %v5976_v0 }
  0x31   :  { %5613 = vmatpush3.msra.mxu1 %v6297_v43  ;;  %5614 = vmatprep.mubr.msk.f32.mxu1 %vm5977_vm0, %v5976_v0 }
  0x32   :  { %5620 = vmatpush3.msra.mxu0 %v6304_v44  ;;  %5621 = vmatprep.mubr.msk.f32.mxu0 %vm5977_vm0, %v5976_v0 }
  0x33   :  { %5615 = vmatmul.mubr.f32.vlgmr.msra.gmra.mxu1 %v5976_v0  ;;  %5622 = vmatmul.mubr.msk.f32.vlgmr.msra.gmra.mxu0 %vm828_vm3, %v750_v32 }
  0x34   :  { %5624 = vmatprep.subr.mxu1 %v5976_v0  ;;  %5628 = vmatprep.mubr.msk.f32.mxu1 %vm5977_vm0, %v5976_v0 }
  0x35   :  { %5631 = vmatprep.subr.mxu0 %v5976_v0  ;;  %5635 = vmatprep.mubr.msk.f32.mxu0 %vm5977_vm0, %v5976_v0 }
  0x36   :  { %5625 = vmatpush3.msra.mxu1 %v6325_v45 }
  0x37   :  { %5626 = vmatprep.subr.mxu1 %v5976_v0 }
  0x38   :  { %5627 = vmatpush3.msra.mxu1 %v6330_v46 }
  0x39   :  { %5638 = vmatprep.subr.mxu1 %v5976_v0 }
  0xc5   :  { %v6336_v47 = vpop.f32.mrf.mxu0 }
  0xc7   :  { %v5511_v48 = vpop.f32.mrf.mxu0 }
  0xc8   :  { %v6338_v49 = vpop.f32.mrf.mxu1 }
  0xca   :  { %v6340_v50 = vpop.f32.mrf.mxu0  ;;  %v5518_v51 = vpop.f32.mrf.mxu1 }
  0xcb   :  { %v6375_v51 = vld [vmem:[%s7232_s7 + $0x2] ss:$0 sm:$0xff] }
  0xcc   :  { %v5525_v52 = vpop.f32.mrf.mxu0 }
  0xce   :  { %v6342_v53 = vpop.f32.mrf.mxu1 }
  0xd0   :  { %v6344_v54 = vpop.f32.mrf.mxu0  ;;  %v5532_v55 = vpop.f32.mrf.mxu1 }
  0xd2   :  { %v5539_v56 = vpop.f32.mrf.mxu0 }
  0xd4   :  { %v6346_v57 = vpop.f32.mrf.mxu1 }
  0xd6   :  { %v6348_v58 = vpop.f32.mrf.mxu0  ;;  %v5546_v59 = vpop.f32.mrf.mxu1 }
  0xd8   :  { %v5553_v60 = vpop.f32.mrf.mxu0 }
  0xda   :  { %v6350_v61 = vpop.f32.mrf.mxu1 }
  0xdc   :  { %v6352_v62 = vpop.f32.mrf.mxu0  ;;  %v5560_v63 = vpop.f32.mrf.mxu1 }
  0xde   :  { %v5567_v1 = vpop.f32.mrf.mxu0 }
  0xe0   :  { %v824_v2 = vpop.f32.mrf.mxu1 }
  0xe2   :  { %v902_v3 = vpop.f32.mrf.mxu0  ;;  %v5574_v5 = vpop.f32.mrf.mxu1 }
  0xe3   :  { %v903_v6 = vadd.f32 %v902_v3, %v824_v2 }
  0xe4   :  { %v5581_v7 = vpop.f32.mrf.mxu0 }
  0xe5   :  { %v913_v8 = vadd.f32 %v6357_v4, %v903_v6 }
  0xe6   :  { %v991_v9 = vpop.f32.mrf.mxu1 }
  0xe7   :  { %v914_v10 = vsub.f32 0.0, %v913_v8 }
  0xe8   :  { %v1064_v11 = vpop.f32.mrf.mxu0  ;;  %v5588_v13 = vpop.f32.mrf.mxu1 }
  0xe9   :  { %v915_v14 = vmul.f32 1.442695, %v914_v10  ;;  %v1065_v15 = vadd.f32 %v1064_v11, %v991_v9  ;;  %v6390_v13 = vld [vmem:[%s7233_s14 + $0x8] sm:$0xff] }
  0xea   :  { %v5595_v16 = vpop.f32.mrf.mxu0  ;;  %5632 = vmatpush3.msra.mxu0 %v6390_v13 }
  0xeb   :  { %5928 = vpow2.f32 %v915_v14  ;;  %v1076_v17 = vadd.f32 %v6363_v12, %v1065_v15  ;;  %5633 = vmatprep.subr.mxu0 %v5976_v0  ;;  %v6397_v14 = vld [vmem:[%s7233_s14] sm:$0xff]  ;;  %v6402_v15 = vld [vmem:[%s7233_s14 + $0x18] sm:$0xff]  ;;  %v6411_v16 = vld [vmem:[%s7233_s14 + $0x10] sm:$0xff] }
  0xec   :  { %5634 = vmatpush3.msra.mxu0 %v6397_v14 }
  0xed   :  { %v1077_v18 = vsub.f32 0.0, %v1076_v17  ;;  %v1154_v19 = vpop.f32.mrf.mxu1  ;;  %v1227_v20 = vpop.f32.mrf.mxu0  ;;  %5645 = vmatprep.subr.mxu0 %v5976_v0  ;;  %v5978_v17 = vmov 1966171168  }
  0xee   :  { %v1228_v42 = vadd.f32 %v1227_v20, %v1154_v19  ;;  %v1497_v19 = vlaneseq }
  0xef   :  { %v1078_v21 = vmul.f32 1.442695, %v1077_v18  ;;  %v5602_v22 = vpop.f32.mrf.mxu1  ;;  %v5609_v23 = vpop.f32.mrf.mxu0  ;;  %v1495_v18 = vunpack.c.l.s4 %v5978_v17 }
  0xf0   :  { %v1239_v56 = vadd.f32 %v6375_v51, %v1228_v42  ;;  %v5186_v22 = vld [vmem:[%s7234_s13] ss:$0 sm:$0xff] }
  0xf1   :  { %5930 = vpow2.f32 %v1078_v21  ;;  %v1496_v20 = vunpack.c.0.s8 %v1495_v18  ;;  %v1498_v21 = vshrl.u32 %v1497_v19, 7  ;;  %v6421_v23 = vld [vmem:[%s7235_s9] ss:$0 sm:$0xff] }
  0xf3   :  { %v1313_v24 = vpop.f32.mrf.mxu1  ;;  %v1386_v25 = vpop.f32.mrf.mxu0 }
  0xf4   :  { %v1387_v27 = vadd.f32 %v1386_v25, %v1313_v24  ;;  %v6424_v25 = vadd.f32 %v5186_v22, %v6352_v62 }
  0xf5   :  { %v5616_v29 = vpop.f32.mrf.mxu1  ;;  %v5623_v32 = vpop.f32.mrf.mxu0 }
  0xf6   :  { %v1398_v34 = vadd.f32 %v6369_v26, %v1387_v27  ;;  %v6427_v29 = vsub.s32 %v1496_v20, %v1498_v21 }
  0xf8   :  { %v5929_v38 = vpop.eup %5928  ;;  %v1399_v48 = vsub.f32 0.0, %v1398_v34 }
  0xf9   :  { %v917_v55 = vadd.f32 1.0, %v5929_v38 }
  0xfa   :  { %v1400_v52 = vmul.f32 1.442695, %v1399_v48  ;;  %v6431_v48 = vsub.s32 0, %v1498_v21 }
  0xfc   :  { %5932 = vpow2.f32 %v1400_v52  ;;  %v6436_v52 = vld [vmem:[%s7236_s11] ss:$0 sm:$0xff] }
  0xfd   :  { %5934 = vrcp.f32 %v917_v55 }
  0xfe   :  { %v5931_v59 = vpop.eup %5930  ;;  %5936 = vtanh.f32 %v1239_v56 }
  0xff   :  { %v1080_v60 = vadd.f32 1.0, %v5931_v59 }
 0x101   :  { %5938 = vrcp.f32 %v1080_v60 }
 0x109   :  { %v5933_v63 = vpop.eup %5932 }
 0x10a   :  { %v5935_v1 = vpop.eup %5934  ;;  %v1402_v3 = vadd.f32 1.0, %v5933_v63  ;;  %v6443_v63 = vadd.f32 %v6436_v52, %v6336_v47 }
 0x10b   :  { %v5937_v2 = vpop.eup %5936 }
 0x10c   :  { %v1405_v7 = vmul.f32 %v5937_v2, %v5935_v1  ;;  %5940 = vrcp.f32 %v1402_v3  ;;  %v6448_v2 = vadd.f32 %v6436_v52, %v6338_v49  ;;  %v6462_v49 = vld [vmem:[%s7233_s14 + $0x28] sm:$0xff] }
 0x10e   :  { %v5939_v5 = vpop.eup %5938 }
 0x10f   :  { %v1404_v6 = vmul.f32 0.0, %v5939_v5 }
 0x111   :  { %v6378_v8 = vadd.f32 %v1405_v7, %v1404_v6  ;;  %v6453_v7 = vadd.f32 %v6436_v52, %v6340_v50  ;;  %v6468_v50 = vadd.f32 %v6436_v52, %v6342_v53 }
 0x113   :  { %5942 = vtanh.f32 %v6378_v8 }
 0x119   :  { %v5941_v9 = vpop.eup %5940 }
 0x120   :  { %v5943_v10 = vpop.eup %5942 }
 0x121   :  { %v6381_v11 = vmul.f32 %v5943_v10, %v5941_v9 }
 0x123   :  { %5629 = vmatmul.mubr.msk.f32.vlgmr.msra.gmra.mxu1 %vm82_vm1, %v6381_v11 }
 0x124   :  { %5642 = vmatprep.mubr.msk.f32.mxu1 %vm5977_vm0, %v5976_v0  ;;  %5639 = vmatpush3.msra.mxu1 %v6402_v15 }
 0x125   :  { %5640 = vmatprep.subr.mxu1 %v5976_v0 }
 0x126   :  { %5641 = vmatpush3.msra.mxu1 %v6411_v16 }
 0x127   :  { %5652 = vmatprep.subr.mxu1 %v5976_v0 }
 0x1e3   :  { %v1487_v24 = vpop.f32.mrf.mxu1 }
 0x1e4   :  { %v1488_v27 = vadd.f32 %v6421_v23, %v1487_v24 }
 0x1e5   :  { %v5630_v32 = vpop.f32.mrf.mxu1 }
 0x1e6   :  { %v1491_v34 = vadd.f32 %v1488_v27, %v6424_v25  ;;  %v6476_v27 = vld [vmem:[%s7233_s14 + $0x20] sm:$0xff]  ;;  %v6481_v32 = vld [vmem:[%s7233_s14 + $0x38] sm:$0xff] }
 0x1e8   :  { %v1493_v38 = vcombine.high %v1491_v34, %v1491_v34  ;;  %v1500_v42 = vrot.slane %v1491_v34, %v6427_v29  ;;  %v6489_v34 = vadd.f32 %v6436_v52, %v6344_v54  ;;  %v6504_v54 = vld [vmem:[%s7233_s14 + $0x48] sm:$0xff] }
 0x1ea   :  { %v1507_v62 = vrot.slane %v1493_v38, %v6427_v29  ;;  %v1508_v55 = vcombine.high %v1500_v42, %v1500_v42  ;;  %v1516_v56 = vrot.slane %v1500_v42, %v6427_v29 }
 0x1ec   :  { %v1530_v59 = vrot.slane %v1508_v55, %v6427_v29  ;;  %v1538_v60 = vcombine.high %v1516_v56, %v1516_v56  ;;  %v1545_v1 = vrot.slane %v1516_v56, %v6431_v48  ;;  %v1509_v3 = vcombine.high %v1507_v62, %v1507_v62 }
 0x1ed   :  { %v1523_v9 = vrot.slane %v1507_v62, %v6427_v29  ;;  %v6496_v62 = vld [vmem:[%s7233_s14 + $0x30] sm:$0xff] }
 0x1ee   :  { %v1540_v5 = vcombine.high %v1530_v59, %v1530_v59  ;;  %v1549_v6 = vrot.slane %v1530_v59, %v6431_v48  ;;  %v1553_v10 = vrot.slane %v1538_v60, %v6431_v48  ;;  %v1582_v47 = vadd.f32 %v1545_v1, %v6443_v63 }
 0x1ef   :  { %v1537_v21 = vrot.slane %v1509_v3, %v6427_v29  ;;  %v1561_v22 = vrot.slane %v1523_v9, %v6431_v48  ;;  %v1539_v38 = vcombine.high %v1523_v9, %v1523_v9  ;;  %v6511_v59 = vadd.f32 %v6436_v52, %v6346_v57  ;;  %v6518_v3 = vld [vmem:[%s7233_s14 + $0x40] sm:$0xff]  ;;  %v6527_v57 = vld [vmem:[%s7233_s14 + $0x58] sm:$0xff] }
 0x1f0   :  { %v1557_v17 = vrot.slane %v1540_v5, %v6431_v48  ;;  %v1590_v18 = vmax.f32 %v1582_v47, 0.0  ;;  %v1583_v19 = vadd.f32 %v1549_v6, %v6448_v2  ;;  %v1584_v20 = vadd.f32 %v1553_v10, %v6453_v7  ;;  %v6541_v47 = vld [vmem:[%s7233_s14 + $0x50] sm:$0xff] }
 0x1f1   :  { %v1565_v55 = vrot.slane %v1537_v21, %v6431_v48  ;;  %v1586_v56 = vadd.f32 %v1561_v22, %v6489_v34  ;;  %v1541_v60 = vcombine.high %v1537_v21, %v1537_v21  ;;  %v1569_v5 = vrot.slane %v1539_v38, %v6431_v48  ;;  %v6564_v21 = vld [vmem:[%s7233_s14 + $0x60] sm:$0xff]  ;;  %v2236_v38 = vld [vmem:[%s7229_s5 + $0x8] sm:$0xf] }
 0x1f2   :  { %5636 = vmatmul.mubr.msk.f32.vlgmr.msra.gmra.mxu0 %vm82_vm1, %v1590_v18  ;;  %v1591_v24 = vmax.f32 %v1583_v19, 0.0  ;;  %v1585_v53 = vadd.f32 %v1557_v17, %v6468_v50  ;;  %v1592_v42 = vmax.f32 %v1584_v20, 0.0  ;;  %v6534_v9 = vadd.f32 %v6436_v52, %v6348_v58  ;;  %v6549_v58 = vld [vmem:[%s7233_s14 + $0x68] sm:$0xff] }
 0x1f3   :  { %5646 = vmatpush3.msra.mxu0 %v6462_v49  ;;  %5649 = vmatprep.mubr.msk.f32.mxu0 %vm5977_vm0, %v5976_v0  ;;  %v1587_v6 = vadd.f32 %v1565_v55, %v6511_v59  ;;  %v1594_v10 = vmax.f32 %v1586_v56, 0.0  ;;  %v1573_v17 = vrot.slane %v1541_v60, %v6431_v48  ;;  %v6557_v19 = vadd.f32 %v6436_v52, %v6350_v61  ;;  %v6572_v61 = vld [vmem:[%s7233_s14 + $0x78] sm:$0xff] }
 0x1f4   :  { %5643 = vmatmul.mubr.msk.f32.vlgmr.msra.gmra.mxu1 %vm82_vm1, %v1591_v24  ;;  %5647 = vmatprep.subr.mxu0 %v5976_v0  ;;  %v1593_v1 = vmax.f32 %v1585_v53, 0.0  ;;  %v1588_v18 = vadd.f32 %v1569_v5, %v6534_v9  ;;  %v6582_v24 = vld [vmem:[%s7233_s14 + $0x70] sm:$0xff]  ;;  %v6731_v5 = vld [vmem:[%s7237_s4 + $0x20] sm:$0xff] }
 0x1f5   :  { %5648 = vmatpush3.msra.mxu0 %v6476_v27  ;;  %5653 = vmatpush3.msra.mxu1 %v6481_v32  ;;  %v1595_v20 = vmax.f32 %v1587_v6, 0.0  ;;  %v1589_v52 = vadd.f32 %v1573_v17, %v6557_v19  ;;  %vm2212_vm9 = vcmp.gt.f32.partialorder %v6731_v5, 0.5 }
 0x1f6   :  { %5650 = vmatmul.mubr.msk.f32.vlgmr.msra.gmra.mxu0 %vm82_vm1, %v1592_v42  ;;  %5654 = vmatprep.subr.mxu1 %v5976_v0  ;;  %v1596_v22 = vmax.f32 %v1588_v18, 0.0 }
 0x1f7   :  { %5659 = vmatprep.subr.mxu0 %v5976_v0  ;;  %5655 = vmatpush3.msra.mxu1 %v6496_v62  ;;  %v1597_v53 = vmax.f32 %v1589_v52, 0.0 }
 0x1f8   :  { %5656 = vmatprep.mubr.msk.f32.mxu1 %vm5977_vm0, %v5976_v0  ;;  %5660 = vmatpush3.msra.mxu0 %v6504_v54 }
 0x1f9   :  { %5657 = vmatmul.mubr.msk.f32.vlgmr.msra.gmra.mxu1 %vm82_vm1, %v1593_v1  ;;  %5661 = vmatprep.subr.mxu0 %v5976_v0 }
 0x1fa   :  { %5666 = vmatprep.subr.mxu1 %v5976_v0  ;;  %5662 = vmatpush3.msra.mxu0 %v6518_v3 }
 0x1fb   :  { %5663 = vmatprep.mubr.msk.f32.mxu0 %vm5977_vm0, %v5976_v0  ;;  %5667 = vmatpush3.msra.mxu1 %v6527_v57 }
 0x1fc   :  { %5664 = vmatmul.mubr.msk.f32.vlgmr.msra.gmra.mxu0 %vm82_vm1, %v1594_v10  ;;  %5668 = vmatprep.subr.mxu1 %v5976_v0 }
 0x1fd   :  { %5673 = vmatprep.subr.mxu0 %v5976_v0  ;;  %5669 = vmatpush3.msra.mxu1 %v6541_v47 }
 0x1fe   :  { %5670 = vmatprep.mubr.msk.f32.mxu1 %vm5977_vm0, %v5976_v0  ;;  %5674 = vmatpush3.msra.mxu0 %v6549_v58 }
 0x1ff   :  { %5671 = vmatmul.mubr.msk.f32.vlgmr.msra.gmra.mxu1 %vm82_vm1, %v1595_v20  ;;  %5675 = vmatprep.subr.mxu0 %v5976_v0  ;;  %v6744_v20 = vld [vmem:[%s7237_s4 + $0x28] sm:$0xff] }
 0x200   :  { %5680 = vmatprep.subr.mxu1 %v5976_v0  ;;  %5676 = vmatpush3.msra.mxu0 %v6564_v21  ;;  %vm2213_vm10 = vcmp.gt.f32.partialorder %v6744_v20, 0.5 }
 0x201   :  { %5677 = vmatprep.mubr.msk.f32.mxu0 %vm5977_vm0, %v5976_v0  ;;  %5681 = vmatpush3.msra.mxu1 %v6572_v61 }
 0x202   :  { %5678 = vmatmul.mubr.msk.f32.vlgmr.msra.gmra.mxu0 %vm82_vm1, %v1596_v22  ;;  %5682 = vmatprep.subr.mxu1 %v5976_v0 }
 0x203   :  { %5687 = vmatprep.subr.mxu0 %v5976_v0  ;;  %5683 = vmatpush3.msra.mxu1 %v6582_v24 }
 0x204   :  { %5684 = vmatprep.mubr.msk.f32.mxu1 %vm5977_vm0, %v5976_v0  ;;  %5688 = vmatpush3.msra.mxu0 %v6184_v28  ;;  %v5225_v28 = vld [vmem:[%s7230_s1 + $0x8] sm:$0xff] }
 0x205   :  { %5685 = vmatmul.mubr.msk.f32.vlgmr.msra.gmra.mxu1 %vm82_vm1, %v1597_v53  ;;  %5689 = vmatprep.subr.mxu0 %v5976_v0 }
 0x206   :  { %5694 = vmatprep.subr.mxu1 %v5976_v0  ;;  %5690 = vmatpush3.msra.mxu0 %v6196_v30  ;;  %v5231_v30 = vld [vmem:[%s7229_s5 + $0x18] sm:$0xf] }
 0x207   :  { %5691 = vmatprep.mubr.msk.f32.mxu0 %vm5977_vm0, %v5976_v0  ;;  %5695 = vmatpush3.msk.msra.mxu1 %vm832_vm2, %v2236_v38 }
 0x208   :  { %5692 = vmatmul.mubr.msk.f32.vlgmr.msra.gmra.mxu0 %vm82_vm1, %v6381_v11  ;;  %5696 = vmatprep.subr.mxu1 %v5976_v0 }
 0x209   :  { %5701 = vmatprep.subr.mxu0 %v5976_v0  ;;  %5697 = vmatpush3.msra.mxu1 %v6205_v31  ;;  %v5240_v31 = vld [vmem:[%s7229_s5 + $0x28] sm:$0xf] }
 0x20a   :  { %5698 = vmatprep.mubr.msk.f32.mxu1 %vm5977_vm0, %v5976_v0  ;;  %5702 = vmatpush3.msra.mxu0 %v6218_v33  ;;  %v5249_v33 = vld [vmem:[%s7229_s5 + $0x38] sm:$0xf] }
 0x20b   :  { %5699 = vmatmul.mubr.msk.f32.vlgmr.msra.gmra.mxu1 %vm828_vm3, %v5225_v28  ;;  %5703 = vmatprep.subr.mxu0 %v5976_v0 }
 0x20c   :  { %5708 = vmatprep.subr.mxu1 %v5976_v0  ;;  %5704 = vmatpush3.msra.mxu0 %v6231_v35  ;;  %v6685_v35 = vld [vmem:[%s7237_s4] sm:$0xff] }
 0x20d   :  { %5705 = vmatprep.mubr.msk.f32.mxu0 %vm5977_vm0, %v5976_v0  ;;  %5709 = vmatpush3.msk.msra.mxu1 %vm832_vm2, %v5231_v30  ;;  %vm2208_vm4 = vcmp.gt.f32.partialorder %v6685_v35, 0.5 }
 0x20e   :  { %5706 = vmatmul.mubr.msk.f32.vlgmr.msra.gmra.mxu0 %vm82_vm1, %v6381_v11  ;;  %5710 = vmatprep.subr.mxu1 %v5976_v0 }
 0x20f   :  { %5715 = vmatprep.subr.mxu0 %v5976_v0  ;;  %5711 = vmatpush3.msra.mxu1 %v6240_v36  ;;  %v6690_v36 = vstv %s7238_s0 }
 0x210   :  { %5712 = vmatprep.mubr.msk.f32.mxu1 %vm5977_vm0, %v5976_v0  ;;  %5716 = vmatpush3.msra.mxu0 %v6252_v37  ;;  %v6695_v37 = vld [vmem:[%s7237_s4 + $0x8] sm:$0xff] }
 0x211   :  { %5713 = vmatmul.mubr.msk.f32.vlgmr.msra.gmra.mxu1 %vm828_vm3, %v5225_v28  ;;  %5717 = vmatprep.subr.mxu0 %v5976_v0  ;;  %vm2209_vm6 = vcmp.gt.f32.partialorder %v6695_v37, 0.5 }
 0x212   :  { %5722 = vmatprep.subr.mxu1 %v5976_v0  ;;  %5718 = vmatpush3.msra.mxu0 %v6265_v39 }
 0x213   :  { %5719 = vmatprep.mubr.msk.f32.mxu0 %vm5977_vm0, %v5976_v0  ;;  %5723 = vmatpush3.msk.msra.mxu1 %vm832_vm2, %v5240_v31 }
 0x214   :  { %5720 = vmatmul.mubr.msk.f32.vlgmr.msra.gmra.mxu0 %vm82_vm1, %v6381_v11  ;;  %5724 = vmatprep.subr.mxu1 %v5976_v0 }
 0x215   :  { %5729 = vmatprep.subr.mxu0 %v5976_v0  ;;  %5725 = vmatpush3.msra.mxu1 %v6272_v40 }
 0x216   :  { %5726 = vmatprep.mubr.msk.f32.mxu1 %vm5977_vm0, %v5976_v0  ;;  %5730 = vmatpush3.msra.mxu0 %v6285_v41  ;;  %v6702_v41 = vld [vmem:[%s7237_s4 + $0x10] sm:$0xff] }
 0x217   :  { %5727 = vmatmul.mubr.msk.f32.vlgmr.msra.gmra.mxu1 %vm828_vm3, %v5225_v28  ;;  %5731 = vmatprep.subr.mxu0 %v5976_v0  ;;  %vm2210_vm7 = vcmp.gt.f32.partialorder %v6702_v41, 0.5 }
 0x218   :  { %5736 = vmatprep.subr.mxu1 %v5976_v0  ;;  %5732 = vmatpush3.msra.mxu0 %v6297_v43 }
 0x219   :  { %5733 = vmatprep.mubr.msk.f32.mxu0 %vm5977_vm0, %v5976_v0  ;;  %5737 = vmatpush3.msk.msra.mxu1 %vm832_vm2, %v5249_v33 }
 0x21a   :  { %5734 = vmatmul.mubr.msk.f32.vlgmr.msra.gmra.mxu0 %vm82_vm1, %v6381_v11  ;;  %5738 = vmatprep.subr.mxu1 %v5976_v0 }
 0x21b   :  { %5739 = vmatpush3.msra.mxu1 %v6304_v44  ;;  %5740 = vmatprep.mubr.msk.f32.mxu1 %vm5977_vm0, %v5976_v0 }
 0x21c   :  { %5741 = vmatmul.mubr.msk.f32.vlgmr.msra.gmra.mxu1 %vm828_vm3, %v5225_v28  ;;  %5743 = vmatprep.subr.mxu0 %v5976_v0  ;;  %v6757_v28 = vld [vmem:[%s7237_s4 + $0x30] sm:$0xff] }
 0x21d   :  { %5744 = vmatpush3.msra.mxu0 %v6325_v45  ;;  %5747 = vmatprep.mubr.msk.f32.mxu0 %vm5977_vm0, %v5976_v0  ;;  %vm2214_vm11 = vcmp.gt.f32.partialorder %v6757_v28, 0.5 }
 0x21e   :  { %5745 = vmatprep.subr.mxu0 %v5976_v0  ;;  %5750 = vmatprep.subr.mxu1 %v5976_v0 }
 0x21f   :  { %5746 = vmatpush3.msra.mxu0 %v6330_v46  ;;  %5751 = vmatpush3.msra.mxu1 %v6390_v13 }
 0x220   :  { %5752 = vmatprep.subr.mxu1 %v5976_v0  ;;  %5757 = vmatprep.subr.mxu0 %v5976_v0 }
 0x221   :  { %5753 = vmatpush3.msra.mxu1 %v6397_v14  ;;  %5754 = vmatprep.mubr.msk.f32.mxu1 %vm5977_vm0, %v5976_v0  ;;  %v6716_v14 = vld [vmem:[%s7237_s4 + $0x18] sm:$0xff] }
 0x222   :  { %5764 = vmatprep.subr.mxu1 %v5976_v0  ;;  %vm2211_vm8 = vcmp.gt.f32.partialorder %v6716_v14, 0.5 }
 0x2b2   :  { %v1685_v39 = vpop.f32.mrf.mxu0 }
 0x2b3   :  { %v1686_v40 = vadd.f32 %v1685_v39, %v6690_v36 }
 0x2b4   :  { %v5637_v43 = vpop.f32.mrf.mxu0  ;;  %v1758_v44 = vpop.f32.mrf.mxu1 }
 0x2b5   :  { %v2216_v45 = vsel %vm2208_vm4, %v1686_v40, -100.0  ;;  %v1759_v46 = vadd.f32 %v1758_v44, %v6690_v36  ;;  %v6770_v40 = vld [vmem:[%s7237_s4 + $0x38] sm:$0xff] }
 0x2b6   :  { %2225 = vst.msk [vmem:[%s7239_s15] sm:$0xff] %vm2224_vm5, %v2216_v45  ;;  %v5644_v11 = vpop.f32.mrf.mxu1  ;;  %v1831_v13 = vpop.f32.mrf.mxu0  ;;  %vm2215_vm12 = vcmp.gt.f32.partialorder %v6770_v40, 0.5 }
 0x2b7   :  { %v2217_v42 = vsel %vm2209_vm6, %v1759_v46, -100.0  ;;  %v1832_v55 = vadd.f32 %v1831_v13, %v6690_v36 }
 0x2b8   :  { %2226 = vst.msk [vmem:[%s7239_s15 + $0x8] sm:$0xff] %vm2224_vm5, %v2217_v42  ;;  %v5651_v56 = vpop.f32.mrf.mxu0 }
 0x2b9   :  { %v2218_v60 = vsel %vm2210_vm7, %v1832_v55, -100.0  ;;  %v1904_v1 = vpop.f32.mrf.mxu1 }
 0x2ba   :  { %2227 = vst.msk [vmem:[%s7239_s15 + $0x10] sm:$0xff] %vm2224_vm5, %v2218_v60  ;;  %v1905_v6 = vadd.f32 %v1904_v1, %v6690_v36 }
 0x2bb   :  { %v5658_v10 = vpop.f32.mrf.mxu1 }
 0x2bc   :  { %v2219_v17 = vsel %vm2211_vm8, %v1905_v6, -100.0  ;;  %v1977_v18 = vpop.f32.mrf.mxu0 }
 0x2bd   :  { %2228 = vst.msk [vmem:[%s7239_s15 + $0x18] sm:$0xff] %vm2224_vm5, %v2219_v17  ;;  %v1978_v52 = vadd.f32 %v1977_v18, %v6690_v36 }
 0x2be   :  { %v5665_v22 = vpop.f32.mrf.mxu0 }
 0x2bf   :  { %v2220_v53 = vsel %vm2212_vm9, %v1978_v52, -100.0  ;;  %v2050_v38 = vpop.f32.mrf.mxu1 }
 0x2c0   :  { %2229 = vst.msk [vmem:[%s7239_s15 + $0x20] sm:$0xff] %vm2224_vm5, %v2220_v53  ;;  %v2051_v30 = vadd.f32 %v2050_v38, %v6690_v36 }
 0x2c1   :  { %v5672_v31 = vpop.f32.mrf.mxu1 }
 0x2c2   :  { %v2221_v33 = vsel %vm2213_vm10, %v2051_v30, -100.0  ;;  %v2123_v39 = vpop.f32.mrf.mxu0 }
 0x2c3   :  { %2230 = vst.msk [vmem:[%s7239_s15 + $0x28] sm:$0xff] %vm2224_vm5, %v2221_v33  ;;  %v2124_v43 = vadd.f32 %v2123_v39, %v6690_v36 }
 0x2c4   :  { %v5679_v44 = vpop.f32.mrf.mxu0 }
 0x2c5   :  { %v2222_v45 = vsel %vm2214_vm11, %v2124_v43, -100.0  ;;  %v2196_v46 = vpop.f32.mrf.mxu1 }
 0x2c6   :  { %2231 = vst.msk [vmem:[%s7239_s15 + $0x30] sm:$0xff] %vm2224_vm5, %v2222_v45  ;;  %v2197_v11 = vadd.f32 %v2196_v46, %v6690_v36 }
 0x2c7   :  { %v5686_v13 = vpop.f32.mrf.mxu1 }
 0x2c8   :  { %v2223_v42 = vsel %vm2215_vm12, %v2197_v11, -100.0  ;;  %v2305_v55 = vpop.f32.mrf.mxu0 }
 0x2c9   :  { %2232 = vst.msk [vmem:[%s7239_s15 + $0x38] sm:$0xff] %vm2224_vm5, %v2223_v42 }
 0x2ca   :  { %v5693_v56 = vpop.f32.mrf.mxu0 }
 0x2cb   :  { %v2381_v60 = vpop.f32.mrf.mxu1 }
 0x2cc   :  { %v2382_v1 = vadd.f32 %v2381_v60, %v2305_v55 }
 0x2cd   :  { %v5700_v6 = vpop.f32.mrf.mxu1 }
 0x2ce   :  { %v2392_v10 = vadd.f32 %v6357_v4, %v2382_v1  ;;  %v2468_v17 = vpop.f32.mrf.mxu0 }
 0x2d0   :  { %v2393_v18 = vsub.f32 0.0, %v2392_v10  ;;  %v5707_v52 = vpop.f32.mrf.mxu0 }
 0x2d1   :  { %v2541_v22 = vpop.f32.mrf.mxu1 }
 0x2d2   :  { %v2394_v53 = vmul.f32 1.442695, %v2393_v18  ;;  %v2542_v38 = vadd.f32 %v2541_v22, %v2468_v17 }
 0x2d3   :  { %v5714_v30 = vpop.f32.mrf.mxu1 }
 0x2d4   :  { %5944 = vpow2.f32 %v2394_v53  ;;  %v2552_v31 = vadd.f32 %v6363_v12, %v2542_v38  ;;  %v2628_v33 = vpop.f32.mrf.mxu0 }
 0x2d6   :  { %v2553_v39 = vsub.f32 0.0, %v2552_v31  ;;  %v5721_v43 = vpop.f32.mrf.mxu0 }
 0x2d7   :  { %v2701_v44 = vpop.f32.mrf.mxu1 }
 0x2d8   :  { %v2554_v45 = vmul.f32 1.442695, %v2553_v39  ;;  %v2702_v1 = vadd.f32 %v2701_v44, %v2628_v33 }
 0x2d9   :  { %v5728_v46 = vpop.f32.mrf.mxu1 }
 0x2da   :  { %5946 = vpow2.f32 %v2554_v45  ;;  %v2784_v11 = vpop.f32.mrf.mxu0  ;;  %v2712_v12 = vadd.f32 %v6375_v51, %v2702_v1 }
 0x2dc   :  { %v5735_v13 = vpop.f32.mrf.mxu0  ;;  %v2857_v4 = vpop.f32.mrf.mxu1 }
 0x2dd   :  { %v2858_v42 = vadd.f32 %v2857_v4, %v2784_v11 }
 0x2de   :  { %v5742_v55 = vpop.f32.mrf.mxu1 }
 0x2df   :  { %v2868_v56 = vadd.f32 %v6369_v26, %v2858_v42 }
 0x2e1   :  { %v5945_v60 = vpop.eup %5944  ;;  %v2869_v6 = vsub.f32 0.0, %v2868_v56 }
 0x2e2   :  { %v2396_v17 = vadd.f32 1.0, %v5945_v60 }
 0x2e3   :  { %v2870_v10 = vmul.f32 1.442695, %v2869_v6 }
 0x2e5   :  { %5948 = vpow2.f32 %v2870_v10 }
 0x2e6   :  { %5950 = vrcp.f32 %v2396_v17 }
 0x2e7   :  { %v5947_v18 = vpop.eup %5946  ;;  %5952 = vtanh.f32 %v2712_v12 }
 0x2e8   :  { %v2556_v52 = vadd.f32 1.0, %v5947_v18 }
 0x2ea   :  { %5954 = vrcp.f32 %v2556_v52 }
 0x2f2   :  { %v5949_v22 = vpop.eup %5948 }
 0x2f3   :  { %v5951_v53 = vpop.eup %5950  ;;  %v2872_v31 = vadd.f32 1.0, %v5949_v22 }
 0x2f4   :  { %v5953_v38 = vpop.eup %5952 }
 0x2f5   :  { %v2875_v39 = vmul.f32 %v5953_v38, %v5951_v53  ;;  %5956 = vrcp.f32 %v2872_v31 }
 0x2f7   :  { %v5955_v30 = vpop.eup %5954 }
 0x2f8   :  { %v2874_v26 = vmul.f32 %v5955_v30, %v6378_v8 }
 0x2fa   :  { %v6796_v33 = vadd.f32 %v2875_v39, %v2874_v26 }
 0x2fc   :  { %5958 = vtanh.f32 %v6796_v33 }
 0x302   :  { %v5957_v51 = vpop.eup %5956 }
 0x309   :  { %v5959_v43 = vpop.eup %5958 }
 0x30a   :  { %v6799_v44 = vmul.f32 %v5959_v43, %v5957_v51 }
 0x30c   :  { %5748 = vmatmul.mubr.msk.f32.vlgmr.msra.gmra.mxu0 %vm82_vm1, %v6799_v44 }
 0x30d   :  { %5758 = vmatpush3.msra.mxu0 %v6402_v15  ;;  %5761 = vmatprep.mubr.msk.f32.mxu0 %vm5977_vm0, %v5976_v0 }
 0x30e   :  { %5759 = vmatprep.subr.mxu0 %v5976_v0 }
 0x30f   :  { %5760 = vmatpush3.msra.mxu0 %v6411_v16 }
 0x310   :  { %5771 = vmatprep.subr.mxu0 %v5976_v0 }
 0x3cc   :  { %v2957_v8 = vpop.f32.mrf.mxu0 }
 0x3cd   :  { %v2958_v45 = vadd.f32 %v6421_v23, %v2957_v8 }
 0x3ce   :  { %v5749_v46 = vpop.f32.mrf.mxu0 }
 0x3cf   :  { %v2961_v11 = vadd.f32 %v2958_v45, %v6424_v25 }
 0x3d1   :  { %v2963_v13 = vcombine.high %v2961_v11, %v2961_v11  ;;  %v2970_v4 = vrot.slane %v2961_v11, %v6427_v29 }
 0x3d3   :  { %v2977_v15 = vrot.slane %v2963_v13, %v6427_v29  ;;  %v2978_v42 = vcombine.high %v2970_v4, %v2970_v4  ;;  %v2986_v55 = vrot.slane %v2970_v4, %v6427_v29  ;;  %v5283_v13 = vld [vmem:[%s7228_s6 + $0x18] sm:$0xff]  ;;  %v5275_v4 = vld [vmem:[%s7230_s1 + $0x10] sm:$0xff] }
 0x3d5   :  { %v3000_v56 = vrot.slane %v2978_v42, %v6427_v29  ;;  %v3008_v60 = vcombine.high %v2986_v55, %v2986_v55  ;;  %v3015_v16 = vrot.slane %v2986_v55, %v6431_v48  ;;  %v2979_v1 = vcombine.high %v2977_v15, %v2977_v15  ;;  %v5281_v42 = vld [vmem:[%s7229_s5 + $0x18] sm:$0xf]  ;;  %v5280_v55 = vld [vmem:[%s7229_s5 + $0x10] sm:$0xff] }
 0x3d6   :  { %v2993_v10 = vrot.slane %v2977_v15, %v6427_v29  ;;  %v5282_v15 = vld [vmem:[%s7228_s6 + $0x10] sm:$0xff] }
 0x3d7   :  { %v3010_v6 = vcombine.high %v3000_v56, %v3000_v56  ;;  %v3019_v23 = vrot.slane %v3000_v56, %v6431_v48  ;;  %v3023_v17 = vrot.slane %v3008_v60, %v6431_v48  ;;  %v3052_v12 = vadd.f32 %v3015_v16, %v6443_v63  ;;  %v5292_v56 = vld [vmem:[%s7228_s6 + $0x28] sm:$0xff]  ;;  %v5291_v60 = vld [vmem:[%s7228_s6 + $0x20] sm:$0xff] }
 0x3d8   :  { %v3007_v38 = vrot.slane %v2979_v1, %v6427_v29  ;;  %v3031_v30 = vrot.slane %v2993_v10, %v6431_v48  ;;  %v3009_v39 = vcombine.high %v2993_v10, %v2993_v10  ;;  %v5290_v16 = vld [vmem:[%s7229_s5 + $0x28] sm:$0xf]  ;;  %v5289_v1 = vld [vmem:[%s7229_s5 + $0x20] sm:$0xff]  ;;  %v5299_v10 = vld [vmem:[%s7229_s5 + $0x38] sm:$0xf] }
 0x3d9   :  { %v3027_v18 = vrot.slane %v3010_v6, %v6431_v48  ;;  %v3060_v52 = vmax.f32 %v3052_v12, 0.0  ;;  %v3053_v22 = vadd.f32 %v3019_v23, %v6448_v2  ;;  %v3054_v53 = vadd.f32 %v3023_v17, %v6453_v7  ;;  %v5301_v6 = vld [vmem:[%s7228_s6 + $0x38] sm:$0xff]  ;;  %v5300_v23 = vld [vmem:[%s7228_s6 + $0x30] sm:$0xff]  ;;  %v4349_v12 = vld [vmem:[%s7231_s8] sm:$0xff] }
 0x3da   :  { %v3035_v43 = vrot.slane %v3007_v38, %v6431_v48  ;;  %v3011_v8 = vcombine.high %v3007_v38, %v3007_v38  ;;  %v3039_v46 = vrot.slane %v3009_v39, %v6431_v48  ;;  %v5298_v17 = vld [vmem:[%s7229_s5 + $0x30] sm:$0xff] }
 0x3db   :  { %5755 = vmatmul.mubr.msk.f32.vlgmr.msra.gmra.mxu1 %vm82_vm1, %v3060_v52  ;;  %v3061_v31 = vmax.f32 %v3053_v22, 0.0  ;;  %v3055_v26 = vadd.f32 %v3027_v18, %v6468_v50  ;;  %v3062_v51 = vmax.f32 %v3054_v53, 0.0 }
 0x3dc   :  { %5765 = vmatpush3.msra.mxu1 %v6462_v49  ;;  %5768 = vmatprep.mubr.msk.f32.mxu1 %vm5977_vm0, %v5976_v0  ;;  %v3056_v49 = vadd.f32 %v3031_v30, %v6489_v34 }
 0x3dd   :  { %5762 = vmatmul.mubr.msk.f32.vlgmr.msra.gmra.mxu0 %vm82_vm1, %v3061_v31  ;;  %5766 = vmatprep.subr.mxu1 %v5976_v0  ;;  %v3063_v45 = vmax.f32 %v3055_v26, 0.0 }
 0x3de   :  { %5767 = vmatpush3.msra.mxu1 %v6476_v27  ;;  %5772 = vmatpush3.msra.mxu0 %v6481_v32  ;;  %v3057_v27 = vadd.f32 %v3035_v43, %v6511_v59  ;;  %v3064_v32 = vmax.f32 %v3056_v49, 0.0 }
 0x3df   :  { %5769 = vmatmul.mubr.msk.f32.vlgmr.msra.gmra.mxu1 %vm82_vm1, %v3062_v51  ;;  %5773 = vmatprep.subr.mxu0 %v5976_v0 }
 0x3e0   :  { %5778 = vmatprep.subr.mxu1 %v5976_v0  ;;  %5774 = vmatpush3.msra.mxu0 %v6496_v62  ;;  %v3043_v62 = vrot.slane %v3011_v8, %v6431_v48  ;;  %v3065_v11 = vmax.f32 %v3057_v27, 0.0 }
 0x3e1   :  { %5775 = vmatprep.mubr.msk.f32.mxu0 %vm5977_vm0, %v5976_v0  ;;  %5779 = vmatpush3.msra.mxu1 %v6504_v54  ;;  %v3058_v54 = vadd.f32 %v3039_v46, %v6534_v9 }
 0x3e2   :  { %5776 = vmatmul.mubr.msk.f32.vlgmr.msra.gmra.mxu0 %vm82_vm1, %v3063_v45  ;;  %5780 = vmatprep.subr.mxu1 %v5976_v0 }
 0x3e3   :  { %5785 = vmatprep.subr.mxu0 %v5976_v0  ;;  %5781 = vmatpush3.msra.mxu1 %v6518_v3  ;;  %v3059_v3 = vadd.f32 %v3043_v62, %v6557_v19 }
 0x3e4   :  { %5782 = vmatprep.mubr.msk.f32.mxu1 %vm5977_vm0, %v5976_v0  ;;  %5786 = vmatpush3.msra.mxu0 %v6527_v57  ;;  %v3066_v57 = vmax.f32 %v3058_v54, 0.0 }
 0x3e5   :  { %5783 = vmatmul.mubr.msk.f32.vlgmr.msra.gmra.mxu1 %vm82_vm1, %v3064_v32  ;;  %5787 = vmatprep.subr.mxu0 %v5976_v0 }
 0x3e6   :  { %5792 = vmatprep.subr.mxu1 %v5976_v0  ;;  %5788 = vmatpush3.msra.mxu0 %v6541_v47  ;;  %v3708_v47 = vld [vmem:[%s7228_s6 + $0x8] sm:$0xff] }
 0x3e7   :  { %5789 = vmatprep.mubr.msk.f32.mxu0 %vm5977_vm0, %v5976_v0  ;;  %5793 = vmatpush3.msra.mxu1 %v6549_v58  ;;  %v3067_v58 = vmax.f32 %v3059_v3, 0.0 }
 0x3e8   :  { %5790 = vmatmul.mubr.msk.f32.vlgmr.msra.gmra.mxu0 %vm82_vm1, %v3065_v11  ;;  %5794 = vmatprep.subr.mxu1 %v5976_v0 }
 0x3e9   :  { %5799 = vmatprep.subr.mxu0 %v5976_v0  ;;  %5795 = vmatpush3.msra.mxu1 %v6564_v21  ;;  %v3707_v21 = vld [vmem:[%s7228_s6] sm:$0xff] }
 0x3ea   :  { %5796 = vmatprep.mubr.msk.f32.mxu1 %vm5977_vm0, %v5976_v0  ;;  %5800 = vmatpush3.msra.mxu0 %v6572_v61  ;;  %v3706_v61 = vld [vmem:[%s7229_s5 + $0x8] sm:$0xf] }
 0x3eb   :  { %5797 = vmatmul.mubr.msk.f32.vlgmr.msra.gmra.mxu1 %vm82_vm1, %v3066_v57  ;;  %5801 = vmatprep.subr.mxu0 %v5976_v0 }
 0x3ec   :  { %5806 = vmatprep.subr.mxu1 %v5976_v0  ;;  %5802 = vmatpush3.msra.mxu0 %v6582_v24  ;;  %v3705_v24 = vld [vmem:[%s7229_s5] sm:$0xff] }
 0x3ed   :  { %5803 = vmatprep.mubr.msk.f32.mxu0 %vm5977_vm0, %v5976_v0  ;;  %5807 = vmatpush3.msra.mxu1 %v3708_v47 }
 0x3ee   :  { %5804 = vmatmul.mubr.msk.f32.vlgmr.msra.gmra.mxu0 %vm82_vm1, %v3067_v58  ;;  %5808 = vmatprep.subr.mxu1 %v5976_v0 }
 0x3ef   :  { %5813 = vmatprep.subr.mxu0 %v5976_v0  ;;  %5809 = vmatpush3.msra.mxu1 %v3707_v21 }
 0x3f0   :  { %5810 = vmatprep.mubr.msk.f32.mxu1 %vm5977_vm0, %v5976_v0  ;;  %5814 = vmatpush3.msk.msra.mxu0 %vm832_vm2, %v3706_v61 }
 0x3f1   :  { %5811 = vmatmul.mubr.msk.f32.vlgmr.msra.gmra.mxu1 %vm82_vm1, %v6799_v44  ;;  %5815 = vmatprep.subr.mxu0 %v5976_v0 }
 0x3f2   :  { %5820 = vmatprep.subr.mxu1 %v5976_v0  ;;  %5816 = vmatpush3.msra.mxu0 %v3705_v24 }
 0x3f3   :  { %5817 = vmatprep.mubr.msk.f32.mxu0 %vm5977_vm0, %v5976_v0  ;;  %5821 = vmatpush3.msra.mxu1 %v5283_v13 }
 0x3f4   :  { %5818 = vmatmul.mubr.msk.f32.vlgmr.msra.gmra.mxu0 %vm828_vm3, %v5275_v4  ;;  %5822 = vmatprep.subr.mxu1 %v5976_v0 }
 0x3f5   :  { %5827 = vmatprep.subr.mxu0 %v5976_v0  ;;  %5823 = vmatpush3.msra.mxu1 %v5282_v15 }
 0x3f6   :  { %5824 = vmatprep.mubr.msk.f32.mxu1 %vm5977_vm0, %v5976_v0  ;;  %5828 = vmatpush3.msk.msra.mxu0 %vm832_vm2, %v5281_v42 }
 0x3f7   :  { %5825 = vmatmul.mubr.msk.f32.vlgmr.msra.gmra.mxu1 %vm82_vm1, %v6799_v44  ;;  %5829 = vmatprep.subr.mxu0 %v5976_v0 }
 0x3f8   :  { %5834 = vmatprep.subr.mxu1 %v5976_v0  ;;  %5830 = vmatpush3.msra.mxu0 %v5280_v55 }
 0x3f9   :  { %5831 = vmatprep.mubr.msk.f32.mxu0 %vm5977_vm0, %v5976_v0  ;;  %5835 = vmatpush3.msra.mxu1 %v5292_v56 }
 0x3fa   :  { %5832 = vmatmul.mubr.msk.f32.vlgmr.msra.gmra.mxu0 %vm828_vm3, %v5275_v4  ;;  %5836 = vmatprep.subr.mxu1 %v5976_v0 }
 0x3fb   :  { %5841 = vmatprep.subr.mxu0 %v5976_v0  ;;  %5837 = vmatpush3.msra.mxu1 %v5291_v60 }
 0x3fc   :  { %5838 = vmatprep.mubr.msk.f32.mxu1 %vm5977_vm0, %v5976_v0  ;;  %5842 = vmatpush3.msk.msra.mxu0 %vm832_vm2, %v5290_v16 }
 0x3fd   :  { %5839 = vmatmul.mubr.msk.f32.vlgmr.msra.gmra.mxu1 %vm82_vm1, %v6799_v44  ;;  %5843 = vmatprep.subr.mxu0 %v5976_v0 }
 0x3fe   :  { %5848 = vmatprep.subr.mxu1 %v5976_v0  ;;  %5844 = vmatpush3.msra.mxu0 %v5289_v1  ;;  %v5279_v1 = vld [vmem:[%s7232_s7] ss:$0 sm:$0xff] }
 0x3ff   :  { %5845 = vmatprep.mubr.msk.f32.mxu0 %vm5977_vm0, %v5976_v0  ;;  %5849 = vmatpush3.msra.mxu1 %v5301_v6 }
 0x400   :  { %5846 = vmatmul.mubr.msk.f32.vlgmr.msra.gmra.mxu0 %vm828_vm3, %v5275_v4  ;;  %5850 = vmatprep.subr.mxu1 %v5976_v0 }
 0x401   :  { %5855 = vmatprep.subr.mxu0 %v5976_v0  ;;  %5851 = vmatpush3.msra.mxu1 %v5300_v23 }
 0x402   :  { %5852 = vmatprep.mubr.msk.f32.mxu1 %vm5977_vm0, %v5976_v0  ;;  %5856 = vmatpush3.msk.msra.mxu0 %vm832_vm2, %v5299_v10 }
 0x403   :  { %5853 = vmatmul.mubr.msk.f32.vlgmr.msra.gmra.mxu1 %vm82_vm1, %v6799_v44  ;;  %5857 = vmatprep.subr.mxu0 %v5976_v0  ;;  %v4350_v44 = vld [vmem:[%s7231_s8 + $0x8] sm:$0xff] }
 0x404   :  { %5858 = vmatpush3.msra.mxu0 %v5298_v17  ;;  %5859 = vmatprep.mubr.msk.f32.mxu0 %vm5977_vm0, %v5976_v0 }
 0x405   :  { %5860 = vmatmul.mubr.msk.f32.vlgmr.msra.gmra.mxu0 %vm828_vm3, %v5275_v4  ;;  %5862 = vmatprep.subr.mxu1 %v5976_v0 }
 0x406   :  { %5866 = vmatprep.mubr.msk.f32.mxu1 %vm5977_vm0, %v5976_v0  ;;  %5869 = vmatprep.subr.mxu0 %v5976_v0 }
 0x407   :  { %5873 = vmatprep.mubr.msk.f32.mxu0 %vm5977_vm0, %v5976_v0  ;;  %5863 = vmatpush3.msra.mxu1 %v4350_v44 }
 0x408   :  { %5864 = vmatprep.subr.mxu1 %v5976_v0 }
 0x409   :  { %5865 = vmatpush3.msra.mxu1 %v4349_v12 }
 0x40a   :  { %5876 = vmatprep.subr.mxu1 %v5976_v0 }
 0x49b   :  { %v3155_v18 = vpop.f32.mrf.mxu1 }
 0x49c   :  { %v3156_v52 = vadd.f32 %v3155_v18, %v6690_v36 }
 0x49d   :  { %v5756_v22 = vpop.f32.mrf.mxu1  ;;  %v3228_v53 = vpop.f32.mrf.mxu0 }
 0x49e   :  { %v3686_v38 = vsel %vm2208_vm4, %v3156_v52, -100.0  ;;  %v3229_v30 = vadd.f32 %v3228_v53, %v6690_v36  ;;  %v5288_v52 = vld [vmem:[%s7232_s7 + $0x1] ss:$0 sm:$0xff] }
 0x49f   :  { %5267 = vst.msk [vmem:[%s7239_s15 + $0x40] sm:$0xff] %vm2224_vm5, %v3686_v38  ;;  %v5763_v31 = vpop.f32.mrf.mxu0  ;;  %v3301_v26 = vpop.f32.mrf.mxu1 }
 0x4a0   :  { %v3687_v39 = vsel %vm2209_vm6, %v3229_v30, -100.0  ;;  %v3302_v51 = vadd.f32 %v3301_v26, %v6690_v36 }
 0x4a1   :  { %5268 = vst.msk [vmem:[%s7239_s15 + $0x48] sm:$0xff] %vm2224_vm5, %v3687_v39  ;;  %v5770_v43 = vpop.f32.mrf.mxu1 }
 0x4a2   :  { %v3688_v49 = vsel %vm2210_vm7, %v3302_v51, -100.0  ;;  %v3374_v8 = vpop.f32.mrf.mxu0 }
 0x4a3   :  { %5269 = vst.msk [vmem:[%s7239_s15 + $0x50] sm:$0xff] %vm2224_vm5, %v3688_v49  ;;  %v3375_v45 = vadd.f32 %v3374_v8, %v6690_v36 }
 0x4a4   :  { %v5777_v46 = vpop.f32.mrf.mxu0 }
 0x4a5   :  { %v3689_v27 = vsel %vm2211_vm8, %v3375_v45, -100.0  ;;  %v3447_v32 = vpop.f32.mrf.mxu1 }
 0x4a6   :  { %5270 = vst.msk [vmem:[%s7239_s15 + $0x58] sm:$0xff] %vm2224_vm5, %v3689_v27  ;;  %v3448_v62 = vadd.f32 %v3447_v32, %v6690_v36  ;;  %v5306_v27 = vld [vmem:[%s7232_s7 + $0x3] ss:$0 sm:$0xff] }
 0x4a7   :  { %v5784_v54 = vpop.f32.mrf.mxu1 }
 0x4a8   :  { %v3690_v11 = vsel %vm2212_vm9, %v3448_v62, -100.0  ;;  %v3520_v3 = vpop.f32.mrf.mxu0 }
 0x4a9   :  { %5271 = vst.msk [vmem:[%s7239_s15 + $0x60] sm:$0xff] %vm2224_vm5, %v3690_v11  ;;  %v3521_v57 = vadd.f32 %v3520_v3, %v6690_v36 }
 0x4aa   :  { %v5791_v47 = vpop.f32.mrf.mxu0 }
 0x4ab   :  { %v3691_v58 = vsel %vm2213_vm10, %v3521_v57, -100.0  ;;  %v3593_v21 = vpop.f32.mrf.mxu1  ;;  %v5297_v47 = vld [vmem:[%s7232_s7 + $0x2] ss:$0 sm:$0xff] }
 0x4ac   :  { %5272 = vst.msk [vmem:[%s7239_s15 + $0x68] sm:$0xff] %vm2224_vm5, %v3691_v58  ;;  %v3594_v61 = vadd.f32 %v3593_v21, %v6690_v36 }
 0x4ad   :  { %v5798_v24 = vpop.f32.mrf.mxu1 }
 0x4ae   :  { %v3692_v13 = vsel %vm2214_vm11, %v3594_v61, -100.0  ;;  %v3666_v4 = vpop.f32.mrf.mxu0 }
 0x4af   :  { %5273 = vst.msk [vmem:[%s7239_s15 + $0x70] sm:$0xff] %vm2224_vm5, %v3692_v13  ;;  %v3667_v15 = vadd.f32 %v3666_v4, %v6690_v36 }
 0x4b0   :  { %v5805_v42 = vpop.f32.mrf.mxu0 }
 0x4b1   :  { %v3693_v55 = vsel %vm2215_vm12, %v3667_v15, -100.0  ;;  %v3775_v56 = vpop.f32.mrf.mxu1 }
 0x4b2   :  { %5274 = vst.msk [vmem:[%s7239_s15 + $0x78] sm:$0xff] %vm2224_vm5, %v3693_v55 }
 0x4b3   :  { %v5812_v60 = vpop.f32.mrf.mxu1 }
 0x4b4   :  { %v3851_v16 = vpop.f32.mrf.mxu0 }
 0x4b5   :  { %v3852_v6 = vadd.f32 %v3851_v16, %v3775_v56 }
 0x4b6   :  { %v5819_v23 = vpop.f32.mrf.mxu0 }
 0x4b7   :  { %v3862_v10 = vadd.f32 %v5279_v1, %v3852_v6  ;;  %v3938_v17 = vpop.f32.mrf.mxu1 }
 0x4b9   :  { %v3863_v44 = vsub.f32 0.0, %v3862_v10  ;;  %v5826_v12 = vpop.f32.mrf.mxu1 }
 0x4ba   :  { %v4011_v18 = vpop.f32.mrf.mxu0  ;;  %v4540_v12 = vld [vmem:[%s7233_s14 + $0x10] sm:$0xff] }
 0x4bb   :  { %v3864_v22 = vmul.f32 1.442695, %v3863_v44  ;;  %v4012_v53 = vadd.f32 %v4011_v18, %v3938_v17  ;;  %v4539_v17 = vld [vmem:[%s7233_s14 + $0x8] sm:$0xff]  ;;  %v4541_v44 = vld [vmem:[%s7233_s14 + $0x18] sm:$0xff]  ;;  %v5307_v18 = vld [vmem:[%s7235_s9] ss:$0 sm:$0xff] }
 0x4bc   :  { %v5833_v38 = vpop.f32.mrf.mxu0  ;;  %5870 = vmatpush3.msra.mxu0 %v4539_v17 }
 0x4bd   :  { %5960 = vpow2.f32 %v3864_v22  ;;  %v4022_v30 = vadd.f32 %v5288_v52, %v4012_v53  ;;  %v4098_v31 = vpop.f32.mrf.mxu1  ;;  %5871 = vmatprep.subr.mxu0 %v5976_v0 }
 0x4bf   :  { %v4023_v26 = vsub.f32 0.0, %v4022_v30  ;;  %v5840_v39 = vpop.f32.mrf.mxu1 }
 0x4c0   :  { %v4171_v51 = vpop.f32.mrf.mxu0 }
 0x4c1   :  { %v4024_v43 = vmul.f32 1.442695, %v4023_v26  ;;  %v4172_v3 = vadd.f32 %v4171_v51, %v4098_v31 }
 0x4c2   :  { %v5847_v49 = vpop.f32.mrf.mxu0 }
 0x4c3   :  { %5962 = vpow2.f32 %v4024_v43  ;;  %v4254_v8 = vpop.f32.mrf.mxu1  ;;  %v4182_v61 = vadd.f32 %v5297_v47, %v4172_v3  ;;  %v4543_v3 = vld [vmem:[%s7233_s14 + $0x28] sm:$0xff] }
 0x4c5   :  { %v5854_v45 = vpop.f32.mrf.mxu1  ;;  %v4327_v46 = vpop.f32.mrf.mxu0 }
 0x4c6   :  { %v4328_v32 = vadd.f32 %v4327_v46, %v4254_v8 }
 0x4c7   :  { %v5861_v62 = vpop.f32.mrf.mxu0 }
 0x4c8   :  { %v4338_v54 = vadd.f32 %v5306_v27, %v4328_v32 }
 0x4ca   :  { %v5961_v11 = vpop.eup %5960  ;;  %v4339_v57 = vsub.f32 0.0, %v4338_v54 }
 0x4cb   :  { %v3866_v21 = vadd.f32 1.0, %v5961_v11 }
 0x4cc   :  { %v4340_v58 = vmul.f32 1.442695, %v4339_v57 }
 0x4ce   :  { %5964 = vpow2.f32 %v4340_v58 }
 0x4cf   :  { %5966 = vrcp.f32 %v3866_v21 }
 0x4d0   :  { %v5963_v24 = vpop.eup %5962  ;;  %5968 = vtanh.f32 %v4182_v61 }
 0x4d1   :  { %v4026_v13 = vadd.f32 1.0, %v5963_v24  ;;  %v4545_v24 = vld [vmem:[%s7233_s14 + $0x38] sm:$0xff] }
 0x4d3   :  { %5970 = vrcp.f32 %v4026_v13  ;;  %v4544_v13 = vld [vmem:[%s7233_s14 + $0x30] sm:$0xff] }
 0x4db   :  { %v5965_v4 = vpop.eup %5964 }
 0x4dc   :  { %v5967_v15 = vpop.eup %5966  ;;  %v4342_v56 = vadd.f32 1.0, %v5965_v4 }
 0x4dd   :  { %v5969_v42 = vpop.eup %5968 }
 0x4de   :  { %v4345_v16 = vmul.f32 %v5969_v42, %v5967_v15  ;;  %5972 = vrcp.f32 %v4342_v56  ;;  %v4547_v15 = vld [vmem:[%s7233_s14 + $0x48] sm:$0xff]  ;;  %v4546_v56 = vld [vmem:[%s7233_s14 + $0x40] sm:$0xff] }
 0x4e0   :  { %v5971_v55 = vpop.eup %5970 }
 0x4e1   :  { %v4344_v60 = vmul.f32 %v5971_v55, %v6796_v33  ;;  %v4538_v33 = vld [vmem:[%s7233_s14] sm:$0xff] }
 0x4e2   :  { %5872 = vmatpush3.msra.mxu0 %v4538_v33  ;;  %v4553_v33 = vld [vmem:[%s7233_s14 + $0x78] sm:$0xff] }
 0x4e3   :  { %v4346_v1 = vadd.f32 %v4345_v16, %v4344_v60  ;;  %5883 = vmatprep.subr.mxu0 %v5976_v0  ;;  %v4549_v16 = vld [vmem:[%s7233_s14 + $0x58] sm:$0xff] }
 0x4e5   :  { %5974 = vtanh.f32 %v4346_v1 }
 0x4eb   :  { %v5973_v6 = vpop.eup %5972 }
 0x4f2   :  { %v5975_v23 = vpop.eup %5974 }
 0x4f3   :  { %v4348_v10 = vmul.f32 %v5975_v23, %v5973_v6  ;;  %v4548_v6 = vld [vmem:[%s7233_s14 + $0x50] sm:$0xff] }
 0x4f5   :  { %5867 = vmatmul.mubr.msk.f32.vlgmr.msra.gmra.mxu1 %vm82_vm1, %v4348_v10  ;;  %v4551_v10 = vld [vmem:[%s7233_s14 + $0x68] sm:$0xff] }
 0x4f6   :  { %5880 = vmatprep.mubr.msk.f32.mxu1 %vm5977_vm0, %v5976_v0  ;;  %5877 = vmatpush3.msra.mxu1 %v4541_v44 }
 0x4f7   :  { %5878 = vmatprep.subr.mxu1 %v5976_v0 }
 0x4f8   :  { %5879 = vmatpush3.msra.mxu1 %v4540_v12  ;;  %v4552_v12 = vld [vmem:[%s7233_s14 + $0x70] sm:$0xff] }
 0x4f9   :  { %5890 = vmatprep.subr.mxu1 %v5976_v0 }
 0x5b5   :  { %v4427_v52 = vpop.f32.mrf.mxu1 }
 0x5b6   :  { %v4428_v22 = vadd.f32 %v5307_v18, %v4427_v52 }
 0x5b7   :  { %v5868_v53 = vpop.f32.mrf.mxu1 }
 0x5b8   :  { %v4431_v38 = vadd.f32 %v4428_v22, %v6424_v25 }
 0x5ba   :  { %v4433_v30 = vcombine.high %v4431_v38, %v4431_v38  ;;  %v4440_v31 = vrot.slane %v4431_v38, %v6427_v29 }
 0x5bc   :  { %v4447_v26 = vrot.slane %v4433_v30, %v6427_v29  ;;  %v4448_v39 = vcombine.high %v4440_v31, %v4440_v31  ;;  %v4456_v51 = vrot.slane %v4440_v31, %v6427_v29 }
 0x5be   :  { %v4470_v43 = vrot.slane %v4448_v39, %v6427_v29  ;;  %v4478_v49 = vcombine.high %v4456_v51, %v4456_v51  ;;  %v4485_v8 = vrot.slane %v4456_v51, %v6431_v48  ;;  %v4449_v45 = vcombine.high %v4447_v26, %v4447_v26 }
 0x5bf   :  { %v4463_v32 = vrot.slane %v4447_v26, %v6427_v29 }
 0x5c0   :  { %v4480_v46 = vcombine.high %v4470_v43, %v4470_v43  ;;  %v4489_v27 = vrot.slane %v4470_v43, %v6431_v48  ;;  %v4493_v25 = vrot.slane %v4478_v49, %v6431_v48  ;;  %v4522_v62 = vadd.f32 %v4485_v8, %v6443_v63  ;;  %v4542_v63 = vld [vmem:[%s7233_s14 + $0x20] sm:$0xff] }
 0x5c1   :  { %v4477_v58 = vrot.slane %v4449_v45, %v6427_v29  ;;  %v4501_v21 = vrot.slane %v4463_v32, %v6431_v48  ;;  %v4479_v29 = vcombine.high %v4463_v32, %v4463_v32 }
 0x5c2   :  { %v4497_v54 = vrot.slane %v4480_v46, %v6431_v48  ;;  %v4530_v11 = vmax.f32 %v4522_v62, 0.0  ;;  %v4523_v57 = vadd.f32 %v4489_v27, %v6448_v2  ;;  %v4524_v47 = vadd.f32 %v4493_v25, %v6453_v7 }
 0x5c3   :  { %v4505_v4 = vrot.slane %v4477_v58, %v6431_v48  ;;  %v4481_v42 = vcombine.high %v4477_v58, %v4477_v58  ;;  %v4509_v60 = vrot.slane %v4479_v29, %v6431_v48 }
 0x5c4   :  { %5874 = vmatmul.mubr.msk.f32.vlgmr.msra.gmra.mxu0 %vm82_vm1, %v4530_v11  ;;  %v4531_v61 = vmax.f32 %v4523_v57, 0.0  ;;  %v4525_v2 = vadd.f32 %v4497_v54, %v6468_v50  ;;  %v4532_v7 = vmax.f32 %v4524_v47, 0.0  ;;  %v4526_v50 = vadd.f32 %v4501_v21, %v6489_v34 }
 0x5c5   :  { %5884 = vmatpush3.msra.mxu0 %v4543_v3  ;;  %5887 = vmatprep.mubr.msk.f32.mxu0 %vm5977_vm0, %v5976_v0  ;;  %v4527_v34 = vadd.f32 %v4505_v4, %v6511_v59  ;;  %v4513_v23 = vrot.slane %v4481_v42, %v6431_v48  ;;  %v4528_v59 = vadd.f32 %v4509_v60, %v6534_v9  ;;  %v4550_v48 = vld [vmem:[%s7233_s14 + $0x60] sm:$0xff] }
 0x5c6   :  { %5881 = vmatmul.mubr.msk.f32.vlgmr.msra.gmra.mxu1 %vm82_vm1, %v4531_v61  ;;  %5885 = vmatprep.subr.mxu0 %v5976_v0  ;;  %v4533_v55 = vmax.f32 %v4525_v2, 0.0  ;;  %v4534_v1 = vmax.f32 %v4526_v50, 0.0 }
 0x5c7   :  { %5886 = vmatpush3.msra.mxu0 %v4542_v63  ;;  %5891 = vmatpush3.msra.mxu1 %v4545_v24  ;;  %v4535_v17 = vmax.f32 %v4527_v34, 0.0  ;;  %v4529_v44 = vadd.f32 %v4513_v23, %v6557_v19  ;;  %v4536_v9 = vmax.f32 %v4528_v59, 0.0 }
 0x5c8   :  { %5888 = vmatmul.mubr.msk.f32.vlgmr.msra.gmra.mxu0 %vm82_vm1, %v4532_v7  ;;  %5892 = vmatprep.subr.mxu1 %v5976_v0 }
 0x5c9   :  { %5897 = vmatprep.subr.mxu0 %v5976_v0  ;;  %5893 = vmatpush3.msra.mxu1 %v4544_v13  ;;  %v4537_v19 = vmax.f32 %v4529_v44, 0.0 }
 0x5ca   :  { %5894 = vmatprep.mubr.msk.f32.mxu1 %vm5977_vm0, %v5976_v0  ;;  %5898 = vmatpush3.msra.mxu0 %v4547_v15 }
 0x5cb   :  { %5895 = vmatmul.mubr.msk.f32.vlgmr.msra.gmra.mxu1 %vm82_vm1, %v4533_v55  ;;  %5899 = vmatprep.subr.mxu0 %v5976_v0 }
 0x5cc   :  { %5904 = vmatprep.subr.mxu1 %v5976_v0  ;;  %5900 = vmatpush3.msra.mxu0 %v4546_v56 }
 0x5cd   :  { %5901 = vmatprep.mubr.msk.f32.mxu0 %vm5977_vm0, %v5976_v0  ;;  %5905 = vmatpush3.msra.mxu1 %v4549_v16 }
 0x5ce   :  { %5902 = vmatmul.mubr.msk.f32.vlgmr.msra.gmra.mxu0 %vm82_vm1, %v4534_v1  ;;  %5906 = vmatprep.subr.mxu1 %v5976_v0 }
 0x5cf   :  { %5911 = vmatprep.subr.mxu0 %v5976_v0  ;;  %5907 = vmatpush3.msra.mxu1 %v4548_v6 }
 0x5d0   :  { %5908 = vmatprep.mubr.msk.f32.mxu1 %vm5977_vm0, %v5976_v0  ;;  %5912 = vmatpush3.msra.mxu0 %v4551_v10 }
 0x5d1   :  { %5909 = vmatmul.mubr.msk.f32.vlgmr.msra.gmra.mxu1 %vm82_vm1, %v4535_v17  ;;  %5913 = vmatprep.subr.mxu0 %v5976_v0 }
 0x5d2   :  { %5918 = vmatprep.subr.mxu1 %v5976_v0  ;;  %5914 = vmatpush3.msra.mxu0 %v4550_v48 }
 0x5d3   :  { %5915 = vmatprep.mubr.msk.f32.mxu0 %vm5977_vm0, %v5976_v0  ;;  %5919 = vmatpush3.msra.mxu1 %v4553_v33 }
 0x5d4   :  { %5916 = vmatmul.mubr.msk.f32.vlgmr.msra.gmra.mxu0 %vm82_vm1, %v4536_v9  ;;  %5920 = vmatprep.subr.mxu1 %v5976_v0 }
 0x5d5   :  { %5921 = vmatpush3.msra.mxu1 %v4552_v12  ;;  %5922 = vmatprep.mubr.msk.f32.mxu1 %vm5977_vm0, %v5976_v0 }
 0x5d6   :  { %5923 = vmatmul.mubr.msk.f32.vlgmr.msra.gmra.mxu1 %vm82_vm1, %v4537_v19 }
 0x684   :  { %v4625_v18 = vpop.f32.mrf.mxu0 }
 0x685   :  { %v4626_v52 = vadd.f32 %v4625_v18, %v6690_v36 }
 0x686   :  { %v5875_v22 = vpop.f32.mrf.mxu0  ;;  %v4698_v53 = vpop.f32.mrf.mxu1 }
 0x687   :  { %v5156_v38 = vsel %vm2208_vm4, %v4626_v52, -100.0  ;;  %v4699_v30 = vadd.f32 %v4698_v53, %v6690_v36 }
 0x688   :  { %5317 = vst.msk [vmem:[%s7239_s15 + $0x80] sm:$0xff] %vm2224_vm5, %v5156_v38  ;;  %v5882_v31 = vpop.f32.mrf.mxu1  ;;  %v4771_v26 = vpop.f32.mrf.mxu0 }
 0x689   :  { %v5157_v0 = vsel %vm2209_vm6, %v4699_v30, -100.0  ;;  %v4772_v39 = vadd.f32 %v4771_v26, %v6690_v36 }
 0x68a   :  { %5318 = vst.msk [vmem:[%s7239_s15 + $0x88] sm:$0xff] %vm2224_vm5, %v5157_v0  ;;  %v5889_v35 = vpop.f32.mrf.mxu0 }
 0x68b   :  { %v5158_v51 = vsel %vm2210_vm7, %v4772_v39, -100.0  ;;  %v4844_v43 = vpop.f32.mrf.mxu1 }
 0x68c   :  { %5319 = vst.msk [vmem:[%s7239_s15 + $0x90] sm:$0xff] %vm2224_vm5, %v5158_v51  ;;  %v4845_v37 = vadd.f32 %v4844_v43, %v6690_v36 }
 0x68d   :  { %v5896_v49 = vpop.f32.mrf.mxu1 }
 0x68e   :  { %v5159_v8 = vsel %vm2211_vm8, %v4845_v37, -100.0  ;;  %v4917_v45 = vpop.f32.mrf.mxu0 }
 0x68f   :  { %5320 = vst.msk [vmem:[%s7239_s15 + $0x98] sm:$0xff] %vm2224_vm5, %v5159_v8  ;;  %v4918_v41 = vadd.f32 %v4917_v45, %v6690_v36 }
 0x690   :  { %v5903_v46 = vpop.f32.mrf.mxu0 }
 0x691   :  { %v5160_v27 = vsel %vm2212_vm9, %v4918_v41, -100.0  ;;  %v4990_v32 = vpop.f32.mrf.mxu1 }
 0x692   :  { %5321 = vst.msk [vmem:[%s7239_s15 + $0xa0] sm:$0xff] %vm2224_vm5, %v5160_v27  ;;  %v4991_v14 = vadd.f32 %v4990_v32, %v6690_v36 }
 0x693   :  { %v5910_v25 = vpop.f32.mrf.mxu1 }
 0x694   :  { %v5161_v62 = vsel %vm2213_vm10, %v4991_v14, -100.0  ;;  %v5063_v54 = vpop.f32.mrf.mxu0 }
 0x695   :  { %5322 = vst.msk [vmem:[%s7239_s15 + $0xa8] sm:$0xff] %vm2224_vm5, %v5161_v62  ;;  %v5064_v5 = vadd.f32 %v5063_v54, %v6690_v36 }
 0x696   :  { %v5917_v11 = vpop.f32.mrf.mxu0  ;;  %v5136_v3 = vpop.f32.mrf.mxu1 }
 0x697   :  { %v5162_v57 = vsel %vm2214_vm11, %v5064_v5, -100.0  ;;  %v5137_v47 = vadd.f32 %v5136_v3, %v6690_v36 }
 0x698   :  { %5323 = vst.msk [vmem:[%s7239_s15 + $0xb0] sm:$0xff] %vm2224_vm5, %v5162_v57  ;;  %v5924_v20 = vpop.f32.mrf.mxu1 }
 0x699   :  { %v5163_v58 = vsel %vm2215_vm12, %v5137_v47, -100.0 }
 0x69a   :  { %5324 = vst.msk [vmem:[%s7239_s15 + $0xb8] sm:$0xff] %vm2224_vm5, %v5163_v58 }

</bundles_post_ra>
